<compile_context>
chip_gen: v6e
topology: v6e:2x2x1
jax: 0.10.0
libtpu: 0.0.40
codegen_flags: <defaults>
</compile_context>

<pallas_src>
import functools

import jax
import jax.numpy as jnp
import numpy as np
from jax.experimental import pallas as pl
from jax.experimental.pallas import tpu as pltpu


# --------------------------------------------------------------------------
# Kernel
# --------------------------------------------------------------------------
def pointnetfeat_kernel(x_ref, w1_ref, b1_ref, w2_ref, b2_ref, w3w64_ref,
                        b64_ref, wc2_ref, bc2_ref, wc3_ref, bc3_ref, out_ref,
                        *, point_chunk):
    """grid = (B // TB,).  One grid step processes TB batches (TB*N points).

    x_ref   : (TB, V, N, 3) f32           point slab (native layout, no transpose)
    w1/b1   : (V, 3, 64) f32 / (V, 1, 64) f32     per-view conv1+bn1 (BN folded)
    w2/b2   : (V, 64, 128) bf16 / (V, 1, 128) f32 per-view conv2+bn2 (BN folded)
    w3w64   : (V*128, 64) bf16            per-view bn3(conv3) @ convto64 slice,
                                          host-folded and row-concatenated over views
    b64     : (1, 64) f32                 convto64/bn_64 bias + folded b3 contribution
    wc2/bc2 : (64, 128) bf16 / (1, 128) f32       trunk conv2+bn2 (BN folded)
    wc3/bc3 : (128, 1024) bf16 / (1, 1024) f32    trunk conv3+bn3 (BN folded)
    out_ref : (TB, 1, 1024) f32
    """
    TB, V, N, C = x_ref.shape
    M = TB * N

    xall = x_ref[...]                             # (TB, V, N, 3) f32
    hs = []
    for v in range(V):                            # static unroll; weights VMEM-resident
        xv = xall[:, v].reshape(M, C)             # (M, 3)
        w1v = w1_ref[v]                           # (3, 64)
        # 3 -> 64 as VPU broadcast-FMAs in f32 (avoid a wasted K=3 MXU pass).
        h = (xv[:, 0:1] * w1v[0:1, :]
             + xv[:, 1:2] * w1v[1:2, :]
             + xv[:, 2:3] * w1v[2:3, :]) + b1_ref[v]
        h = jnp.maximum(h, 0.0)                   # relu(bn1(conv1))        (M, 64) f32
        h = jnp.dot(h.astype(jnp.bfloat16), w2_ref[v],
                    preferred_element_type=jnp.float32) + b2_ref[v]
        h = jnp.maximum(h, 0.0)                   # relu(bn2(conv2))        (M, 128) f32
        hs.append(h.astype(jnp.bfloat16))

    # All views in one K = V*128 MXU contraction (cross-view sum done in the MXU).
    hcat = jnp.concatenate(hs, axis=1)            # (M, V*128) bf16
    acc = jnp.dot(hcat, w3w64_ref[...], preferred_element_type=jnp.float32)
    p = jnp.maximum(acc + b64_ref[...], 0.0)      # pointfeat               (M, 64) f32
    p3 = p.reshape(TB, N, 64)

    # Trunk conv2 -> conv3 -> per-batch max over points, chunked over points with a
    # running max so the (rows, 1024) intermediate never exceeds (TB*point_chunk, 1024).
    wc2 = wc2_ref[...]
    bc2 = bc2_ref[...]
    wc3 = wc3_ref[...]
    bc3 = bc3_ref[...]
    CH = point_chunk
    g_max = None
    for c in range(N // CH):                      # static unroll
        pc = p3[:, c * CH:(c + 1) * CH, :].reshape(TB * CH, 64).astype(jnp.bfloat16)
        g = jnp.dot(pc, wc2, preferred_element_type=jnp.float32) + bc2
        g = jnp.maximum(g, 0.0).astype(jnp.bfloat16)          # relu(bn2(conv2))
        g = jnp.dot(g, wc3, preferred_element_type=jnp.float32) + bc3  # (TB*CH, 1024) f32
        m = jnp.max(g.reshape(TB, CH, 1024), axis=1, keepdims=True)    # (TB, 1, 1024)
        g_max = m if g_max is None else jnp.maximum(g_max, m)

    out_ref[...] = g_max                          # single lane-dense store


# --------------------------------------------------------------------------
# Wrapper helpers
# --------------------------------------------------------------------------
def _vmem_budget_bytes():
    """Generation-aware scoped-VMEM request (conservative on v7x's 64 MiB)."""
    try:
        cap = pltpu.get_tpu_info().vmem_capacity_bytes
    except Exception:
        cap = 64 * 1024 * 1024   # conservative fallback (safe on every generation)
    return int(min(64 * 1024 * 1024, cap * 0.6))


def _pick_block_batch(B, N, max_rows, min_grid=2):
    """Largest TB dividing B with TB*N <= max_rows while keeping at least
    `min_grid` grid steps (so v7x's two TensorCores both get work)."""
    divs = [d for d in range(1, B + 1) if B % d == 0]
    for relax_grid in (False, True):
        cands = [d for d in divs
                 if d * N <= max_rows and (relax_grid or B // d >= min_grid)]
        if cands:
            return max(cands)
    return 1   # N alone exceeds max_rows; trunk point-chunking bounds VMEM anyway.


def _pick_point_chunk(N, max_chunk=512):
    if N <= max_chunk:
        return N
    for ch in range(max_chunk - max_chunk % 8, 7, -8):
        if N % ch == 0:
            return ch
    return N


# --------------------------------------------------------------------------
# Wrapper
# --------------------------------------------------------------------------
def pointnetfeat(x, params, *, block_batch=None):
    """x: (B, V, N, 3) float32 -> (B, 1024) float32 (global_feat=True)."""
    B, V, N, C = x.shape
    assert C == 3
    assert N % 8 == 0, "N must be a multiple of 8 (pad the point count) for aligned tiles"
    (w1, b1, w2, b2, w3, b3, w64, b64, wc2, bc2, wc3, bc3) = params
    hi = jax.lax.Precision.HIGHEST

    # Exact host-side fold (no nonlinearity between bn3(conv3) and convto64):
    #   sum_v (h_v @ w3[v] + b3[v]) @ w64[v]
    # = concat_v(h_v) @ concat_v(w3[v] @ w64[v])  +  sum_v b3[v] @ w64[v]
    w3w64 = jnp.einsum('vkc,vco->vko', w3, w64, precision=hi).reshape(V * 128, 64)
    b64_eff = b64 + jnp.einsum('vxc,vco->xo', b3, w64, precision=hi)   # (1, 64)

    # bf16 weights for the MXU matmuls (accumulation stays f32 in the kernel).
    w2_bf = w2.astype(jnp.bfloat16)
    w3w64_bf = w3w64.astype(jnp.bfloat16)
    wc2_bf = wc2.astype(jnp.bfloat16)
    wc3_bf = wc3.astype(jnp.bfloat16)

    vmem_budget = _vmem_budget_bytes()
    max_rows = 2048 if vmem_budget >= 48 * 1024 * 1024 else 1024
    TB = block_batch if block_batch is not None else _pick_block_batch(B, N, max_rows)
    assert B % TB == 0, "block_batch must divide the batch size"
    CH = _pick_point_chunk(N)

    const3 = lambda i: (0, 0, 0)   # resident weights: DMA'd once, never re-fetched
    const2 = lambda i: (0, 0)

    kernel = functools.partial(pointnetfeat_kernel, point_chunk=CH)
    out = pl.pallas_call(
        kernel,
        out_shape=jax.ShapeDtypeStruct((B, 1, 1024), jnp.float32),
        grid_spec=pltpu.PrefetchScalarGridSpec(
            num_scalar_prefetch=0,
            grid=(B // TB,),
            in_specs=[
                pl.BlockSpec((TB, V, N, C), lambda i: (i, 0, 0, 0)),  # x (native layout)
                pl.BlockSpec((V, C, 64), const3),                     # w1 (all views resident)
                pl.BlockSpec((V, 1, 64), const3),                     # b1
                pl.BlockSpec((V, 64, 128), const3),                   # w2 (bf16)
                pl.BlockSpec((V, 1, 128), const3),                    # b2
                pl.BlockSpec((V * 128, 64), const2),                  # concat w3 @ w64 (bf16)
                pl.BlockSpec((1, 64), const2),                        # b64 (+ folded b3 term)
                pl.BlockSpec((64, 128), const2),                      # trunk conv2+bn2 (bf16)
                pl.BlockSpec((1, 128), const2),
                pl.BlockSpec((128, 1024), const2),                    # trunk conv3+bn3 (bf16)
                pl.BlockSpec((1, 1024), const2),
            ],
            out_specs=pl.BlockSpec((TB, 1, 1024), lambda i: (i, 0, 0)),
        ),
        compiler_params=pltpu.CompilerParams(
            dimension_semantics=("parallel",),
            vmem_limit_bytes=vmem_budget),
    )(x, w1, b1, w2_bf, b2, w3w64_bf, b64_eff, wc2_bf, bc2, wc3_bf, bc3)
    return out.reshape(B, 1024)


# --------------------------------------------------------------------------
# Deterministic parameter construction (Conv1d k=1 weights + eval-mode BN fold)
# --------------------------------------------------------------------------
def _fold_conv_bn(w, b, gamma, beta, mean, var, eps=1e-5):
    # w: (cout, cin), b: (cout,)   ->   (cin, cout), (cout,)
    scale = gamma / jnp.sqrt(var + eps)
    w_eff = (w * scale[:, None]).T
    b_eff = b * scale + (beta - mean * scale)
    return w_eff, b_eff


def _rand_conv_bn(key, cin, cout):
    k = jax.random.split(key, 6)
    w = jax.random.normal(k[0], (cout, cin), jnp.float32) / jnp.sqrt(cin)
    b = jax.random.normal(k[1], (cout,), jnp.float32) * 0.1
    gamma = jax.random.uniform(k[2], (cout,), jnp.float32, minval=0.5, maxval=1.5)
    beta = jax.random.normal(k[3], (cout,), jnp.float32) * 0.1
    mean = jax.random.normal(k[4], (cout,), jnp.float32) * 0.1
    var = jax.random.uniform(k[5], (cout,), jnp.float32, minval=0.5, maxval=1.5)
    return _fold_conv_bn(w, b, gamma, beta, mean, var)


def init_params(key, views):
    keys = jax.random.split(key, 3 * views + 3)
    w1s, b1s, w2s, b2s, w3s, b3s = [], [], [], [], [], []
    for r in range(views):  # each view has its own N_Views_MLP_for_3d
        wa, ba = _rand_conv_bn(keys[3 * r + 0], 3, 64)
        wb, bb = _rand_conv_bn(keys[3 * r + 1], 64, 128)
        wc, bc = _rand_conv_bn(keys[3 * r + 2], 128, 1024)
        w1s.append(wa); b1s.append(ba[None, :])
        w2s.append(wb); b2s.append(bb[None, :])
        w3s.append(wc); b3s.append(bc[None, :])
    w1 = jnp.stack(w1s); b1 = jnp.stack(b1s)            # (V, 3, 64),   (V, 1, 64)
    w2 = jnp.stack(w2s); b2 = jnp.stack(b2s)            # (V, 64, 128), (V, 1, 128)
    w3 = jnp.stack(w3s); b3 = jnp.stack(b3s)            # (V, 128,1024),(V, 1, 1024)

    w64_flat, b64_flat = _rand_conv_bn(keys[3 * views + 0], 1024 * views, 64)  # convto64 + bn_64
    w64 = w64_flat.reshape(views, 1024, 64)             # per-view slices of the channel-concat
    b64 = b64_flat[None, :]                             # (1, 64)

    wc2, bc2 = _rand_conv_bn(keys[3 * views + 1], 64, 128)      # conv2 + bn2
    wc3, bc3 = _rand_conv_bn(keys[3 * views + 2], 128, 1024)    # conv3 + bn3
    bc2 = bc2[None, :]; bc3 = bc3[None, :]

    return (w1, b1, w2, b2, w3, b3, w64, b64, wc2, bc2, wc3, bc3)


# --------------------------------------------------------------------------
# Plain-JAX f32 reference (unfolded w3/w64, same BN-folded params)
# --------------------------------------------------------------------------
def reference(x, params):
    (w1, b1, w2, b2, w3, b3, w64, b64, wc2, bc2, wc3, bc3) = params
    B, V, N, C = x.shape
    hi = jax.lax.Precision.HIGHEST
    acc = jnp.zeros((B, N, 64), jnp.float32)
    for v in range(V):
        h = x[:, v]
        h = jax.nn.relu(jnp.einsum('bnc,co->bno', h, w1[v], precision=hi) + b1[v])
        h = jax.nn.relu(jnp.einsum('bnc,co->bno', h, w2[v], precision=hi) + b2[v])
        h = jnp.einsum('bnc,co->bno', h, w3[v], precision=hi) + b3[v]
        acc = acc + jnp.einsum('bnc,co->bno', h, w64[v], precision=hi)
    p = jax.nn.relu(acc + b64)
    g = jax.nn.relu(jnp.einsum('bnc,co->bno', p, wc2, precision=hi) + bc2)
    g = jnp.einsum('bnc,co->bno', g, wc3, precision=hi) + bc3
    return jnp.max(g, axis=1)


if __name__ == "__main__":
    B, V, N, C = 2, 4, 128, 3   # small shapes: batch=2, views=4, points=128, xyz=3
    key = jax.random.PRNGKey(0)
    kx, kp = jax.random.split(key)
    x = jax.random.normal(kx, (B, V, N, C), jnp.float32)
    params = init_params(kp, V)

    out = pointnetfeat(x, params)
    out = jax.block_until_ready(out)
    assert out.shape == (B, 1024)

    ref = reference(x, params)
    # Tolerance accounts for bf16 MXU inputs (f32 accumulation) vs the f32 reference.
    np.testing.assert_allclose(np.asarray(out), np.asarray(ref), rtol=5e-2, atol=5e-2)
    print("KERNEL_OK")
</pallas_src>

<mosaic_0001>
module attributes {stable_mosaic.version = 11 : i64} {
  func.func @pointnetfeat_kernel(%arg0: i32, %arg1: memref<1x4x128x3xf32, #tpu.memory_space<vmem>>, %arg2: memref<4x3x64xf32, #tpu.memory_space<vmem>>, %arg3: memref<4x1x64xf32, #tpu.memory_space<vmem>>, %arg4: memref<4x64x128xbf16, #tpu.memory_space<vmem>>, %arg5: memref<4x1x128xf32, #tpu.memory_space<vmem>>, %arg6: memref<512x64xbf16, #tpu.memory_space<vmem>>, %arg7: memref<1x64xf32, #tpu.memory_space<vmem>>, %arg8: memref<64x128xbf16, #tpu.memory_space<vmem>>, %arg9: memref<1x128xf32, #tpu.memory_space<vmem>>, %arg10: memref<128x1024xbf16, #tpu.memory_space<vmem>>, %arg11: memref<1x1024xf32, #tpu.memory_space<vmem>>, %arg12: memref<1x1x1024xf32, #tpu.memory_space<vmem>>) attributes {dimension_semantics = [#tpu.dimension_semantics<parallel>], iteration_bounds = array<i64: 2>, scalar_prefetch = 0 : i64, scratch_operands = 0 : i64, tpu.core_type = #tpu.core_type<tc>, window_params = [{transform_indices = @transform_0, window_bounds = array<i64: 1, 4, 128, 3>}, {pipeline_mode = #tpu.pipeline_mode<synchronous>, transform_indices = @transform_1, window_bounds = array<i64: 4, 3, 64>}, {pipeline_mode = #tpu.pipeline_mode<synchronous>, transform_indices = @transform_2, window_bounds = array<i64: 4, 1, 64>}, {pipeline_mode = #tpu.pipeline_mode<synchronous>, transform_indices = @transform_3, window_bounds = array<i64: 4, 64, 128>}, {pipeline_mode = #tpu.pipeline_mode<synchronous>, transform_indices = @transform_4, window_bounds = array<i64: 4, 1, 128>}, {pipeline_mode = #tpu.pipeline_mode<synchronous>, transform_indices = @transform_5, window_bounds = array<i64: 512, 64>}, {pipeline_mode = #tpu.pipeline_mode<synchronous>, transform_indices = @transform_6, window_bounds = array<i64: 1, 64>}, {pipeline_mode = #tpu.pipeline_mode<synchronous>, transform_indices = @transform_7, window_bounds = array<i64: 64, 128>}, {pipeline_mode = #tpu.pipeline_mode<synchronous>, transform_indices = @transform_8, window_bounds = array<i64: 1, 128>}, {pipeline_mode = #tpu.pipeline_mode<synchronous>, transform_indices = @transform_9, window_bounds = array<i64: 128, 1024>}, {pipeline_mode = #tpu.pipeline_mode<synchronous>, transform_indices = @transform_10, window_bounds = array<i64: 1, 1024>}, {transform_indices = @transform_11, window_bounds = array<i64: 1, 1, 1024>}]} {
    %c0 = arith.constant 0 : index
    %c0_0 = arith.constant 0 : index
    %c0_1 = arith.constant 0 : index
    %c0_2 = arith.constant 0 : index
    %0 = vector.load %arg1[%c0, %c0_0, %c0_1, %c0_2] : memref<1x4x128x3xf32, #tpu.memory_space<vmem>>, vector<1x4x128x3xf32>
    %1 = vector.extract_strided_slice %0 {offsets = [0, 0, 0, 0], sizes = [1, 1, 128, 3], strides = [1, 1, 1, 1]} : vector<1x4x128x3xf32> to vector<1x1x128x3xf32>
    %2 = vector.shape_cast %1 : vector<1x1x128x3xf32> to vector<1x128x3xf32>
    %3 = vector.shape_cast %2 : vector<1x128x3xf32> to vector<128x3xf32>
    %c0_3 = arith.constant 0 : index
    %c0_4 = arith.constant 0 : index
    %c0_5 = arith.constant 0 : index
    %4 = vector.load %arg2[%c0_3, %c0_4, %c0_5] : memref<4x3x64xf32, #tpu.memory_space<vmem>>, vector<1x3x64xf32>
    %5 = vector.shape_cast %4 : vector<1x3x64xf32> to vector<3x64xf32>
    %6 = vector.extract_strided_slice %3 {offsets = [0, 0], sizes = [128, 1], strides = [1, 1]} : vector<128x3xf32> to vector<128x1xf32>
    %7 = vector.extract_strided_slice %5 {offsets = [0, 0], sizes = [1, 64], strides = [1, 1]} : vector<3x64xf32> to vector<1x64xf32>
    %8 = vector.broadcast %6 : vector<128x1xf32> to vector<128x64xf32>
    %9 = vector.broadcast %7 : vector<1x64xf32> to vector<128x64xf32>
    %10 = arith.mulf %8, %9 : vector<128x64xf32>
    %11 = vector.extract_strided_slice %3 {offsets = [0, 1], sizes = [128, 1], strides = [1, 1]} : vector<128x3xf32> to vector<128x1xf32>
    %12 = vector.extract_strided_slice %5 {offsets = [1, 0], sizes = [1, 64], strides = [1, 1]} : vector<3x64xf32> to vector<1x64xf32>
    %13 = vector.broadcast %11 : vector<128x1xf32> to vector<128x64xf32>
    %14 = vector.broadcast %12 : vector<1x64xf32> to vector<128x64xf32>
    %15 = arith.mulf %13, %14 : vector<128x64xf32>
    %16 = arith.addf %10, %15 : vector<128x64xf32>
    %17 = vector.extract_strided_slice %3 {offsets = [0, 2], sizes = [128, 1], strides = [1, 1]} : vector<128x3xf32> to vector<128x1xf32>
    %18 = vector.extract_strided_slice %5 {offsets = [2, 0], sizes = [1, 64], strides = [1, 1]} : vector<3x64xf32> to vector<1x64xf32>
    %19 = vector.broadcast %17 : vector<128x1xf32> to vector<128x64xf32>
    %20 = vector.broadcast %18 : vector<1x64xf32> to vector<128x64xf32>
    %21 = arith.mulf %19, %20 : vector<128x64xf32>
    %22 = arith.addf %16, %21 : vector<128x64xf32>
    %c0_6 = arith.constant 0 : index
    %c0_7 = arith.constant 0 : index
    %c0_8 = arith.constant 0 : index
    %23 = vector.load %arg3[%c0_6, %c0_7, %c0_8] : memref<4x1x64xf32, #tpu.memory_space<vmem>>, vector<1x1x64xf32>
    %24 = vector.shape_cast %23 : vector<1x1x64xf32> to vector<1x64xf32>
    %25 = vector.broadcast %24 : vector<1x64xf32> to vector<128x64xf32>
    %26 = arith.addf %22, %25 : vector<128x64xf32>
    %cst = arith.constant 0.000000e+00 : f32
    %27 = vector.broadcast %cst : f32 to vector<128x64xf32>
    %28 = arith.maximumf %26, %27 : vector<128x64xf32>
    %29 = arith.truncf %28 : vector<128x64xf32> to vector<128x64xbf16>
    %c0_9 = arith.constant 0 : index
    %c0_10 = arith.constant 0 : index
    %c0_11 = arith.constant 0 : index
    %30 = vector.load %arg4[%c0_9, %c0_10, %c0_11] : memref<4x64x128xbf16, #tpu.memory_space<vmem>>, vector<1x64x128xbf16>
    %31 = vector.shape_cast %30 : vector<1x64x128xbf16> to vector<64x128xbf16>
    %cst_12 = arith.constant dense<0.000000e+00> : vector<128x128xf32>
    %32 = tpu.matmul %29, %31, %cst_12 {dimension_numbers = #tpu.dot_dimension_numbers<[1], [0], [0], [1], [0, 0, 1, 1], [], []>} : vector<128x64xbf16>, vector<64x128xbf16>, vector<128x128xf32> -> vector<128x128xf32>
    %c0_13 = arith.constant 0 : index
    %c0_14 = arith.constant 0 : index
    %c0_15 = arith.constant 0 : index
    %33 = vector.load %arg5[%c0_13, %c0_14, %c0_15] : memref<4x1x128xf32, #tpu.memory_space<vmem>>, vector<1x1x128xf32>
    %34 = vector.shape_cast %33 : vector<1x1x128xf32> to vector<1x128xf32>
    %35 = vector.broadcast %34 : vector<1x128xf32> to vector<128x128xf32>
    %36 = arith.addf %32, %35 : vector<128x128xf32>
    %cst_16 = arith.constant 0.000000e+00 : f32
    %37 = vector.broadcast %cst_16 : f32 to vector<128x128xf32>
    %38 = arith.maximumf %36, %37 : vector<128x128xf32>
    %39 = arith.truncf %38 : vector<128x128xf32> to vector<128x128xbf16>
    %40 = vector.extract_strided_slice %0 {offsets = [0, 1, 0, 0], sizes = [1, 1, 128, 3], strides = [1, 1, 1, 1]} : vector<1x4x128x3xf32> to vector<1x1x128x3xf32>
    %41 = vector.shape_cast %40 : vector<1x1x128x3xf32> to vector<1x128x3xf32>
    %42 = vector.shape_cast %41 : vector<1x128x3xf32> to vector<128x3xf32>
    %c1 = arith.constant 1 : index
    %c0_17 = arith.constant 0 : index
    %c0_18 = arith.constant 0 : index
    %43 = vector.load %arg2[%c1, %c0_17, %c0_18] : memref<4x3x64xf32, #tpu.memory_space<vmem>>, vector<1x3x64xf32>
    %44 = vector.shape_cast %43 : vector<1x3x64xf32> to vector<3x64xf32>
    %45 = vector.extract_strided_slice %42 {offsets = [0, 0], sizes = [128, 1], strides = [1, 1]} : vector<128x3xf32> to vector<128x1xf32>
    %46 = vector.extract_strided_slice %44 {offsets = [0, 0], sizes = [1, 64], strides = [1, 1]} : vector<3x64xf32> to vector<1x64xf32>
    %47 = vector.broadcast %45 : vector<128x1xf32> to vector<128x64xf32>
    %48 = vector.broadcast %46 : vector<1x64xf32> to vector<128x64xf32>
    %49 = arith.mulf %47, %48 : vector<128x64xf32>
    %50 = vector.extract_strided_slice %42 {offsets = [0, 1], sizes = [128, 1], strides = [1, 1]} : vector<128x3xf32> to vector<128x1xf32>
    %51 = vector.extract_strided_slice %44 {offsets = [1, 0], sizes = [1, 64], strides = [1, 1]} : vector<3x64xf32> to vector<1x64xf32>
    %52 = vector.broadcast %50 : vector<128x1xf32> to vector<128x64xf32>
    %53 = vector.broadcast %51 : vector<1x64xf32> to vector<128x64xf32>
    %54 = arith.mulf %52, %53 : vector<128x64xf32>
    %55 = arith.addf %49, %54 : vector<128x64xf32>
    %56 = vector.extract_strided_slice %42 {offsets = [0, 2], sizes = [128, 1], strides = [1, 1]} : vector<128x3xf32> to vector<128x1xf32>
    %57 = vector.extract_strided_slice %44 {offsets = [2, 0], sizes = [1, 64], strides = [1, 1]} : vector<3x64xf32> to vector<1x64xf32>
    %58 = vector.broadcast %56 : vector<128x1xf32> to vector<128x64xf32>
    %59 = vector.broadcast %57 : vector<1x64xf32> to vector<128x64xf32>
    %60 = arith.mulf %58, %59 : vector<128x64xf32>
    %61 = arith.addf %55, %60 : vector<128x64xf32>
    %c1_19 = arith.constant 1 : index
    %c0_20 = arith.constant 0 : index
    %c0_21 = arith.constant 0 : index
    %62 = vector.load %arg3[%c1_19, %c0_20, %c0_21] : memref<4x1x64xf32, #tpu.memory_space<vmem>>, vector<1x1x64xf32>
    %63 = vector.shape_cast %62 : vector<1x1x64xf32> to vector<1x64xf32>
    %64 = vector.broadcast %63 : vector<1x64xf32> to vector<128x64xf32>
    %65 = arith.addf %61, %64 : vector<128x64xf32>
    %cst_22 = arith.constant 0.000000e+00 : f32
    %66 = vector.broadcast %cst_22 : f32 to vector<128x64xf32>
    %67 = arith.maximumf %65, %66 : vector<128x64xf32>
    %68 = arith.truncf %67 : vector<128x64xf32> to vector<128x64xbf16>
    %c1_23 = arith.constant 1 : index
    %c0_24 = arith.constant 0 : index
    %c0_25 = arith.constant 0 : index
    %69 = vector.load %arg4[%c1_23, %c0_24, %c0_25] : memref<4x64x128xbf16, #tpu.memory_space<vmem>>, vector<1x64x128xbf16>
    %70 = vector.shape_cast %69 : vector<1x64x128xbf16> to vector<64x128xbf16>
    %cst_26 = arith.constant dense<0.000000e+00> : vector<128x128xf32>
    %71 = tpu.matmul %68, %70, %cst_26 {dimension_numbers = #tpu.dot_dimension_numbers<[1], [0], [0], [1], [0, 0, 1, 1], [], []>} : vector<128x64xbf16>, vector<64x128xbf16>, vector<128x128xf32> -> vector<128x128xf32>
    %c1_27 = arith.constant 1 : index
    %c0_28 = arith.constant 0 : index
    %c0_29 = arith.constant 0 : index
    %72 = vector.load %arg5[%c1_27, %c0_28, %c0_29] : memref<4x1x128xf32, #tpu.memory_space<vmem>>, vector<1x1x128xf32>
    %73 = vector.shape_cast %72 : vector<1x1x128xf32> to vector<1x128xf32>
    %74 = vector.broadcast %73 : vector<1x128xf32> to vector<128x128xf32>
    %75 = arith.addf %71, %74 : vector<128x128xf32>
    %cst_30 = arith.constant 0.000000e+00 : f32
    %76 = vector.broadcast %cst_30 : f32 to vector<128x128xf32>
    %77 = arith.maximumf %75, %76 : vector<128x128xf32>
    %78 = arith.truncf %77 : vector<128x128xf32> to vector<128x128xbf16>
    %79 = vector.extract_strided_slice %0 {offsets = [0, 2, 0, 0], sizes = [1, 1, 128, 3], strides = [1, 1, 1, 1]} : vector<1x4x128x3xf32> to vector<1x1x128x3xf32>
    %80 = vector.shape_cast %79 : vector<1x1x128x3xf32> to vector<1x128x3xf32>
    %81 = vector.shape_cast %80 : vector<1x128x3xf32> to vector<128x3xf32>
    %c2 = arith.constant 2 : index
    %c0_31 = arith.constant 0 : index
    %c0_32 = arith.constant 0 : index
    %82 = vector.load %arg2[%c2, %c0_31, %c0_32] : memref<4x3x64xf32, #tpu.memory_space<vmem>>, vector<1x3x64xf32>
    %83 = vector.shape_cast %82 : vector<1x3x64xf32> to vector<3x64xf32>
    %84 = vector.extract_strided_slice %81 {offsets = [0, 0], sizes = [128, 1], strides = [1, 1]} : vector<128x3xf32> to vector<128x1xf32>
    %85 = vector.extract_strided_slice %83 {offsets = [0, 0], sizes = [1, 64], strides = [1, 1]} : vector<3x64xf32> to vector<1x64xf32>
    %86 = vector.broadcast %84 : vector<128x1xf32> to vector<128x64xf32>
    %87 = vector.broadcast %85 : vector<1x64xf32> to vector<128x64xf32>
    %88 = arith.mulf %86, %87 : vector<128x64xf32>
    %89 = vector.extract_strided_slice %81 {offsets = [0, 1], sizes = [128, 1], strides = [1, 1]} : vector<128x3xf32> to vector<128x1xf32>
    %90 = vector.extract_strided_slice %83 {offsets = [1, 0], sizes = [1, 64], strides = [1, 1]} : vector<3x64xf32> to vector<1x64xf32>
    %91 = vector.broadcast %89 : vector<128x1xf32> to vector<128x64xf32>
    %92 = vector.broadcast %90 : vector<1x64xf32> to vector<128x64xf32>
    %93 = arith.mulf %91, %92 : vector<128x64xf32>
    %94 = arith.addf %88, %93 : vector<128x64xf32>
    %95 = vector.extract_strided_slice %81 {offsets = [0, 2], sizes = [128, 1], strides = [1, 1]} : vector<128x3xf32> to vector<128x1xf32>
    %96 = vector.extract_strided_slice %83 {offsets = [2, 0], sizes = [1, 64], strides = [1, 1]} : vector<3x64xf32> to vector<1x64xf32>
    %97 = vector.broadcast %95 : vector<128x1xf32> to vector<128x64xf32>
    %98 = vector.broadcast %96 : vector<1x64xf32> to vector<128x64xf32>
    %99 = arith.mulf %97, %98 : vector<128x64xf32>
    %100 = arith.addf %94, %99 : vector<128x64xf32>
    %c2_33 = arith.constant 2 : index
    %c0_34 = arith.constant 0 : index
    %c0_35 = arith.constant 0 : index
    %101 = vector.load %arg3[%c2_33, %c0_34, %c0_35] : memref<4x1x64xf32, #tpu.memory_space<vmem>>, vector<1x1x64xf32>
    %102 = vector.shape_cast %101 : vector<1x1x64xf32> to vector<1x64xf32>
    %103 = vector.broadcast %102 : vector<1x64xf32> to vector<128x64xf32>
    %104 = arith.addf %100, %103 : vector<128x64xf32>
    %cst_36 = arith.constant 0.000000e+00 : f32
    %105 = vector.broadcast %cst_36 : f32 to vector<128x64xf32>
    %106 = arith.maximumf %104, %105 : vector<128x64xf32>
    %107 = arith.truncf %106 : vector<128x64xf32> to vector<128x64xbf16>
    %c2_37 = arith.constant 2 : index
    %c0_38 = arith.constant 0 : index
    %c0_39 = arith.constant 0 : index
    %108 = vector.load %arg4[%c2_37, %c0_38, %c0_39] : memref<4x64x128xbf16, #tpu.memory_space<vmem>>, vector<1x64x128xbf16>
    %109 = vector.shape_cast %108 : vector<1x64x128xbf16> to vector<64x128xbf16>
    %cst_40 = arith.constant dense<0.000000e+00> : vector<128x128xf32>
    %110 = tpu.matmul %107, %109, %cst_40 {dimension_numbers = #tpu.dot_dimension_numbers<[1], [0], [0], [1], [0, 0, 1, 1], [], []>} : vector<128x64xbf16>, vector<64x128xbf16>, vector<128x128xf32> -> vector<128x128xf32>
    %c2_41 = arith.constant 2 : index
    %c0_42 = arith.constant 0 : index
    %c0_43 = arith.constant 0 : index
    %111 = vector.load %arg5[%c2_41, %c0_42, %c0_43] : memref<4x1x128xf32, #tpu.memory_space<vmem>>, vector<1x1x128xf32>
    %112 = vector.shape_cast %111 : vector<1x1x128xf32> to vector<1x128xf32>
    %113 = vector.broadcast %112 : vector<1x128xf32> to vector<128x128xf32>
    %114 = arith.addf %110, %113 : vector<128x128xf32>
    %cst_44 = arith.constant 0.000000e+00 : f32
    %115 = vector.broadcast %cst_44 : f32 to vector<128x128xf32>
    %116 = arith.maximumf %114, %115 : vector<128x128xf32>
    %117 = arith.truncf %116 : vector<128x128xf32> to vector<128x128xbf16>
    %118 = vector.extract_strided_slice %0 {offsets = [0, 3, 0, 0], sizes = [1, 1, 128, 3], strides = [1, 1, 1, 1]} : vector<1x4x128x3xf32> to vector<1x1x128x3xf32>
    %119 = vector.shape_cast %118 : vector<1x1x128x3xf32> to vector<1x128x3xf32>
    %120 = vector.shape_cast %119 : vector<1x128x3xf32> to vector<128x3xf32>
    %c3 = arith.constant 3 : index
    %c0_45 = arith.constant 0 : index
    %c0_46 = arith.constant 0 : index
    %121 = vector.load %arg2[%c3, %c0_45, %c0_46] : memref<4x3x64xf32, #tpu.memory_space<vmem>>, vector<1x3x64xf32>
    %122 = vector.shape_cast %121 : vector<1x3x64xf32> to vector<3x64xf32>
    %123 = vector.extract_strided_slice %120 {offsets = [0, 0], sizes = [128, 1], strides = [1, 1]} : vector<128x3xf32> to vector<128x1xf32>
    %124 = vector.extract_strided_slice %122 {offsets = [0, 0], sizes = [1, 64], strides = [1, 1]} : vector<3x64xf32> to vector<1x64xf32>
    %125 = vector.broadcast %123 : vector<128x1xf32> to vector<128x64xf32>
    %126 = vector.broadcast %124 : vector<1x64xf32> to vector<128x64xf32>
    %127 = arith.mulf %125, %126 : vector<128x64xf32>
    %128 = vector.extract_strided_slice %120 {offsets = [0, 1], sizes = [128, 1], strides = [1, 1]} : vector<128x3xf32> to vector<128x1xf32>
    %129 = vector.extract_strided_slice %122 {offsets = [1, 0], sizes = [1, 64], strides = [1, 1]} : vector<3x64xf32> to vector<1x64xf32>
    %130 = vector.broadcast %128 : vector<128x1xf32> to vector<128x64xf32>
    %131 = vector.broadcast %129 : vector<1x64xf32> to vector<128x64xf32>
    %132 = arith.mulf %130, %131 : vector<128x64xf32>
    %133 = arith.addf %127, %132 : vector<128x64xf32>
    %134 = vector.extract_strided_slice %120 {offsets = [0, 2], sizes = [128, 1], strides = [1, 1]} : vector<128x3xf32> to vector<128x1xf32>
    %135 = vector.extract_strided_slice %122 {offsets = [2, 0], sizes = [1, 64], strides = [1, 1]} : vector<3x64xf32> to vector<1x64xf32>
    %136 = vector.broadcast %134 : vector<128x1xf32> to vector<128x64xf32>
    %137 = vector.broadcast %135 : vector<1x64xf32> to vector<128x64xf32>
    %138 = arith.mulf %136, %137 : vector<128x64xf32>
    %139 = arith.addf %133, %138 : vector<128x64xf32>
    %c3_47 = arith.constant 3 : index
    %c0_48 = arith.constant 0 : index
    %c0_49 = arith.constant 0 : index
    %140 = vector.load %arg3[%c3_47, %c0_48, %c0_49] : memref<4x1x64xf32, #tpu.memory_space<vmem>>, vector<1x1x64xf32>
    %141 = vector.shape_cast %140 : vector<1x1x64xf32> to vector<1x64xf32>
    %142 = vector.broadcast %141 : vector<1x64xf32> to vector<128x64xf32>
    %143 = arith.addf %139, %142 : vector<128x64xf32>
    %cst_50 = arith.constant 0.000000e+00 : f32
    %144 = vector.broadcast %cst_50 : f32 to vector<128x64xf32>
    %145 = arith.maximumf %143, %144 : vector<128x64xf32>
    %146 = arith.truncf %145 : vector<128x64xf32> to vector<128x64xbf16>
    %c3_51 = arith.constant 3 : index
    %c0_52 = arith.constant 0 : index
    %c0_53 = arith.constant 0 : index
    %147 = vector.load %arg4[%c3_51, %c0_52, %c0_53] : memref<4x64x128xbf16, #tpu.memory_space<vmem>>, vector<1x64x128xbf16>
    %148 = vector.shape_cast %147 : vector<1x64x128xbf16> to vector<64x128xbf16>
    %cst_54 = arith.constant dense<0.000000e+00> : vector<128x128xf32>
    %149 = tpu.matmul %146, %148, %cst_54 {dimension_numbers = #tpu.dot_dimension_numbers<[1], [0], [0], [1], [0, 0, 1, 1], [], []>} : vector<128x64xbf16>, vector<64x128xbf16>, vector<128x128xf32> -> vector<128x128xf32>
    %c3_55 = arith.constant 3 : index
    %c0_56 = arith.constant 0 : index
    %c0_57 = arith.constant 0 : index
    %150 = vector.load %arg5[%c3_55, %c0_56, %c0_57] : memref<4x1x128xf32, #tpu.memory_space<vmem>>, vector<1x1x128xf32>
    %151 = vector.shape_cast %150 : vector<1x1x128xf32> to vector<1x128xf32>
    %152 = vector.broadcast %151 : vector<1x128xf32> to vector<128x128xf32>
    %153 = arith.addf %149, %152 : vector<128x128xf32>
    %cst_58 = arith.constant 0.000000e+00 : f32
    %154 = vector.broadcast %cst_58 : f32 to vector<128x128xf32>
    %155 = arith.maximumf %153, %154 : vector<128x128xf32>
    %156 = arith.truncf %155 : vector<128x128xf32> to vector<128x128xbf16>
    %157 = tpu.concatenate %39, %78, %117, %156 in 1 : vector<128x128xbf16>, vector<128x128xbf16>, vector<128x128xbf16>, vector<128x128xbf16> -> vector<128x512xbf16>
    %c0_59 = arith.constant 0 : index
    %c0_60 = arith.constant 0 : index
    %158 = vector.load %arg6[%c0_59, %c0_60] : memref<512x64xbf16, #tpu.memory_space<vmem>>, vector<512x64xbf16>
    %cst_61 = arith.constant dense<0.000000e+00> : vector<128x64xf32>
    %159 = tpu.matmul %157, %158, %cst_61 {dimension_numbers = #tpu.dot_dimension_numbers<[1], [0], [0], [1], [0, 0, 1, 1], [], []>} : vector<128x512xbf16>, vector<512x64xbf16>, vector<128x64xf32> -> vector<128x64xf32>
    %c0_62 = arith.constant 0 : index
    %c0_63 = arith.constant 0 : index
    %160 = vector.load %arg7[%c0_62, %c0_63] : memref<1x64xf32, #tpu.memory_space<vmem>>, vector<1x64xf32>
    %161 = vector.broadcast %160 : vector<1x64xf32> to vector<128x64xf32>
    %162 = arith.addf %159, %161 : vector<128x64xf32>
    %cst_64 = arith.constant 0.000000e+00 : f32
    %163 = vector.broadcast %cst_64 : f32 to vector<128x64xf32>
    %164 = arith.maximumf %162, %163 : vector<128x64xf32>
    %165 = vector.shape_cast %164 : vector<128x64xf32> to vector<1x128x64xf32>
    %c0_65 = arith.constant 0 : index
    %c0_66 = arith.constant 0 : index
    %166 = vector.load %arg8[%c0_65, %c0_66] : memref<64x128xbf16, #tpu.memory_space<vmem>>, vector<64x128xbf16>
    %c0_67 = arith.constant 0 : index
    %c0_68 = arith.constant 0 : index
    %167 = vector.load %arg9[%c0_67, %c0_68] : memref<1x128xf32, #tpu.memory_space<vmem>>, vector<1x128xf32>
    %c0_69 = arith.constant 0 : index
    %c0_70 = arith.constant 0 : index
    %168 = vector.load %arg10[%c0_69, %c0_70] : memref<128x1024xbf16, #tpu.memory_space<vmem>>, vector<128x1024xbf16>
    %c0_71 = arith.constant 0 : index
    %c0_72 = arith.constant 0 : index
    %169 = vector.load %arg11[%c0_71, %c0_72] : memref<1x1024xf32, #tpu.memory_space<vmem>>, vector<1x1024xf32>
    %170 = vector.shape_cast %165 : vector<1x128x64xf32> to vector<128x64xf32>
    %171 = arith.truncf %170 : vector<128x64xf32> to vector<128x64xbf16>
    %cst_73 = arith.constant dense<0.000000e+00> : vector<128x128xf32>
    %172 = tpu.matmul %171, %166, %cst_73 {dimension_numbers = #tpu.dot_dimension_numbers<[1], [0], [0], [1], [0, 0, 1, 1], [], []>} : vector<128x64xbf16>, vector<64x128xbf16>, vector<128x128xf32> -> vector<128x128xf32>
    %173 = vector.broadcast %167 : vector<1x128xf32> to vector<128x128xf32>
    %174 = arith.addf %172, %173 : vector<128x128xf32>
    %cst_74 = arith.constant 0.000000e+00 : f32
    %175 = vector.broadcast %cst_74 : f32 to vector<128x128xf32>
    %176 = arith.maximumf %174, %175 : vector<128x128xf32>
    %177 = arith.truncf %176 : vector<128x128xf32> to vector<128x128xbf16>
    %cst_75 = arith.constant dense<0.000000e+00> : vector<128x1024xf32>
    %178 = tpu.matmul %177, %168, %cst_75 {dimension_numbers = #tpu.dot_dimension_numbers<[1], [0], [0], [1], [0, 0, 1, 1], [], []>} : vector<128x128xbf16>, vector<128x1024xbf16>, vector<128x1024xf32> -> vector<128x1024xf32>
    %179 = vector.broadcast %169 : vector<1x1024xf32> to vector<128x1024xf32>
    %180 = arith.addf %178, %179 : vector<128x1024xf32>
    %181 = vector.shape_cast %180 : vector<128x1024xf32> to vector<1x128x1024xf32>
    %cst_76 = arith.constant dense<0xFF800000> : vector<1x1024xf32>
    %182 = vector.multi_reduction <maximumf>, %181, %cst_76 [1] : vector<1x128x1024xf32> to vector<1x1024xf32>
    %183 = vector.shape_cast %182 : vector<1x1024xf32> to vector<1x1x1024xf32>
    %c0_77 = arith.constant 0 : index
    %c0_78 = arith.constant 0 : index
    %c0_79 = arith.constant 0 : index
    %184 = vector.load %arg12[%c0_77, %c0_78, %c0_79] : memref<1x1x1024xf32, #tpu.memory_space<vmem>>, vector<1x1x1024xf32>
    tpu.vector_store %arg12[%c0_77, %c0_78, %c0_79], %183 {strides = array<i32>} : memref<1x1x1024xf32, #tpu.memory_space<vmem>>, vector<1x1x1024xf32>,
    return
  }
  func.func @transform_0(%arg0: i32) -> (i32, i32, i32, i32) {
    %c0_i32 = arith.constant 0 : i32
    %c0_i32_0 = arith.constant 0 : i32
    %c0_i32_1 = arith.constant 0 : i32
    %c0_i32_2 = arith.constant 0 : i32
    return %arg0, %c0_i32, %c0_i32_0, %c0_i32_1 : i32, i32, i32, i32
  }
  func.func @transform_1(%arg0: i32) -> (i32, i32, i32) {
    %c0_i32 = arith.constant 0 : i32
    %c0_i32_0 = arith.constant 0 : i32
    %c0_i32_1 = arith.constant 0 : i32
    %c0_i32_2 = arith.constant 0 : i32
    return %c0_i32, %c0_i32_0, %c0_i32_1 : i32, i32, i32
  }
  func.func @transform_2(%arg0: i32) -> (i32, i32, i32) {
    %c0_i32 = arith.constant 0 : i32
    %c0_i32_0 = arith.constant 0 : i32
    %c0_i32_1 = arith.constant 0 : i32
    %c0_i32_2 = arith.constant 0 : i32
    return %c0_i32, %c0_i32_0, %c0_i32_1 : i32, i32, i32
  }
  func.func @transform_3(%arg0: i32) -> (i32, i32, i32) {
    %c0_i32 = arith.constant 0 : i32
    %c0_i32_0 = arith.constant 0 : i32
    %c0_i32_1 = arith.constant 0 : i32
    %c0_i32_2 = arith.constant 0 : i32
    return %c0_i32, %c0_i32_0, %c0_i32_1 : i32, i32, i32
  }
  func.func @transform_4(%arg0: i32) -> (i32, i32, i32) {
    %c0_i32 = arith.constant 0 : i32
    %c0_i32_0 = arith.constant 0 : i32
    %c0_i32_1 = arith.constant 0 : i32
    %c0_i32_2 = arith.constant 0 : i32
    return %c0_i32, %c0_i32_0, %c0_i32_1 : i32, i32, i32
  }
  func.func @transform_5(%arg0: i32) -> (i32, i32) {
    %c0_i32 = arith.constant 0 : i32
    %c0_i32_0 = arith.constant 0 : i32
    %c0_i32_1 = arith.constant 0 : i32
    return %c0_i32, %c0_i32_0 : i32, i32
  }
  func.func @transform_6(%arg0: i32) -> (i32, i32) {
    %c0_i32 = arith.constant 0 : i32
    %c0_i32_0 = arith.constant 0 : i32
    %c0_i32_1 = arith.constant 0 : i32
    return %c0_i32, %c0_i32_0 : i32, i32
  }
  func.func @transform_7(%arg0: i32) -> (i32, i32) {
    %c0_i32 = arith.constant 0 : i32
    %c0_i32_0 = arith.constant 0 : i32
    %c0_i32_1 = arith.constant 0 : i32
    return %c0_i32, %c0_i32_0 : i32, i32
  }
  func.func @transform_8(%arg0: i32) -> (i32, i32) {
    %c0_i32 = arith.constant 0 : i32
    %c0_i32_0 = arith.constant 0 : i32
    %c0_i32_1 = arith.constant 0 : i32
    return %c0_i32, %c0_i32_0 : i32, i32
  }
  func.func @transform_9(%arg0: i32) -> (i32, i32) {
    %c0_i32 = arith.constant 0 : i32
    %c0_i32_0 = arith.constant 0 : i32
    %c0_i32_1 = arith.constant 0 : i32
    return %c0_i32, %c0_i32_0 : i32, i32
  }
  func.func @transform_10(%arg0: i32) -> (i32, i32) {
    %c0_i32 = arith.constant 0 : i32
    %c0_i32_0 = arith.constant 0 : i32
    %c0_i32_1 = arith.constant 0 : i32
    return %c0_i32, %c0_i32_0 : i32, i32
  }
  func.func @transform_11(%arg0: i32) -> (i32, i32, i32) {
    %c0_i32 = arith.constant 0 : i32
    %c0_i32_0 = arith.constant 0 : i32
    %c0_i32_1 = arith.constant 0 : i32
    return %arg0, %c0_i32, %c0_i32_0 : i32, i32, i32
  }
}

</mosaic_0001>

<bundles_post_ra>
// kernel: tpu_custom_call.1
= control target key start
LH: loop header
LB: loop body
LE: loop exit
PB: predicated region body
PF: predicated region fallthrough
CT: control target
= control target key end

     0   :  { %s7350_s0 = inlined_call_operand.vmem [shape: f32[2,4,128,3], index: 0, kind: input, shape index: {}]   ;;  %s7351_s1 = inlined_call_operand.vmem [shape: f32[4,3,64], index: 1, kind: input, shape index: {}]   ;;  %s7352_s2 = inlined_call_operand.vmem [shape: f32[4,1,64], index: 2, kind: input, shape index: {}]   ;;  %s7353_s3 = inlined_call_operand.vmem [shape: bf16[4,64,128], index: 3, kind: input, shape index: {}]   ;;  %s7354_s4 = inlined_call_operand.vmem [shape: f32[4,1,128], index: 4, kind: input, shape index: {}]   ;;  %s7355_s5 = inlined_call_operand.vmem [shape: bf16[512,64], index: 5, kind: input, shape index: {}]   ;;  %s7356_s6 = inlined_call_operand.vmem [shape: f32[1,64], index: 6, kind: input, shape index: {}]   ;;  %s7357_s7 = inlined_call_operand.vmem [shape: bf16[64,128], index: 7, kind: input, shape index: {}]   ;;  %s7358_s8 = inlined_call_operand.vmem [shape: f32[1,128], index: 8, kind: input, shape index: {}]   ;;  %s7359_s9 = inlined_call_operand.vmem [shape: bf16[128,1024], index: 9, kind: input, shape index: {}]   ;;  %s7360_s10 = inlined_call_operand.vmem [shape: f32[1,1024], index: 10, kind: input, shape index: {}]   ;;  %s7361_s11 = inlined_call_operand.hbm [shape: f32[2,1,1024], index: 11, kind: output, shape index: {}]  }
   0x1   :  { %7391 = sst [smem:[#allocation52_spill]] %s7350_s0 }
   0x2   :  { %7392 = sst [smem:[#allocation53_spill]] %s7351_s1 }
   0x3   :  { %16 = vsyncpa [#allocation3], 0 }
   0x4   :  { %18 = vsyncpa [#allocation3 + $0x1], 0  ;;  %s5277_s17 = smov 0   ;;  %s5279_s18 = smov 0  }
   0x5   :  { %s5281_s19 = smov 0   ;;  %s5283_s20 = smov 0  }
   0x6 LB: > { %s5298_s21 = sadd.s32 4294967295, %s5210_s20   ;;  %s4435_s22 = sadd.s32 4294967294, %s5210_s20   ;;  %s5210_s20 = sphi %s5283_s20, %s7500_s20   ;;  %s5206_s19 = sphi %s5281_s19, %s7499_s19   ;;  %s5202_s18 = sphi %s5279_s18, %s7498_s18   ;;  %s5198_s17 = sphi %s5277_s17, %s7497_s17  }
   0x7   : > { %s5302_s23 = sadd.s32 1, %s5210_s20   ;;  %s267_s24 = sadd.s32 1, %s5206_s19 }
   0x8   : > { %s264_s25 = ssub.s32 %s5210_s20, %s5302_s23  ;;  %p277_p0 = scmp.ne.s32.totalorder %s5206_s19, %s5202_s18 }
   0x9   : > { %p265_p1 = scmp.eq.s32.totalorder %s264_s25, 0  ;;  %p278_p2 = scmp.eq.s32.totalorder %s5298_s21, 1 }
   0xa   : > { %p283_p3 = scmp.ne.s32.totalorder %s5202_s18, %s5198_s17  ;;  %p284_p4 = scmp.eq.s32.totalorder %s4435_s22, 1 }
   0xb   : > { %s5313_s26 = scalar_select %p265_p1, %s5206_s19, %s267_s24  }
   0xc   : > { %p5315_p5 = por %p278_p2, %p277_p0  ;;  %p5319_p6 = por %p284_p4, %p283_p3 }
   0xd   : > { %p4438_p7 = scmp.ge.s32.totalorder %s5210_s20, 1  ;;  %p340_p8 = scmp.lt.s32.totalorder %s5210_s20, 3 }
   0xf   : > { %p341_p9 = pnand %p4438_p7, %p340_p8 }
  0x11   : > { %344 = sbr.rel (%p341_p9) target bundleno = 1633 (0x661), region = 64 }
  0x16   : > { %p380_p10 = scmp.lt.s32.totalorder %s5298_s21, 1  ;;  %v7362_v0 = vmov 2   ;;  %v7364_v1 = vmov 1   ;;  %s7395_s0 = sld [smem:[#allocation52_spill]]  ;;  %v7366_v7 = vmov 0   ;;  %vm837_vm0 = vcmask 523264  }
  0x17   : > { %5011 = vset.pattern.permute.xlu0 %v7362_v0  ;;  %5007 = vset.pattern.permute.xlu1 %v7364_v1  ;;  %s7411_s1 = sld [smem:[#allocation53_spill]]  ;;  %s4647_s13 = sshll.u32 %s5298_s21, 7 }
  0x18   : > { %s381_s29 = scalar_select %p380_p10, %s5298_s21, 1 }
  0x19   : > { %s5216_s21 = smov [#allocation2]  }
  0x1a   : > { %s4646_s30 = sshll.u32 %s381_s29, 9 }
  0x1c   : > { %s5332_s14 = scalar_lea.vmem %s7395_s0, %s4646_s30  ;;  %s377_s30 = sand.u32 1, %s5202_s18  }
  0x1d   : > { %v5335_v2 = vld [vmem:[%s5332_s14 + $0x48] sm:$0xff]  ;;  %v5338_v3 = vld [vmem:[%s5332_s14 + $0x40] sm:$0xff]  ;;  %v401_v5 = vld [vmem:[%s5332_s14 + $0x78] sm:$0xff]  ;;  %s4439_s12 = sshll.u32 %s377_s30, 3  ;;  %s4362_s25 = scalar_lea.sflag [#allocation3], %s377_s30 }
  0x1e   : > { %688 = vperm.xlu0 %5011, %v5335_v2   ;;  %584 = vperm.xlu1 %5007, %v5338_v3   ;;  %v5343_v4 = vld [vmem:[%s5332_s14 + $0x60] sm:$0xff]  ;;  %v397_v6 = vld [vmem:[%s5332_s14 + $0x58] sm:$0xff]  ;;  %v5351_v8 = vld [vmem:[%s5332_s14 + $0x88] sm:$0xff]  ;;  %s379_s15 = scalar_lea.vmem [#allocation2], %s4439_s12  ;;  %s5154_s12 = sshll.u32 %s5216_s21, 4  ;;  %s5155_s12 = int_to_ptr.vmem [resolvable:$false] %s5154_s12 }
  0x1f   : > { %v5355_v9 = vld [vmem:[%s5332_s14 + $0xa0] sm:$0xff]  ;;  %v5359_v10 = vld [vmem:[%s5332_s14 + $0xb8] sm:$0xff]  ;;  %v5366_v11 = vld [vmem:[%s5332_s14 + $0x50] sm:$0xff]  ;;  %s4376_s16 = sshll.u32 %s379_s15, 4  ;;  %s5156_s0 = scalar_lea.vmem %s5155_s12, 256  ;;  %s4377_s16 = int_to_ptr.vmem [resolvable:$true] %s4376_s16 }
  0x20   : > { %v5369_v12 = vld [vmem:[%s5332_s14 + $0xc8] sm:$0xff]  ;;  %v5374_v13 = vld [vmem:[%s5332_s14 + $0xd0] sm:$0xff]  ;;  %v5387_v16 = vld [vmem:[%s5332_s14 + $0xe0] sm:$0xff]  ;;  %s5150_s29 = scalar_lea.vmem %s4377_s16, 128  ;;  %p5157_p0 = scmp.lt.s32.totalorder %s4377_s16, %s5155_s12 }
  0x21   : > { %v5377_v14 = vld [vmem:[%s5332_s14 + $0x68] sm:$0xff]  ;;  %v5381_v15 = vld [vmem:[%s5332_s14 + $0x10] sm:$0xff]  ;;  %v5400_v19 = vld [vmem:[%s5332_s14 + $0xf8] sm:$0xff]  ;;  %p5151_p11 = scmp.ne.s32.totalorder %s4377_s16, %s5150_s29  ;;  %p5158_p1 = scmp.lt.s32.totalorder %s5156_s0, %s5150_s29 }
  0x22   : > { %700 = vperm.xlu0 %5011, %v5343_v4   ;;  %588 = vperm.xlu1 %5007, %v5335_v2   ;;  %v5392_v17 = vld [vmem:[%s5332_s14 + $0x28] sm:$0xff]  ;;  %v5396_v18 = vld [vmem:[%s5332_s14 + $0x70] sm:$0xff]  ;;  %v5406_v20 = vld [vmem:[%s5332_s14 + $0x38] sm:$0xff] }
  0x23   : > { %v5410_v21 = vld [vmem:[%s5332_s14 + $0x188] sm:$0xff]  ;;  %v5415_v22 = vld [vmem:[%s5332_s14 + $0x190] sm:$0xff]  ;;  %v5426_v24 = vld [vmem:[%s5332_s14 + $0x1a0] sm:$0xff]  ;;  %p5152_p12 = pnand %p5151_p11, %p5315_p5  ;;  %p5159_p2 = por %p5158_p1, %p5157_p0 }
  0x24   : > { %v5421_v23 = vld [vmem:[%s5332_s14 + $0x110] sm:$0xff]  ;;  %v402_v25 = vld [vmem:[%s5332_s14 + $0x80] sm:$0xff]  ;;  %v423_v26 = vld [vmem:[%s5332_s14 + $0x128] sm:$0xff] }
  0x25   : > { %v5434_v27 = vld [vmem:[%s5332_s14 + $0x1b8] sm:$0xff]  ;;  %v5448_v30 = vld [vmem:[%s5332_s14 + $0x90] sm:$0xff]  ;;  %v5454_v31 = vld [vmem:[%s5332_s14 + $0xa8] sm:$0xff]  ;;  %p5153_p13 = pneg %p5152_p12 }
  0x26   : > { %712 = vperm.xlu0 %5011, %v401_v5   ;;  %5008 = vset.pattern.permute.xlu1 %v7366_v7  ;;  %v425_v28 = vld [vmem:[%s5332_s14 + $0x138] sm:$0xff]  ;;  %v5464_v32 = vld [vmem:[%s5332_s14 + $0xb0] sm:$0xff]  ;;  %v5467_v33 = vld [vmem:[%s5332_s14] sm:$0xff] }
  0x27   : > { %508 = vperm.xlu1 %5008, %v397_v6   ;;  %v405_v29 = vld [vmem:[%s5332_s14 + $0x98] sm:$0xff]  ;;  %v5488_v37 = vld [vmem:[%s5332_s14 + $0xf0] sm:$0xff]  ;;  %v5501_v42 = vld [vmem:[%s5332_s14 + $0xc0] sm:$0xff]  ;;  %p5160_p3 = pnand %p5159_p2, %p5153_p13 }
  0x28   : > { %v5473_v34 = vld [vmem:[%s5332_s14 + $0xd8] sm:$0xff]  ;;  %v5506_v43 = vld [vmem:[%s5332_s14 + $0x100] sm:$0xff]  ;;  %v5531_v51 = vld [vmem:[%s5332_s14 + $0x8] sm:$0xff] }
  0x29   : > { %7396 = vst [vmem:[#allocation5_spill] sm:$0xff] %v5506_v43  ;;  %v5515_v46 = vld [vmem:[%s5332_s14 + $0x198] sm:$0xff]  ;;  %v5541_v54 = vld [vmem:[%s5332_s14 + $0x1b0] sm:$0xff]  ;;  %v5549_v56 = vld [vmem:[%s5332_s14 + $0x1c8] sm:$0xff] }
  0x2a   : > { %1190 = vperm.xlu0 %5011, %v5351_v8   ;;  %7397 = vst [vmem:[#allocation6_spill] sm:$0xff] %v5541_v54  ;;  %v5558_v59 = vld [vmem:[%s5332_s14 + $0x140] sm:$0xff]  ;;  %v445_v62 = vld [vmem:[%s5332_s14 + $0x1d8] sm:$0xff] }
  0x2b   : > { %5009 = vset.pattern.permute.xlu1 %v7364_v1 }
  0x2c   : > { %596 = vperm.xlu1 %5009, %v397_v6  }
  0x2e   : > { %1202 = vperm.xlu0 %5011, %v5355_v9  }
  0x30   : > { %5010 = vset.pattern.permute.xlu1 %v7362_v0 }
  0x31   : > { %684 = vperm.xlu1 %5010, %v5338_v3  }
  0x32   : > { %1214 = vperm.xlu0 %5011, %v5359_v10  }
  0x35   : > { %692 = vperm.xlu1 %5010, %v5366_v11  }
  0x36   : > { %1222 = vperm.xlu0 %5011, %v5369_v12  }
  0x39   : > { %696 = vperm.xlu1 %5010, %v397_v6   ;;  %v389_v6 = vld [vmem:[%s5332_s14 + $0x18] sm:$0xff] }
  0x3a   : > { %1226 = vperm.xlu0 %5011, %v5374_v13  }
  0x3d   : > { %5012 = vset.pattern.permute.xlu1 %v7366_v7 }
  0x3e   : > { %518 = vperm.xlu1 %5012, %v5377_v14   ;;  %660 = vperm.xlu0 %5011, %v5381_v15  }
  0x42   : > { %5013 = vset.pattern.permute.xlu1 %v7364_v1  ;;  %1234 = vperm.xlu0 %5011, %v5387_v16  }
  0x43   : > { %600 = vperm.xlu1 %5013, %v5343_v4  }
  0x46   : > { %672 = vperm.xlu0 %5011, %v5392_v17  }
  0x47   : > { %5014 = vset.pattern.permute.xlu1 %v7366_v7 }
  0x48   : > { %523 = vperm.xlu1 %5014, %v5396_v18  }
  0x4a   : > { %1246 = vperm.xlu0 %5011, %v5400_v19  }
  0x4c   : > { %528 = vperm.xlu1 %5014, %v401_v5  }
  0x4e   : > { %680 = vperm.xlu0 %5011, %v5406_v20  }
  0x50   : > { %5015 = vset.pattern.permute.xlu1 %v7364_v1 }
  0x51   : > { %612 = vperm.xlu1 %5015, %v401_v5  }
  0x52   : > { %2262 = vperm.xlu0 %5011, %v5410_v21  }
  0x55   : > { %5016 = vset.pattern.permute.xlu1 %v7362_v0 }
  0x56   : > { %704 = vperm.xlu1 %5016, %v5377_v14   ;;  %2266 = vperm.xlu0 %5011, %v5415_v22  }
  0x5a   : > { %708 = vperm.xlu1 %5016, %v5396_v18   ;;  %1730 = vperm.xlu0 %5011, %v5421_v23  }
  0x5e   : > { %5017 = vset.pattern.permute.xlu1 %v7366_v7  ;;  %2274 = vperm.xlu0 %5011, %v5426_v24  }
  0x5f   : > { %987 = vperm.xlu1 %5017, %v402_v25  }
  0x62   : > { %1742 = vperm.xlu0 %5011, %v423_v26  }
  0x63   : > { %5018 = vset.pattern.permute.xlu1 %v7364_v1 }
  0x64   : > { %1086 = vperm.xlu1 %5018, %v402_v25  }
  0x66   : > { %2286 = vperm.xlu0 %5011, %v5434_v27  }
  0x68   : > { %1090 = vperm.xlu1 %5018, %v5351_v8  }
  0x6a   : > { %1750 = vperm.xlu0 %5011, %v425_v28  }
  0x6c   : > { %5019 = vset.pattern.permute.xlu1 %v7366_v7 }
  0x6d   : > { %1002 = vperm.xlu1 %5019, %v405_v29  }
  0x6e   : > { %5063 = vset.pattern.permute.xlu0 %v7366_v7 }
  0x6f   : > { %493 = vperm.xlu0 %5063, %v5338_v3   ;;  %v5574_v3 = vld [vmem:[%s5332_s14 + $0x150] sm:$0xff] }
  0x71   : > { %5020 = vset.pattern.permute.xlu1 %v7364_v1 }
  0x72   : > { %1098 = vperm.xlu1 %5020, %v405_v29  }
  0x73   : > { %498 = vperm.xlu0 %5063, %v5335_v2  }
  0x76   : > { %5021 = vset.pattern.permute.xlu1 %v7362_v0 }
  0x77   : > { %1186 = vperm.xlu1 %5021, %v402_v25   ;;  %503 = vperm.xlu0 %5063, %v5366_v11   ;;  %v5085_v25 = vld [vmem:[%s7353_s3 + $0x10] sm:$0xff]  }
  0x7b   : > { %1194 = vperm.xlu1 %5021, %v5448_v30   ;;  %513 = vperm.xlu0 %5063, %v5343_v4  }
  0x7f   : > { %1198 = vperm.xlu1 %5021, %v405_v29   ;;  %992 = vperm.xlu0 %5063, %v5351_v8   ;;  %v5584_v8 = vld [vmem:[%s5332_s14 + $0x1e0] sm:$0xff]  ;;  %v5086_v29 = vld [vmem:[%s7353_s3 + $0x8] sm:$0xff]  }
  0x83   : > { %5022 = vset.pattern.permute.xlu1 %v7366_v7  ;;  %997 = vperm.xlu0 %5063, %v5448_v30  }
  0x84   : > { %1012 = vperm.xlu1 %5022, %v5454_v31  }
  0x87   : > { %1007 = vperm.xlu0 %5063, %v5355_v9  }
  0x88   : > { %5023 = vset.pattern.permute.xlu1 %v7364_v1 }
  0x89   : > { %1102 = vperm.xlu1 %5023, %v5355_v9  }
  0x8b   : > { %1032 = vperm.xlu0 %5063, %v5369_v12  }
  0x8d   : > { %5024 = vset.pattern.permute.xlu1 %v7366_v7 }
  0x8e   : > { %1017 = vperm.xlu1 %5024, %v5464_v32  }
  0x8f   : > { %453 = vperm.xlu0 %5063, %v5467_v33  }
  0x92   : > { %1022 = vperm.xlu1 %5024, %v5359_v10  }
  0x93   : > { %1042 = vperm.xlu0 %5063, %v5473_v34  }
  0x96   : > { %5025 = vset.pattern.permute.xlu1 %v7364_v1 }
  0x97   : > { %1114 = vperm.xlu1 %5025, %v5359_v10   ;;  %463 = vperm.xlu0 %5063, %v5381_v15   ;;  %v5084_v10 = vld [vmem:[%s7353_s3 + $0x18] sm:$0xff]  }
  0x98   : > { %4956 = vmatprep.subr.bf16.mxu1 %v5084_v10  ;;  %4836 = vmatprep.subr.bf16.mxu0 %v5084_v10 }
  0x99   : > { %v5480_v35 = vpop.permute.xlu1 %584  ;;  %v5482_v36 = vpop.permute.xlu0 %688  ;;  %4960 = vmatpush3.bf16.msra.mxu1 %v5084_v10  ;;  %4837 = vmatpush3.bf16.msra.mxu0 %v5084_v10 }
  0x9a   : > { %4957 = vmatprep.subr.bf16.mxu1 %v5085_v25  ;;  %4838 = vmatprep.subr.bf16.mxu0 %v5085_v25 }
  0x9b   : > { %5026 = vset.pattern.permute.xlu1 %v7362_v0  ;;  %1047 = vperm.xlu0 %5063, %v5387_v16  }
  0x9c   : > { %1206 = vperm.xlu1 %5026, %v5454_v31  }
  0x9d   : > { %v5490_v38 = vpop.permute.xlu1 %588  ;;  %v5492_v39 = vpop.permute.xlu0 %700  ;;  %4961 = vmatpush3.bf16.msra.mxu1 %v5085_v25  ;;  %4839 = vmatpush3.bf16.msra.mxu0 %v5085_v25 }
  0x9e   : > { %4958 = vmatprep.subr.bf16.mxu1 %v5086_v29  ;;  %4840 = vmatprep.subr.bf16.mxu0 %v5086_v29 }
  0x9f   : > { %1057 = vperm.xlu0 %5063, %v5488_v37  }
  0xa0   : > { %1210 = vperm.xlu1 %5026, %v5464_v32  }
  0xa1   : > { %v5496_v40 = vpop.permute.xlu0 %712  ;;  %4962 = vmatpush3.bf16.msra.mxu1 %v5086_v29  ;;  %4841 = vmatpush3.bf16.msra.mxu0 %v5086_v29 }
  0xa2   : > { %v5498_v41 = vpop.permute.xlu1 %508 }
  0xa3   : > { %2064 = vperm.xlu0 %5063, %v5410_v21  }
  0xa4   : > { %5027 = vset.pattern.permute.xlu1 %v7366_v7 }
  0xa5   : > { %1027 = vperm.xlu1 %5027, %v5501_v42   ;;  %v5509_v44 = vpop.permute.xlu0 %1190 }
  0xa7   : > { %v5511_v45 = vpop.permute.xlu1 %596  ;;  %1523 = vperm.xlu0 %5063, %v5506_v43  }
  0xa9   : > { %5028 = vset.pattern.permute.xlu1 %v7364_v1  ;;  %v5518_v47 = vpop.permute.xlu0 %1202 }
  0xaa   : > { %1118 = vperm.xlu1 %5028, %v5501_v42  }
  0xab   : > { %2074 = vperm.xlu0 %5063, %v5515_v46  }
  0xac   : > { %v5522_v48 = vpop.permute.xlu1 %684 }
  0xad   : > { %v5524_v49 = vpop.permute.xlu0 %1214 }
  0xae   : > { %1122 = vperm.xlu1 %5028, %v5369_v12  }
  0xaf   : > { %1533 = vperm.xlu0 %5063, %v5421_v23  }
  0xb0   : > { %v5528_v50 = vpop.permute.xlu1 %692 }
  0xb1   : > { %v5533_v52 = vpop.permute.xlu0 %1222 }
  0xb2   : > { %5029 = vset.pattern.permute.xlu1 %v7366_v7 }
  0xb3   : > { %458 = vperm.xlu1 %5029, %v5531_v51   ;;  %2079 = vperm.xlu0 %5063, %v5426_v24  }
  0xb4   : > { %v5538_v53 = vpop.permute.xlu1 %696 }
  0xb5   : > { %v5543_v55 = vpop.permute.xlu0 %1226 }
  0xb7   : > { %5030 = vset.pattern.permute.xlu1 %v7364_v1  ;;  %2089 = vperm.xlu0 %5063, %v5541_v54  }
  0xb8   : > { %556 = vperm.xlu1 %5030, %v5531_v51  }
  0xb9   : > { %v5551_v57 = vpop.permute.xlu1 %518  ;;  %v5553_v58 = vpop.permute.xlu0 %660 }
  0xbb   : > { %2104 = vperm.xlu0 %5063, %v5549_v56  }
  0xbc   : > { %5031 = vset.pattern.permute.xlu1 %v7366_v7 }
  0xbd   : > { %1037 = vperm.xlu1 %5031, %v5374_v13   ;;  %v5561_v60 = vpop.permute.xlu0 %1234 }
  0xbe   : > { %7398 = vst [vmem:[#allocation7_spill] sm:$0xff] %v5561_v60  ;;  %v5563_v61 = vpop.permute.xlu1 %600 }
  0xbf   : > { %1563 = vperm.xlu0 %5063, %v5558_v59  }
  0xc1   : > { %5032 = vset.pattern.permute.xlu1 %v7364_v1  ;;  %v5568_v63 = vpop.permute.xlu0 %672 }
  0xc2   : > { %7399 = vst [vmem:[#allocation8_spill] sm:$0xff] %v5568_v63  ;;  %1126 = vperm.xlu1 %5032, %v5374_v13   ;;  %v448_v13 = vld [vmem:[%s5332_s14 + $0x1f0] sm:$0xff] }
  0xc3   : > { %v5571_v2 = vpop.permute.xlu1 %523  ;;  %2114 = vperm.xlu0 %5063, %v445_v62  }
  0xc5   : > { %v5576_v4 = vpop.permute.xlu0 %1246 }
  0xc6   : > { %7400 = vst [vmem:[#allocation9_spill] sm:$0xff] %v5576_v4  ;;  %1130 = vperm.xlu1 %5032, %v5473_v34   ;;  %v7416_v4 = vmov 1  }
  0xc7   : > { %v5579_v5 = vpop.permute.xlu1 %528  ;;  %1573 = vperm.xlu0 %5063, %v5574_v3  }
  0xc9   : > { %v5586_v9 = vpop.permute.xlu0 %680 }
  0xca   : > { %7401 = vst [vmem:[#allocation10_spill] sm:$0xff] %v5586_v9  ;;  %5033 = vset.pattern.permute.xlu1 %v7366_v7 }
  0xcb   : > { %468 = vperm.xlu1 %5033, %v389_v6   ;;  %2119 = vperm.xlu0 %5063, %v5584_v8  }
  0xcc   : > { %v5593_v12 = vpop.permute.xlu1 %612 }
  0xcd   : > { %v5596_v24 = vpop.permute.xlu0 %2262 }
  0xce   : > { %7402 = vst [vmem:[#allocation11_spill] sm:$0xff] %v5596_v24 }
  0xcf   : > { %5034 = vset.pattern.permute.xlu1 %v7364_v1  ;;  %2129 = vperm.xlu0 %5063, %v448_v13   ;;  %v5087_v13 = vld [vmem:[%s7353_s3] sm:$0xff]  }
  0xd0   : > { %564 = vperm.xlu1 %5034, %v389_v6   ;;  %4959 = vmatprep.subr.bf16.mxu1 %v5087_v13 }
  0xd1   : > { %v5602_v26 = vpop.permute.xlu1 %704  ;;  %v5604_v28 = vpop.permute.xlu0 %2266  ;;  %4842 = vmatprep.subr.bf16.mxu0 %v5087_v13  ;;  %4963 = vmatpush3.bf16.msra.mxu1 %v5087_v13 }
  0xd2   : > { %7403 = vst [vmem:[#allocation12_spill] sm:$0xff] %v5604_v28  ;;  %4843 = vmatpush3.bf16.msra.mxu0 %v5087_v13 }
  0xd3   : > { %5077 = vset.pattern.permute.xlu0 %v7364_v1 }
  0xd4   : > { %5035 = vset.pattern.permute.xlu1 %v7362_v0  ;;  %592 = vperm.xlu0 %5077, %v5366_v11   ;;  %v531_v0 = vlaneseq }
  0xd5   : > { %v5612_v62 = vpop.permute.xlu1 %708  ;;  %1218 = vperm.xlu1 %5035, %v5501_v42   ;;  %v5615_v10 = vpop.permute.xlu0 %1730  ;;  %v5629_v42 = vld [vmem:[%s7353_s3 + $0x38] sm:$0xff]  }
  0xd6   : > { %7404 = vst [vmem:[#allocation13_spill] sm:$0xff] %v5615_v10  ;;  %7406 = vst [vmem:[#allocation15_spill] sm:$0xff] %v5629_v42  ;;  %4860 = vmatprep.subr.bf16.mxu1 %v5629_v42  ;;  %v5636_v29 = vshrl.u32 %v531_v0, 7 }
  0xd8   : > { %604 = vperm.xlu0 %5077, %v5377_v14   ;;  %7408 = vst [vmem:[#allocation17_spill] sm:$0xff] %v5636_v29  ;;  %v5645_v13 = vsub.s32 1, %v5636_v29  ;;  %v5654_v0 = vsub.s32 2, %v5636_v29 }
  0xd9   : > { %652 = vperm.xlu1 %5035, %v5467_v33   ;;  %v5622_v11 = vpop.permute.xlu0 %2274 }
  0xda   : > { %7405 = vst [vmem:[#allocation14_spill] sm:$0xff] %v5622_v11  ;;  %v5624_v25 = vpop.permute.xlu1 %987  ;;  %7410 = vst [vmem:[#allocation19_spill] sm:$0xff] %v5645_v13 }
  0xdb   : > { %7412 = vst [vmem:[#allocation20_spill] sm:$0xff] %v5654_v0 }
  0xdc   : > { %608 = vperm.xlu0 %5077, %v5396_v18  }
  0xdd   : > { %656 = vperm.xlu1 %5035, %v5531_v51   ;;  %v5634_v14 = vpop.permute.xlu0 %1742  ;;  %v450_v51 = vld [vmem:[%s7411_s1] sm:$0x7] }
  0xde   : > { %7407 = vst [vmem:[#allocation16_spill] sm:$0xff] %v5634_v14  ;;  %v5665_v14 = vld [vmem:[%s5332_s14 + $0xe8] sm:$0xff] }
  0xdf   : > { %v5638_v1 = vpop.permute.xlu1 %1086 }
  0xe0   : > { %1094 = vperm.xlu0 %5077, %v5448_v30   ;;  %v5657_v30 = vsub.s32 0, %v5636_v29  ;;  %v7415_v29 = vmov 0  }
  0xe1   : > { %1230 = vperm.xlu1 %5035, %v5473_v34   ;;  %v5642_v7 = vpop.permute.xlu0 %2286 }
  0xe2   : > { %7409 = vst [vmem:[#allocation18_spill] sm:$0xff] %v5642_v7  ;;  %7413 = vst [vmem:[#allocation21_spill] sm:$0xff] %v5657_v30  ;;  %v5662_v7 = vrot.slane %v450_v51, %v5645_v13  ;;  %v5674_v10 = vrot.slane %v450_v51, %v5657_v30 }
  0xe3   : > { %v5647_v18 = vpop.permute.xlu1 %1090 }
  0xe4   : > { %1106 = vperm.xlu0 %5077, %v5454_v31   ;;  %v5671_v31 = vrot.slane %v450_v51, %v5654_v0  ;;  %v628_v60 = vmul.f32 %v5662_v7, %v5490_v38 }
  0xe5   : > { %664 = vperm.xlu1 %5035, %v389_v6   ;;  %v5659_v34 = vpop.permute.xlu0 %1750 }
  0xe6   : > { %7414 = vst [vmem:[#allocation22_spill] sm:$0xff] %v5659_v34  ;;  %v627_v34 = vmul.f32 %v5662_v7, %v5480_v35  ;;  %v728_v63 = vmul.f32 %v5671_v31, %v5482_v36 }
  0xe8   : > { %v5667_v11 = vpop.permute.xlu1 %1002  ;;  %1110 = vperm.xlu0 %5077, %v5464_v32   ;;  %v727_v32 = vmul.f32 %v5671_v31, %v5522_v48  ;;  %v390_v48 = vld [vmem:[%s5332_s14 + $0x20] sm:$0xff] }
  0xe9   : > { %5036 = vset.pattern.permute.xlu1 %v7415_v29 }
  0xea   : > { %v494_v6 = vpop.permute.xlu0 %493  ;;  %1052 = vperm.xlu1 %5036, %v5665_v14  }
  0xeb   : > { %v543_v28 = vmul.f32 %v5674_v10, %v494_v6 }
  0xec   : > { %552 = vperm.xlu0 %5077, %v5467_v33  }
  0xed   : > { %v643_v24 = vadd.f32 %v627_v34, %v543_v28  ;;  %v5684_v9 = vpop.permute.xlu1 %1098  ;;  %v5698_v28 = vld [vmem:[%s7352_s2] ss:$0 sm:$0xff] }
  0xee   : > { %v499_v51 = vpop.permute.xlu0 %498  ;;  %5037 = vset.pattern.permute.xlu1 %v7416_v4 }
  0xef   : > { %v743_v35 = vadd.f32 %v727_v32, %v643_v24  ;;  %v544_v6 = vmul.f32 %v5674_v10, %v499_v51  ;;  %1134 = vperm.xlu1 %5037, %v5387_v16  }
  0xf0   : > { %560 = vperm.xlu0 %5077, %v5381_v15  }
  0xf1   : > { %v644_v33 = vadd.f32 %v628_v60, %v544_v6  ;;  %v766_v38 = vadd.f32 %v5698_v28, %v743_v35 }
  0xf2   : > { %v5700_v34 = vpop.permute.xlu1 %1186  ;;  %v5702_v36 = vpop.permute.xlu0 %503 }
  0xf3   : > { %v744_v54 = vadd.f32 %v728_v63, %v644_v33  ;;  %5038 = vset.pattern.permute.xlu1 %v7415_v29  ;;  %v782_v24 = vmax.f32 %v766_v38, 0.0 }
  0xf4   : > { %1138 = vperm.xlu0 %5077, %v5665_v14   ;;  %473 = vperm.xlu1 %5038, %v390_v48  }
  0xf5   : > { %v767_v15 = vadd.f32 %v5698_v28, %v744_v54  ;;  %v392_v54 = vld [vmem:[%s5332_s14 + $0x30] sm:$0xff] }
  0xf6   : > { %v5708_v16 = vpop.permute.xlu1 %1194  ;;  %v5710_v60 = vpop.permute.xlu0 %513 }
  0xf7   : > { %v783_v32 = vmax.f32 %v767_v15, 0.0 }
  0xf8   : > { %568 = vperm.xlu0 %5077, %v390_v48   ;;  %478 = vperm.xlu1 %5038, %v5392_v17  }
  0xf9   : > { %v794_v63 = vpack.c.bf16 %v783_v32, %v782_v24  ;;  %v5741_v32 = vld [vmem:[%s5332_s14 + $0x1a8] sm:$0xff] }
  0xfa   : > { %v5713_v51 = vpop.permute.xlu1 %1198  ;;  %v5715_v35 = vpop.permute.xlu0 %992  ;;  %7418 = vst [vmem:[#allocation24_spill] sm:$0xff] %v5741_v32 }
  0xfb   : > { %4852 = vmatprep.mubr.msk.bf16.mxu1 %vm837_vm0, %v794_v63 }
  0xfc   : > { %1146 = vperm.xlu0 %5077, %v5400_v19   ;;  %5039 = vset.pattern.permute.xlu1 %v7416_v4 }
  0xfd   : > { %572 = vperm.xlu1 %5039, %v5392_v17  }
  0xfe   : > { %v5722_v6 = vpop.permute.xlu0 %997 }
  0xff   : > { %v5724_v33 = vpop.permute.xlu1 %1012 }
 0x100   : > { %576 = vperm.xlu0 %5077, %v392_v54  }
 0x101   : > { %5040 = vset.pattern.permute.xlu1 %v7415_v29 }
 0x102   : > { %1062 = vperm.xlu1 %5040, %v5400_v19   ;;  %v5728_v38 = vpop.permute.xlu0 %1007 }
 0x104   : > { %v5730_v15 = vpop.permute.xlu1 %1102  ;;  %1622 = vperm.xlu0 %5077, %v5506_v43   ;;  %v5750_v43 = vld [vmem:[%s5332_s14 + $0x120] sm:$0xff] }
 0x105   : > { %7421 = vst [vmem:[#allocation27_spill] sm:$0xff] %v5750_v43 }
 0x106   : > { %5041 = vset.pattern.permute.xlu1 %v7416_v4  ;;  %v5734_v17 = vpop.permute.xlu0 %1032 }
 0x107   : > { %1142 = vperm.xlu1 %5041, %v5488_v37  }
 0x108   : > { %1630 = vperm.xlu0 %5077, %v5421_v23  }
 0x109   : > { %v5738_v24 = vpop.permute.xlu1 %1017 }
 0x10a   : > { %7417 = vst [vmem:[#allocation23_spill] sm:$0xff] %v5738_v24  ;;  %v5743_v19 = vpop.permute.xlu0 %453 }
 0x10b   : > { %7419 = vst [vmem:[#allocation25_spill] sm:$0xff] %v5743_v19  ;;  %5042 = vset.pattern.permute.xlu1 %v7415_v29 }
 0x10c   : > { %483 = vperm.xlu1 %5042, %v392_v54   ;;  %2178 = vperm.xlu0 %5077, %v5741_v32   ;;  %v5764_v32 = vld [vmem:[%s5332_s14 + $0x130] sm:$0xff] }
 0x10d   : > { %v5747_v63 = vpop.permute.xlu1 %1022  ;;  %7424 = vst [vmem:[#allocation30_spill] sm:$0xff] %v5764_v32 }
 0x10e   : > { %7420 = vst [vmem:[#allocation26_spill] sm:$0xff] %v5747_v63  ;;  %v5752_v42 = vpop.permute.xlu0 %1042 }
 0x10f   : > { %7422 = vst [vmem:[#allocation28_spill] sm:$0xff] %v5752_v42 }
 0x110   : > { %488 = vperm.xlu1 %5042, %v5406_v20   ;;  %1638 = vperm.xlu0 %5077, %v5750_v43   ;;  %v7426_v43 = vmov 2  }
 0x112   : > { %v5756_v23 = vpop.permute.xlu1 %1114  ;;  %v5758_v24 = vpop.permute.xlu0 %463 }
 0x113   : > { %7423 = vst [vmem:[#allocation29_spill] sm:$0xff] %v5758_v24 }
 0x114   : > { %5043 = vset.pattern.permute.xlu1 %v7416_v4  ;;  %2186 = vperm.xlu0 %5077, %v5434_v27  }
 0x115   : > { %580 = vperm.xlu1 %5043, %v5406_v20  }
 0x116   : > { %v5766_v19 = vpop.permute.xlu0 %1047 }
 0x117   : > { %7425 = vst [vmem:[#allocation31_spill] sm:$0xff] %v5766_v19  ;;  %v5768_v42 = vpop.permute.xlu1 %1206  ;;  %v430_v19 = vld [vmem:[%s5332_s14 + $0x160] sm:$0xff] }
 0x118   : > { %1646 = vperm.xlu0 %5077, %v5764_v32   ;;  %v447_v32 = vld [vmem:[%s5332_s14 + $0x1e8] sm:$0xff] }
 0x119   : > { %5044 = vset.pattern.permute.xlu1 %v7426_v43 }
 0x11a   : > { %1238 = vperm.xlu1 %5044, %v5665_v14   ;;  %v5773_v24 = vpop.permute.xlu0 %1057 }
 0x11b   : > { %7427 = vst [vmem:[#allocation32_spill] sm:$0xff] %v5773_v24  ;;  %v5775_v63 = vpop.permute.xlu1 %1210 }
 0x11c   : > { %7428 = vst [vmem:[#allocation33_spill] sm:$0xff] %v5775_v63  ;;  %1654 = vperm.xlu0 %5077, %v5558_v59   ;;  %v5798_v63 = vld [vmem:[%s5332_s14 + $0x1f8] sm:$0xff] }
 0x11d   : > { %7432 = vst [vmem:[#allocation37_spill] sm:$0xff] %v5798_v63 }
 0x11e   : > { %668 = vperm.xlu1 %5044, %v390_v48   ;;  %v5778_v20 = vpop.permute.xlu0 %2064  ;;  %v5793_v48 = vld [vmem:[%s5332_s14 + $0x180] sm:$0xff] }
 0x11f   : > { %7429 = vst [vmem:[#allocation34_spill] sm:$0xff] %v5778_v20 }
 0x120   : > { %v5780_v27 = vpop.permute.xlu1 %1027  ;;  %1662 = vperm.xlu0 %5077, %v5574_v3  }
 0x122   : > { %1242 = vperm.xlu1 %5044, %v5488_v37   ;;  %v5785_v14 = vpop.permute.xlu0 %1523 }
 0x123   : > { %7430 = vst [vmem:[#allocation35_spill] sm:$0xff] %v5785_v14 }
 0x124   : > { %2210 = vperm.xlu0 %5077, %v447_v32  }
 0x125   : > { %v5787_v24 = vpop.permute.xlu1 %1118 }
 0x126   : > { %676 = vperm.xlu1 %5044, %v392_v54   ;;  %v5790_v59 = vpop.permute.xlu0 %2074  ;;  %v432_v54 = vld [vmem:[%s5332_s14 + $0x170] sm:$0xff] }
 0x127   : > { %7431 = vst [vmem:[#allocation36_spill] sm:$0xff] %v5790_v59 }
 0x128   : > { %1670 = vperm.xlu0 %5077, %v430_v19  }
 0x129   : > { %v5795_v20 = vpop.permute.xlu1 %1122 }
 0x12a   : > { %5045 = vset.pattern.permute.xlu1 %v7415_v29  ;;  %v5801_v37 = vpop.permute.xlu0 %1533 }
 0x12b   : > { %7433 = vst [vmem:[#allocation38_spill] sm:$0xff] %v5801_v37  ;;  %2059 = vperm.xlu1 %5045, %v5793_v48  }
 0x12c   : > { %2218 = vperm.xlu0 %5077, %v5798_v63   ;;  %v5822_v63 = vld [vmem:[%s5332_s14 + $0x108] sm:$0xff] }
 0x12e   : > { %v5806_v32 = vpop.permute.xlu1 %458  ;;  %v5808_v59 = vpop.permute.xlu0 %2079 }
 0x12f   : > { %7434 = vst [vmem:[#allocation39_spill] sm:$0xff] %v5806_v32  ;;  %7435 = vst [vmem:[#allocation40_spill] sm:$0xff] %v5808_v59  ;;  %5046 = vset.pattern.permute.xlu1 %v7416_v4  ;;  %v5825_v59 = vld [vmem:[%s5332_s14 + $0x1d0] sm:$0xff] }
 0x130   : > { %2158 = vperm.xlu1 %5046, %v5793_v48   ;;  %1678 = vperm.xlu0 %5077, %v432_v54   ;;  %7438 = vst [vmem:[#allocation43_spill] sm:$0xff] %v5825_v59 }
 0x132   : > { %v5812_v19 = vpop.permute.xlu0 %2089 }
 0x133   : > { %7436 = vst [vmem:[#allocation41_spill] sm:$0xff] %v5812_v19  ;;  %v5814_v14 = vpop.permute.xlu1 %556 }
 0x134   : > { %2162 = vperm.xlu1 %5046, %v5410_v21   ;;  %5081 = vset.pattern.permute.xlu0 %v7426_v43 }
 0x135   : > { %2294 = vperm.xlu0 %5081, %v5549_v56  }
 0x136   : > { %v5819_v37 = vpop.permute.xlu0 %2104 }
 0x137   : > { %7437 = vst [vmem:[#allocation42_spill] sm:$0xff] %v5819_v37 }
 0x138   : > { %v5827_v32 = vpop.permute.xlu1 %1037  ;;  %5047 = vset.pattern.permute.xlu1 %v7415_v29 }
 0x139   : > { %7439 = vst [vmem:[#allocation44_spill] sm:$0xff] %v5827_v32  ;;  %1528 = vperm.xlu1 %5047, %v5822_v63   ;;  %2298 = vperm.xlu0 %5081, %v5825_v59   ;;  %v634_v32 = vmul.f32 %v5662_v7, %v5593_v12  ;;  %v550_v12 = vmul.f32 %v5674_v10, %v5579_v5 }
 0x13a   : > { %v5832_v54 = vpop.permute.xlu0 %1563 }
 0x13b   : > { %7440 = vst [vmem:[#allocation45_spill] sm:$0xff] %v5832_v54  ;;  %v4456_v54 = vld [vmem:[%s7411_s1 + $0x4] sm:$0x7] }
 0x13d   : > { %v5834_v21 = vpop.permute.xlu1 %1126  ;;  %5048 = vset.pattern.permute.xlu1 %v7416_v4  ;;  %1762 = vperm.xlu0 %5081, %v5574_v3   ;;  %v5852_v3 = vrot.slane %v4456_v54, %v5657_v30  ;;  %v546_v30 = vmul.f32 %v5674_v10, %v5498_v41  ;;  %v650_v41 = vadd.f32 %v634_v32, %v550_v12 }
 0x13e   : > { %1626 = vperm.xlu1 %5048, %v5822_v63   ;;  %v5839_v56 = vpop.permute.xlu0 %2114  ;;  %v545_v32 = vmul.f32 %v5674_v10, %v5702_v36 }
 0x13f   : > { %7441 = vst [vmem:[#allocation46_spill] sm:$0xff] %v5839_v56 }
 0x141   : > { %v5841_v37 = vpop.permute.xlu1 %1130  ;;  %2306 = vperm.xlu0 %5081, %v5584_v8   ;;  %v630_v8 = vmul.f32 %v5662_v7, %v5511_v45  ;;  %v730_v45 = vmul.f32 %v5671_v31, %v5538_v53  ;;  %v547_v53 = vmul.f32 %v5674_v10, %v5710_v60  ;;  %v731_v60 = vmul.f32 %v5671_v31, %v5492_v39 }
 0x142   : > { %7442 = vst [vmem:[#allocation47_spill] sm:$0xff] %v5841_v37  ;;  %5049 = vset.pattern.permute.xlu1 %v7415_v29  ;;  %v5845_v19 = vpop.permute.xlu0 %1573  ;;  %v1070_v37 = vmul.f32 %v5852_v3, %v5715_v35 }
 0x143   : > { %7443 = vst [vmem:[#allocation48_spill] sm:$0xff] %v5845_v19  ;;  %2069 = vperm.xlu1 %5049, %v5415_v22   ;;  %v5863_v19 = vrot.slane %v4456_v54, %v5645_v13  ;;  %v734_v13 = vmul.f32 %v5671_v31, %v5496_v40 }
 0x145   : > { %v1154_v35 = vmul.f32 %v5863_v19, %v5647_v18 }
 0x146   : > { %v5854_v59 = vpop.permute.xlu1 %468  ;;  %v5856_v56 = vpop.permute.xlu0 %2119 }
 0x147   : > { %7444 = vst [vmem:[#allocation49_spill] sm:$0xff] %v5854_v59  ;;  %7445 = vst [vmem:[#allocation50_spill] sm:$0xff] %v5856_v56  ;;  %5050 = vset.pattern.permute.xlu1 %v7416_v4  ;;  %v5872_v56 = vrot.slane %v4456_v54, %v5654_v0  ;;  %v646_v59 = vadd.f32 %v630_v8, %v546_v30  ;;  %v1153_v54 = vmul.f32 %v5863_v19, %v5638_v1 }
 0x148   : > { %2166 = vperm.xlu1 %5050, %v5415_v22   ;;  %v1170_v40 = vadd.f32 %v1154_v35, %v1070_v37  ;;  %v1069_v30 = vmul.f32 %v5852_v3, %v5624_v25  ;;  %v750_v37 = vadd.f32 %v734_v13, %v650_v41  ;;  %v1157_v41 = vmul.f32 %v5863_v19, %v5730_v15 }
 0x149   : > { %v1254_v5 = vmul.f32 %v5872_v56, %v5509_v44  ;;  %v746_v18 = vadd.f32 %v730_v45, %v646_v59  ;;  %v1253_v1 = vmul.f32 %v5872_v56, %v5700_v34  ;;  %v5904_v44 = vld [vmem:[%s5332_s14 + $0x118] sm:$0xff]  ;;  %v1257_v59 = vmul.f32 %v5872_v56, %v5518_v47 }
 0x14a   : > { %v5882_v22 = vpop.permute.xlu0 %2129  ;;  %v1169_v8 = vadd.f32 %v1153_v54, %v1069_v30  ;;  %v5910_v25 = vmul.f32 %v5872_v56, %v5524_v49  ;;  %v729_v34 = vmul.f32 %v5671_v31, %v5528_v50  ;;  %v5920_v47 = vmul.f32 %v5872_v56, %v5533_v52 }
 0x14b   : > { %7446 = vst [vmem:[#allocation51_spill] sm:$0xff] %v5882_v22  ;;  %v5888_v0 = vpop.permute.xlu1 %564  ;;  %v631_v22 = vmul.f32 %v5662_v7, %v5563_v61  ;;  %v1270_v39 = vadd.f32 %v1254_v5, %v1170_v40  ;;  %v769_v13 = vadd.f32 %v5698_v28, %v746_v18  ;;  %v1156_v49 = vmul.f32 %v5863_v19, %v5684_v9 }
 0x14c   : > { %2170 = vperm.xlu1 %5050, %v5515_v46   ;;  %v1269_v35 = vadd.f32 %v1253_v1, %v1169_v8  ;;  %v5928_v50 = vmul.f32 %v5872_v56, %v5543_v55  ;;  %v1073_v52 = vmul.f32 %v5852_v3, %v5728_v38  ;;  %v5940_v9 = vadd.f32 %v5698_v28, %v750_v37 }
 0x14d   : > { %v647_v61 = vadd.f32 %v631_v22, %v547_v53  ;;  %v5933_v22 = vld [vmem:[%s7352_s2 + $0x1] ss:$0 sm:$0xff]  ;;  %v1072_v53 = vmul.f32 %v5852_v3, %v5667_v11  ;;  %v1256_v5 = vmul.f32 %v5872_v56, %v5713_v51  ;;  %v548_v18 = vmul.f32 %v5674_v10, %v5551_v57 }
 0x14e   : > { %v1294_v38 = vadd.f32 %v5933_v22, %v1270_v39  ;;  %v5954_v37 = vmul.f32 %v5671_v31, %v5553_v58  ;;  %v732_v57 = vmul.f32 %v5671_v31, %v5602_v26  ;;  %v1173_v51 = vadd.f32 %v1157_v41, %v1073_v52 }
 0x14f   : > { %v593_v45 = vpop.permute.xlu0 %592  ;;  %v747_v55 = vadd.f32 %v731_v60, %v647_v61  ;;  %v1172_v11 = vadd.f32 %v1156_v49, %v1072_v53  ;;  %v1293_v60 = vadd.f32 %v5933_v22, %v1269_v35  ;;  %v789_v58 = vmax.f32 %v5940_v9, 0.0  ;;  %v7455_v9 = vld [vmem:[#allocation33_spill] sm:$0xff] }
 0x150   : > { %v629_v12 = vmul.f32 %v5662_v7, %v593_v45  ;;  %v5915_v36 = vpop.permute.xlu1 %1218  ;;  %5051 = vset.pattern.permute.xlu1 %v7415_v29  ;;  %v549_v45 = vmul.f32 %v5674_v10, %v5571_v2  ;;  %v733_v41 = vmul.f32 %v5671_v31, %v5612_v62  ;;  %v1255_v53 = vmul.f32 %v5872_v56, %v5708_v16 }
 0x151   : > { %1538 = vperm.xlu1 %5051, %v5904_v44   ;;  %v1272_v39 = vadd.f32 %v1256_v5, %v1172_v11  ;;  %v1071_v2 = vmul.f32 %v5852_v3, %v5722_v6  ;;  %v1074_v16 = vmul.f32 %v5852_v3, %v5724_v33  ;;  %v1160_v6 = vmul.f32 %v5863_v19, %v5756_v23 }
 0x152   : > { %v645_v54 = vadd.f32 %v629_v12, %v545_v32  ;;  %v785_v32 = vmax.f32 %v769_v13, 0.0  ;;  %v1310_v13 = vmax.f32 %v1294_v38, 0.0  ;;  %v5089_v38 = vld [vmem:[%s7353_s3 + $0x30] sm:$0xff]  }
 0x153   : > { %v605_v40 = vpop.permute.xlu0 %604  ;;  %v5979_v62 = vadd.f32 %v5933_v22, %v1272_v39 }
 0x154   : > { %v745_v30 = vadd.f32 %v729_v34, %v645_v54  ;;  %v632_v15 = vmul.f32 %v5662_v7, %v605_v40  ;;  %v5950_v1 = vpop.permute.xlu1 %652  ;;  %v770_v34 = vadd.f32 %v5698_v28, %v747_v55  ;;  %v1309_v54 = vmax.f32 %v1293_v60, 0.0 }
 0x155   : > { %5052 = vset.pattern.permute.xlu1 %v7416_v4  ;;  %v1273_v40 = vadd.f32 %v1257_v59, %v1173_v51  ;;  %v1078_v51 = vmul.f32 %v5852_v3, %v5734_v17  ;;  %v5090_v17 = vld [vmem:[%s7353_s3 + $0x28] sm:$0xff]  }
 0x156   : > { %v768_v8 = vadd.f32 %v5698_v28, %v745_v30  ;;  %v648_v61 = vadd.f32 %v632_v15, %v548_v18  ;;  %1634 = vperm.xlu1 %5052, %v5904_v44   ;;  %v786_v30 = vmax.f32 %v770_v34, 0.0 }
 0x157   : > { %v609_v12 = vpop.permute.xlu0 %608  ;;  %v6000_v34 = vadd.f32 %v5933_v22, %v1273_v40 }
 0x158   : > { %v784_v49 = vmax.f32 %v768_v8, 0.0  ;;  %v748_v35 = vadd.f32 %v732_v57, %v648_v61  ;;  %v633_v26 = vmul.f32 %v5662_v7, %v609_v12  ;;  %v657_v52 = vpop.permute.xlu1 %656  ;;  %v1325_v57 = vpack.c.bf16 %v1310_v13, %v1309_v54  ;;  %v7447_v8 = vld [vmem:[#allocation23_spill] sm:$0xff]  ;;  %v7448_v61 = vld [vmem:[#allocation26_spill] sm:$0xff]  ;;  %v7452_v54 = vld [vmem:[#allocation29_spill] sm:$0xff] }
 0x159   : > { %v1075_v33 = vmul.f32 %v5852_v3, %v7447_v8  ;;  %v1076_v23 = vmul.f32 %v5852_v3, %v7448_v61  ;;  %v6016_v40 = vmul.f32 %v5674_v10, %v7452_v54 }
 0x15a   : > { %v771_v55 = vadd.f32 %v5698_v28, %v748_v35  ;;  %v649_v5 = vadd.f32 %v633_v26, %v549_v45  ;;  %5053 = vset.pattern.permute.xlu1 %v7426_v43  ;;  %v795_v18 = vpack.c.bf16 %v785_v32, %v784_v49  ;;  %v7449_v45 = vld [vmem:[#allocation15_spill] sm:$0xff]  ;;  %v7450_v49 = vld [vmem:[#allocation25_spill] sm:$0xff]  ;;  %v7451_v26 = vld [vmem:[#allocation28_spill] sm:$0xff] }
 0x15b   : > { %v1095_v59 = vpop.permute.xlu0 %1094  ;;  %2258 = vperm.xlu1 %5053, %v5793_v48   ;;  %v1162_v48 = vmul.f32 %v5863_v19, %v5795_v20  ;;  %v6008_v35 = vmul.f32 %v5674_v10, %v7450_v49  ;;  %v6012_v20 = vmul.f32 %v5852_v3, %v7451_v26 }
 0x15c   : > { %v787_v15 = vmax.f32 %v771_v55, 0.0  ;;  %v749_v11 = vadd.f32 %v733_v41, %v649_v5  ;;  %v1155_v32 = vmul.f32 %v5863_v19, %v1095_v59  ;;  %4853 = vmatmul.mubr.msk.bf16.vlgmr.msra.gmra.mxu1 %vm837_vm0, %v795_v18  ;;  %v5988_v60 = vpop.permute.xlu1 %1230  ;;  %v1176_v41 = vadd.f32 %v1160_v6, %v1076_v23  ;;  %v7453_v55 = vld [vmem:[#allocation5_spill] sm:$0xff]  ;;  %v6026_v6 = vld [vmem:[%s7353_s3 + $0x58] sm:$0xff]  }
 0x15d   : > { %4861 = vmatpush3.bf16.msra.mxu1 %v7449_v45  ;;  %v1161_v5 = vmul.f32 %v5863_v19, %v5787_v24  ;;  %v1178_v8 = vadd.f32 %v1162_v48, %v1078_v51  ;;  %v620_v24 = vmul.f32 %v5662_v7, %v5814_v14  ;;  %4884 = vmatprep.subr.bf16.mxu0 %v6026_v6  ;;  %v7454_v51 = vld [vmem:[#allocation39_spill] sm:$0xff] }
 0x15e   : > { %v772_v39 = vadd.f32 %v5698_v28, %v749_v11  ;;  %v1171_v12 = vadd.f32 %v1155_v32, %v1071_v2  ;;  %v796_v13 = vpack.c.bf16 %v787_v15, %v786_v30  ;;  %4862 = vmatprep.subr.bf16.mxu1 %v5089_v38  ;;  %v1258_v11 = vmul.f32 %v5872_v56, %v5768_v42  ;;  %v5091_v42 = vld [vmem:[%s7353_s3 + $0x20] sm:$0xff]  }
 0x15f   : > { %v1107_v2 = vpop.permute.xlu0 %1106  ;;  %1722 = vperm.xlu1 %5053, %v7453_v55   ;;  %v1077_v32 = vmul.f32 %v5852_v3, %v5780_v27  ;;  %v1276_v27 = vadd.f32 %v5910_v25, %v1176_v41  ;;  %v536_v14 = vmul.f32 %v5674_v10, %v7454_v51  ;;  %v1313_v25 = vmax.f32 %v6000_v34, 0.0  ;;  %v7456_v34 = vld [vmem:[#allocation47_spill] sm:$0xff]  ;;  %v5094_v51 = vld [vmem:[%s7353_s3 + $0x70] sm:$0xff]  }
 0x160   : > { %v788_v18 = vmax.f32 %v772_v39, 0.0  ;;  %v1271_v30 = vadd.f32 %v1255_v53, %v1171_v12  ;;  %v1158_v59 = vmul.f32 %v5863_v19, %v1107_v2  ;;  %4856 = vmatprep.mubr.msk.bf16.mxu1 %vm837_vm0, %v796_v13  ;;  %v665_v15 = vpop.permute.xlu1 %664  ;;  %v1312_v53 = vmax.f32 %v5979_v62, 0.0 }
 0x161   : > { %4863 = vmatpush3.bf16.msra.mxu1 %v5089_v38  ;;  %v1261_v38 = vmul.f32 %v5872_v56, %v5915_v36  ;;  %v720_v62 = vmul.f32 %v5671_v31, %v657_v52  ;;  %v1177_v48 = vadd.f32 %v1161_v5, %v1077_v32  ;;  %v1278_v13 = vadd.f32 %v5920_v47, %v1178_v8  ;;  %v5092_v47 = vld [vmem:[%s7353_s3 + $0x78] sm:$0xff]  }
 0x162   : > { %v1295_v61 = vadd.f32 %v5933_v22, %v1271_v30  ;;  %v1174_v23 = vadd.f32 %v1158_v59, %v1074_v16  ;;  %v797_v45 = vpack.c.bf16 %v789_v58, %v788_v18  ;;  %4864 = vmatprep.subr.bf16.mxu1 %v5090_v17  ;;  %v1259_v58 = vmul.f32 %v5872_v56, %v7455_v9  ;;  %v7458_v59 = vld [vmem:[#allocation44_spill] sm:$0xff] }
 0x163   : > { %v1111_v16 = vpop.permute.xlu0 %1110  ;;  %1726 = vperm.xlu1 %5053, %v5822_v63   ;;  %v636_v49 = vadd.f32 %v620_v24, %v536_v14  ;;  %v622_v36 = vmul.f32 %v5662_v7, %v5888_v0  ;;  %v1163_v52 = vmul.f32 %v5863_v19, %v5834_v21  ;;  %v1164_v0 = vmul.f32 %v5863_v19, %v7456_v34 }
 0x164   : > { %v1274_v39 = vadd.f32 %v1258_v11, %v1174_v23  ;;  %v1159_v12 = vmul.f32 %v5863_v19, %v1111_v16  ;;  %4857 = vmatmul.mubr.msk.bf16.gmra.mxu1 %vm837_vm0, %v797_v45  ;;  %v1311_v26 = vmax.f32 %v1295_v61, 0.0  ;;  %v1277_v2 = vadd.f32 %v1261_v38, %v1177_v48 }
 0x165   : > { %4865 = vmatpush3.bf16.msra.mxu1 %v5090_v17  ;;  %4868 = vmatprep.mubr.msk.bf16.mxu1 %vm837_vm0, %v1325_v57  ;;  %v6058_v63 = vpop.permute.xlu1 %1052  ;;  %v7457_v17 = vld [vmem:[#allocation49_spill] sm:$0xff]  ;;  %v736_v55 = vadd.f32 %v720_v62, %v636_v49  ;;  %v722_v18 = vmul.f32 %v5671_v31, %v665_v15  ;;  %v1079_v11 = vmul.f32 %v5852_v3, %v7458_v59 }
 0x166   : > { %v1298_v41 = vadd.f32 %v5933_v22, %v1274_v39  ;;  %v1175_v54 = vadd.f32 %v1159_v12, %v1075_v33  ;;  %4866 = vmatprep.subr.bf16.mxu1 %v5091_v42  ;;  %v538_v57 = vmul.f32 %v5674_v10, %v7457_v17  ;;  %v719_v8 = vmul.f32 %v5671_v31, %v5950_v1 }
 0x167   : > { %v553_v5 = vpop.permute.xlu0 %552  ;;  %2270 = vperm.xlu1 %5053, %v5515_v46   ;;  %v1264_v24 = vmul.f32 %v5872_v56, %v5988_v60  ;;  %v1326_v61 = vpack.c.bf16 %v1312_v53, %v1311_v26  ;;  %v1300_v14 = vadd.f32 %v5933_v22, %v1276_v27  ;;  %v1179_v1 = vadd.f32 %v1163_v52, %v1079_v11 }
 0x168   : > { %v1314_v21 = vmax.f32 %v1298_v41, 0.0  ;;  %v1275_v33 = vadd.f32 %v1259_v58, %v1175_v54  ;;  %v619_v30 = vmul.f32 %v5662_v7, %v553_v5  ;;  %v638_v32 = vadd.f32 %v622_v36, %v538_v57 }
 0x169   : > { %4867 = vmatpush3.bf16.msra.mxu1 %v5091_v42  ;;  %v1180_v38 = vadd.f32 %v1164_v0, %v6012_v20  ;;  %v1301_v60 = vadd.f32 %v5933_v22, %v1277_v2  ;;  %v759_v16 = vadd.f32 %v5698_v28, %v736_v55  ;;  %v1302_v9 = vadd.f32 %v5933_v22, %v1278_v13 }
 0x16a   : > { %v1299_v46 = vadd.f32 %v5933_v22, %v1275_v33  ;;  %v635_v23 = vadd.f32 %v619_v30, %v6008_v35  ;;  %v6081_v15 = vpop.permute.xlu1 %1134  ;;  %v1327_v45 = vpack.c.bf16 %v1314_v21, %v1313_v25  ;;  %4908 = vmatprep.subr.bf16.mxu1 %v5092_v47  ;;  %v738_v42 = vadd.f32 %v722_v18, %v638_v32  ;;  %v5136_v21 = vld [vmem:[%s5332_s14 + $0x1a0] sm:$0xff]  ;;  %v5095_v33 = vld [vmem:[%s7353_s3 + $0x50] sm:$0xff]   ;;  %v5097_v32 = vld [vmem:[%s7353_s3 + $0x48] sm:$0xff]  }
 0x16b   : > { %v561_v53 = vpop.permute.xlu0 %560  ;;  %1734 = vperm.xlu1 %5053, %v5904_v44   ;;  %v1280_v27 = vadd.f32 %v1264_v24, %v1180_v38  ;;  %v5096_v44 = vld [vmem:[%s7353_s3 + $0x68] sm:$0xff]   ;;  %v1316_v39 = vmax.f32 %v1300_v14, 0.0  ;;  %v1279_v12 = vadd.f32 %v5928_v50, %v1179_v1  ;;  %v1317_v25 = vmax.f32 %v1301_v60, 0.0  ;;  %v5138_v14 = vld [vmem:[%s5332_s14 + $0x1b8] sm:$0xff]  ;;  %v7461_v1 = vld [vmem:[#allocation37_spill] sm:$0xff] }
 0x16c   : > { %v735_v35 = vadd.f32 %v719_v8, %v635_v23  ;;  %v621_v62 = vmul.f32 %v5662_v7, %v561_v53  ;;  %4869 = vmatmul.mubr.msk.bf16.vlgmr.msra.gmra.mxu1 %vm837_vm0, %v1326_v61  ;;  %v1315_v20 = vmax.f32 %v1299_v46, 0.0  ;;  %v761_v49 = vadd.f32 %v5698_v28, %v738_v42  ;;  %v7460_v8 = vld [vmem:[#allocation27_spill] sm:$0xff]  ;;  %v5137_v61 = vld [vmem:[%s5332_s14 + $0x128] sm:$0xff] }
 0x16d   : > { %4872 = vmatprep.mubr.msk.bf16.mxu1 %vm837_vm0, %v1327_v45  ;;  %4909 = vmatpush3.bf16.msra.mxu1 %v5092_v47  ;;  %v775_v26 = vmax.f32 %v759_v16, 0.0  ;;  %v1318_v41 = vmax.f32 %v1302_v9, 0.0  ;;  %v1304_v54 = vadd.f32 %v5933_v22, %v1280_v27  ;;  %v1303_v57 = vadd.f32 %v5933_v22, %v1279_v12  ;;  %v6135_v23 = vld [vmem:[%s5332_s14 + $0x168] sm:$0xff]  ;;  %v7462_v38 = vld [vmem:[#allocation31_spill] sm:$0xff] }
 0x16e   : > { %v637_v58 = vadd.f32 %v621_v62, %v6016_v40  ;;  %v758_v48 = vadd.f32 %v5698_v28, %v735_v35  ;;  %4910 = vmatprep.subr.bf16.mxu1 %v5094_v51  ;;  %v7459_v40 = vld [vmem:[#allocation24_spill] sm:$0xff]  ;;  %v1328_v47 = vpack.c.bf16 %v1316_v39, %v1315_v20  ;;  %v777_v2 = vmax.f32 %v761_v49, 0.0  ;;  %1774 = vperm.xlu0 %5081, %v6135_v23   ;;  %v7463_v62 = vld [vmem:[#allocation6_spill] sm:$0xff]  ;;  %v7464_v16 = vld [vmem:[#allocation7_spill] sm:$0xff] }
 0x16f   : > { %5054 = vset.pattern.permute.xlu1 %v7415_v29  ;;  %v6102_v13 = vpop.permute.xlu1 %473  ;;  %v1329_v17 = vpack.c.bf16 %v1318_v41, %v1317_v25  ;;  %v1320_v5 = vmax.f32 %v1304_v54, 0.0  ;;  %v1319_v30 = vmax.f32 %v1303_v57, 0.0  ;;  %v1139_v45 = vpop.permute.xlu0 %1138  ;;  %v1081_v60 = vmul.f32 %v5852_v3, %v7462_v38  ;;  %v7469_v38 = vld [vmem:[#allocation10_spill] sm:$0xff] }
 0x170   : > { %v737_v36 = vadd.f32 %v5954_v37, %v637_v58  ;;  %2084 = vperm.xlu1 %5054, %v7459_v40   ;;  %v774_v52 = vmax.f32 %v758_v48, 0.0  ;;  %v5098_v37 = vld [vmem:[%s7353_s3 + $0x60] sm:$0xff]   ;;  %v1165_v53 = vmul.f32 %v5863_v19, %v6081_v15  ;;  %v1265_v9 = vmul.f32 %v5872_v56, %v7464_v16  ;;  %v7465_v15 = vld [vmem:[#allocation8_spill] sm:$0xff] }
 0x171   : > { %4911 = vmatpush3.bf16.msra.mxu1 %v5094_v51  ;;  %v1330_v11 = vpack.c.bf16 %v1320_v5, %v1319_v30  ;;  %v724_v39 = vmul.f32 %v5671_v31, %v7465_v15 }
 0x172   : > { %v760_v50 = vadd.f32 %v5698_v28, %v737_v36  ;;  %v790_v34 = vpack.c.bf16 %v775_v26, %v774_v52  ;;  %4912 = vmatprep.subr.bf16.mxu1 %v5096_v44  ;;  %2318 = vperm.xlu0 %5081, %v7461_v1   ;;  %v1181_v27 = vadd.f32 %v1165_v53, %v1081_v60  ;;  %v7466_v36 = vld [vmem:[#allocation30_spill] sm:$0xff] }
 0x173   : > { %v479_v0 = vpop.permute.xlu1 %478  ;;  %v569_v35 = vpop.permute.xlu0 %568  ;;  %v1082_v52 = vmul.f32 %v5852_v3, %v6058_v63  ;;  %v539_v63 = vmul.f32 %v5674_v10, %v6102_v13  ;;  %v726_v60 = vmul.f32 %v5671_v31, %v7469_v38  ;;  %v4481_v38 = vld [vmem:[%s7411_s1 + $0x8] sm:$0x7] }
 0x174   : > { %v776_v55 = vmax.f32 %v760_v50, 0.0  ;;  %4873 = vmatmul.mubr.msk.bf16.gmra.mxu1 %vm837_vm0, %v1328_v47  ;;  %5055 = vset.pattern.permute.xlu1 %v7416_v4  ;;  %v540_v48 = vmul.f32 %v5674_v10, %v479_v0  ;;  %v1281_v12 = vadd.f32 %v1265_v9, %v1181_v27  ;;  %v623_v47 = vmul.f32 %v5662_v7, %v569_v35  ;;  %v7467_v0 = vld [vmem:[#allocation9_spill] sm:$0xff] }
 0x175   : > { %4844 = vmatprep.mubr.msk.bf16.mxu0 %vm837_vm0, %v790_v34  ;;  %4876 = vmatprep.mubr.msk.bf16.mxu1 %vm837_vm0, %v1329_v17  ;;  %v1268_v17 = vmul.f32 %v5872_v56, %v7467_v0 }
 0x176   : > { %2174 = vperm.xlu1 %5055, %v5136_v21   ;;  %v791_v18 = vpack.c.bf16 %v777_v2, %v776_v55  ;;  %4913 = vmatpush3.bf16.msra.mxu1 %v5096_v44  ;;  %v1166_v44 = vmul.f32 %v5863_v19, %v1139_v45  ;;  %v5139_v2 = vld [vmem:[%s5332_s14 + $0x138] sm:$0xff] }
 0x177   : > { %4914 = vmatprep.subr.bf16.mxu1 %v5098_v37  ;;  %v1147_v25 = vpop.permute.xlu0 %1146 }
 0x178   : > { %4845 = vmatmul.mubr.msk.bf16.vlgmr.msra.gmra.mxu0 %vm837_vm0, %v791_v18  ;;  %v573_v59 = vpop.permute.xlu1 %572  ;;  %v1168_v26 = vmul.f32 %v5863_v19, %v1147_v25  ;;  %v1182_v50 = vadd.f32 %v1166_v44, %v1082_v52  ;;  %v7468_v18 = vld [vmem:[#allocation32_spill] sm:$0xff] }
 0x179   : > { %4885 = vmatpush3.bf16.msra.mxu0 %v6026_v6  ;;  %v5099_v6 = vld [vmem:[%s7353_s3 + $0x40] sm:$0xff]   ;;  %v624_v20 = vmul.f32 %v5662_v7, %v573_v59 }
 0x17a   : > { %5056 = vset.pattern.permute.xlu1 %v7415_v29  ;;  %4886 = vmatprep.subr.bf16.mxu0 %v5095_v33 }
 0x17b   : > { %1543 = vperm.xlu1 %5056, %v7460_v8   ;;  %4915 = vmatpush3.bf16.msra.mxu1 %v5098_v37  ;;  %v640_v49 = vadd.f32 %v624_v20, %v540_v48  ;;  %v1305_v37 = vadd.f32 %v5933_v22, %v1281_v12 }
 0x17c   : > { %4877 = vmatmul.mubr.msk.bf16.gmra.mxu1 %vm837_vm0, %v1330_v11  ;;  %v639_v11 = vadd.f32 %v623_v47, %v539_v63  ;;  %v4506_v63 = vld [vmem:[%s7411_s1 + $0xc] sm:$0x7] }
 0x17d   : > { %v1063_v24 = vpop.permute.xlu1 %1062  ;;  %4887 = vmatpush3.bf16.msra.mxu0 %v5095_v33  ;;  %v740_v57 = vadd.f32 %v724_v39, %v640_v49  ;;  %v1083_v33 = vmul.f32 %v5852_v3, %v7468_v18  ;;  %v1321_v13 = vmax.f32 %v1305_v37, 0.0  ;;  %v6210_v37 = vld [vmem:[%s5332_s14 + $0x148] sm:$0xff]  ;;  %v7472_v18 = vld [vmem:[#allocation19_spill] sm:$0xff] }
 0x17e   : > { %4888 = vmatprep.subr.bf16.mxu0 %v5097_v32  ;;  %v1084_v41 = vmul.f32 %v5852_v3, %v1063_v24  ;;  %v577_v3 = vpop.permute.xlu0 %576 }
 0x17f   : > { %1548 = vperm.xlu1 %5056, %v5137_v61   ;;  %v763_v45 = vadd.f32 %v5698_v28, %v740_v57  ;;  %v625_v53 = vmul.f32 %v5662_v7, %v577_v3  ;;  %v7475_v3 = vld [vmem:[#allocation11_spill] sm:$0xff] }
 0x180   : > { %v1184_v55 = vadd.f32 %v1168_v26, %v1084_v41 }
 0x181   : > { %4889 = vmatpush3.bf16.msra.mxu0 %v5097_v32  ;;  %v779_v20 = vmax.f32 %v763_v45, 0.0 }
 0x182   : > { %v1143_v46 = vpop.permute.xlu1 %1142  ;;  %4890 = vmatprep.subr.bf16.mxu0 %v5099_v6 }
 0x183   : > { %5057 = vset.pattern.permute.xlu1 %v7416_v4  ;;  %v1167_v30 = vmul.f32 %v5863_v19, %v1143_v46 }
 0x184   : > { %1642 = vperm.xlu1 %5057, %v5137_v61   ;;  %v6176_v61 = vld [vmem:[%s5332_s14 + $0x178] sm:$0xff] }
 0x185   : > { %4891 = vmatpush3.bf16.msra.mxu0 %v5099_v6  ;;  %1782 = vperm.xlu0 %5081, %v6176_v61  }
 0x187   : > { %v484_v51 = vpop.permute.xlu1 %483 }
 0x188   : > { %5058 = vset.pattern.permute.xlu1 %v7415_v29 }
 0x189   : > { %2094 = vperm.xlu1 %5058, %v5138_v14   ;;  %v1284_v14 = vadd.f32 %v1268_v17, %v1184_v55  ;;  %v5141_v17 = vld [vmem:[%s5332_s14 + $0x1c8] sm:$0xff]  ;;  %v7470_v55 = vld [vmem:[#allocation43_spill] sm:$0xff] }
 0x18b   : > { %v489_v42 = vpop.permute.xlu1 %488 }
 0x18c   : > { %v542_v32 = vmul.f32 %v5674_v10, %v489_v42  ;;  %v1183_v42 = vadd.f32 %v1167_v30, %v1083_v33  ;;  %v6225_v33 = vrot.slane %v4506_v63, %v7472_v18 }
 0x18d   : > { %5059 = vset.pattern.permute.xlu1 %v7416_v4 }
 0x18e   : > { %2182 = vperm.xlu1 %5059, %v7463_v62   ;;  %v541_v62 = vmul.f32 %v5674_v10, %v484_v51 }
 0x190   : > { %v581_v58 = vpop.permute.xlu1 %580  ;;  %v641_v39 = vadd.f32 %v625_v53, %v541_v62  ;;  %v6251_v53 = vrot.slane %v4481_v38, %v7472_v18  ;;  %v6255_v62 = vld [vmem:[%s5332_s14 + $0x158] sm:$0xff] }
 0x191   : > { %v626_v5 = vmul.f32 %v5662_v7, %v581_v58  ;;  %v1308_v58 = vadd.f32 %v5933_v22, %v1284_v14 }
 0x192   : > { %5060 = vset.pattern.permute.xlu1 %v7415_v29 }
 0x193   : > { %1553 = vperm.xlu1 %5060, %v7466_v36   ;;  %v642_v19 = vadd.f32 %v626_v5, %v542_v32  ;;  %v1324_v12 = vmax.f32 %v1308_v58, 0.0  ;;  %v7471_v5 = vld [vmem:[#allocation21_spill] sm:$0xff] }
 0x195   : > { %v1239_v54 = vpop.permute.xlu1 %1238  ;;  %v742_v48 = vadd.f32 %v726_v60, %v642_v19  ;;  %v1623_v19 = vpop.permute.xlu0 %1622  ;;  %v6248_v60 = vrot.slane %v4481_v38, %v7471_v5 }
 0x196   : > { %v1266_v34 = vmul.f32 %v5872_v56, %v1239_v54  ;;  %v1689_v58 = vmul.f32 %v6251_v53, %v1623_v19 }
 0x197   : > { %1558 = vperm.xlu1 %5060, %v5139_v2   ;;  %v765_v25 = vadd.f32 %v5698_v28, %v742_v48 }
 0x198   : > { %v1282_v21 = vadd.f32 %v1266_v34, %v1182_v50 }
 0x199   : > { %v669_v59 = vpop.permute.xlu1 %668  ;;  %v781_v54 = vmax.f32 %v765_v25, 0.0 }
 0x19a   : > { %v1306_v24 = vadd.f32 %v5933_v22, %v1282_v21  ;;  %v723_v6 = vmul.f32 %v5671_v31, %v669_v59  ;;  %v6222_v21 = vrot.slane %v4506_v63, %v7471_v5  ;;  %v7473_v59 = vld [vmem:[#allocation34_spill] sm:$0xff] }
 0x19b   : > { %5061 = vset.pattern.permute.xlu1 %v7416_v4 }
 0x19c   : > { %v1322_v46 = vmax.f32 %v1306_v24, 0.0  ;;  %v739_v1 = vadd.f32 %v723_v6, %v639_v11  ;;  %1650 = vperm.xlu1 %5061, %v5139_v2   ;;  %v2142_v11 = vmul.f32 %v6222_v21, %v7473_v59  ;;  %v7474_v24 = vld [vmem:[#allocation20_spill] sm:$0xff] }
 0x19d   : > { %v1243_v35 = vpop.permute.xlu1 %1242  ;;  %v6234_v6 = vrot.slane %v4506_v63, %v7474_v24 }
 0x19e   : > { %v762_v16 = vadd.f32 %v5698_v28, %v739_v1  ;;  %v1267_v9 = vmul.f32 %v5872_v56, %v1243_v35  ;;  %v1331_v27 = vpack.c.bf16 %v1322_v46, %v1321_v13  ;;  %v6241_v1 = vld [vmem:[%s5332_s14 + $0x1d8] sm:$0xff] }
 0x19f   : > { %v2326_v14 = vmul.f32 %v6234_v6, %v7475_v3 }
 0x1a0   : > { %v778_v44 = vmax.f32 %v762_v16, 0.0  ;;  %v1283_v15 = vadd.f32 %v1267_v9, %v1183_v42  ;;  %5062 = vset.pattern.permute.xlu1 %v7426_v43  ;;  %4880 = vmatprep.mubr.msk.bf16.mxu1 %vm837_vm0, %v1331_v27  ;;  %v6260_v16 = vld [vmem:[%s7352_s2 + $0x3] ss:$0 sm:$0xff] }
 0x1a1   : > { %2278 = vperm.xlu1 %5062, %v7459_v40   ;;  %v677_v7 = vpop.permute.xlu1 %676  ;;  %v7476_v27 = vld [vmem:[#allocation35_spill] sm:$0xff] }
 0x1a2   : > { %v1307_v10 = vadd.f32 %v5933_v22, %v1283_v15  ;;  %v725_v56 = vmul.f32 %v5671_v31, %v677_v7  ;;  %v792_v51 = vpack.c.bf16 %v779_v20, %v778_v44  ;;  %v5140_v31 = vld [vmem:[%s5332_s14 + $0x1b0] sm:$0xff]  ;;  %v1605_v20 = vmul.f32 %v6248_v60, %v7476_v27 }
 0x1a3   : > { %v6270_v7 = vrot.slane %v4481_v38, %v7474_v24 }
 0x1a4   : > { %v1323_v49 = vmax.f32 %v1307_v10, 0.0  ;;  %v741_v52 = vadd.f32 %v725_v56, %v641_v39  ;;  %4848 = vmatprep.mubr.msk.bf16.mxu0 %vm837_vm0, %v792_v51  ;;  %v1631_v39 = vpop.permute.xlu0 %1630  ;;  %v1705_v25 = vadd.f32 %v1689_v58, %v1605_v20 }
 0x1a5   : > { %1738 = vperm.xlu1 %5062, %v7460_v8   ;;  %v6202_v8 = vld [vmem:[%s5332_s14 + $0x1c0] sm:$0xff] }
 0x1a6   : > { %v764_v40 = vadd.f32 %v5698_v28, %v741_v52  ;;  %v2060_v26 = vpop.permute.xlu1 %2059  ;;  %v1332_v41 = vpack.c.bf16 %v1324_v12, %v1323_v49 }
 0x1a7   : > { %v2141_v42 = vmul.f32 %v6222_v21, %v2060_v26  ;;  %v7477_v26 = vld [vmem:[#allocation38_spill] sm:$0xff] }
 0x1a8   : > { %v780_v50 = vmax.f32 %v764_v40, 0.0  ;;  %4881 = vmatmul.mubr.msk.bf16.gmra.mxu1 %vm837_vm0, %v1332_v41  ;;  %v1607_v41 = vmul.f32 %v6248_v60, %v7477_v26 }
 0x1a9   : > { %2282 = vperm.xlu1 %5062, %v5140_v31  }
 0x1aa   : > { %v793_v22 = vpack.c.bf16 %v781_v54, %v780_v50  ;;  %v1691_v54 = vmul.f32 %v6251_v53, %v1631_v39 }
 0x1ab   : > { %v2159_v47 = vpop.permute.xlu1 %2158 }
 0x1ac   : > { %4849 = vmatmul.mubr.msk.bf16.gmra.mxu0 %vm837_vm0, %v793_v22  ;;  %v2225_v46 = vmul.f32 %v6225_v33, %v2159_v47 }
 0x1ad   : > { %1746 = vperm.xlu1 %5062, %v7466_v36  }
 0x1ae   : > { %v2241_v48 = vadd.f32 %v2225_v46, %v2141_v42  ;;  %v7480_v46 = vld [vmem:[#allocation13_spill] sm:$0xff] }
 0x1af   : > { %v2163_v34 = vpop.permute.xlu1 %2162 }
 0x1b0   : > { %v2226_v32 = vmul.f32 %v6225_v33, %v2163_v34 }
 0x1b1   : > { %5064 = vset.pattern.permute.xlu1 %v7415_v29 }
 0x1b2   : > { %2099 = vperm.xlu1 %5064, %v6202_v8   ;;  %v2242_v13 = vadd.f32 %v2226_v32, %v2142_v11 }
 0x1b4   : > { %v1529_v28 = vpop.permute.xlu1 %1528  ;;  %v2342_v35 = vadd.f32 %v2326_v14, %v2242_v13  ;;  %v1707_v13 = vadd.f32 %v1691_v54, %v1607_v41 }
 0x1b5   : > { %v1606_v22 = vmul.f32 %v6248_v60, %v1529_v28  ;;  %v6292_v28 = vld [vmem:[%s7352_s2 + $0x2] ss:$0 sm:$0xff] }
 0x1b6   : > { %5065 = vset.pattern.permute.xlu1 %v7416_v4  ;;  %v2366_v10 = vadd.f32 %v6260_v16, %v2342_v35 }
 0x1b7   : > { %2190 = vperm.xlu1 %5065, %v6202_v8  }
 0x1b8   : > { %v2382_v31 = vmax.f32 %v2366_v10, 0.0  ;;  %v5143_v10 = vld [vmem:[%s5332_s14 + $0x140] sm:$0xff] }
 0x1b9   : > { %v1627_v0 = vpop.permute.xlu1 %1626 }
 0x1ba   : > { %v1690_v49 = vmul.f32 %v6251_v53, %v1627_v0  ;;  %v7478_v0 = vld [vmem:[#allocation12_spill] sm:$0xff] }
 0x1bb   : > { %2194 = vperm.xlu1 %5065, %v5141_v17   ;;  %v2327_v17 = vmul.f32 %v6234_v6, %v7478_v0  ;;  %v5145_v0 = vld [vmem:[%s5332_s14 + $0x1e0] sm:$0xff] }
 0x1be   : > { %v2070_v57 = vpop.permute.xlu1 %2069 }
 0x1bf   : > { %5066 = vset.pattern.permute.xlu1 %v7415_v29  ;;  %v2143_v51 = vmul.f32 %v6222_v21, %v2070_v57  ;;  %v7479_v57 = vld [vmem:[#allocation36_spill] sm:$0xff] }
 0x1c0   : > { %1568 = vperm.xlu1 %5066, %v6210_v37  }
 0x1c3   : > { %v2167_v36 = vpop.permute.xlu1 %2166 }
 0x1c4   : > { %5067 = vset.pattern.permute.xlu1 %v7416_v4  ;;  %v2227_v15 = vmul.f32 %v6225_v33, %v2167_v36  ;;  %v2144_v36 = vmul.f32 %v6222_v21, %v7479_v57 }
 0x1c5   : > { %1658 = vperm.xlu1 %5067, %v6210_v37  }
 0x1c6   : > { %v2243_v50 = vadd.f32 %v2227_v15, %v2143_v51 }
 0x1c7   : > { %v2171_v2 = vpop.permute.xlu1 %2170 }
 0x1c8   : > { %v2228_v59 = vmul.f32 %v6225_v33, %v2171_v2  ;;  %v2343_v3 = vadd.f32 %v2327_v17, %v2243_v50  ;;  %v1791_v2 = vmul.f32 %v6270_v7, %v7480_v46  ;;  %v6326_v17 = vld [vmem:[%s5332_s14 + $0x160] sm:$0xff] }
 0x1c9   : > { %5068 = vset.pattern.permute.xlu1 %v7415_v29 }
 0x1ca   : > { %2109 = vperm.xlu1 %5068, %v7470_v55   ;;  %v2244_v42 = vadd.f32 %v2228_v59, %v2144_v36  ;;  %v1807_v20 = vadd.f32 %v1791_v2, %v1707_v13  ;;  %v2367_v58 = vadd.f32 %v6260_v16, %v2343_v3  ;;  %v6341_v3 = vld [vmem:[%s5332_s14 + $0x1f0] sm:$0xff]  ;;  %v7482_v2 = vld [vmem:[#allocation14_spill] sm:$0xff] }
 0x1cc   : > { %v6227_v30 = vpop.permute.xlu1 %1538 }
 0x1ce   : > { %5069 = vset.pattern.permute.xlu1 %v7416_v4 }
 0x1cf   : > { %2198 = vperm.xlu1 %5069, %v7470_v55   ;;  %v1706_v55 = vadd.f32 %v1690_v49, %v1606_v22  ;;  %v2383_v49 = vmax.f32 %v2367_v58, 0.0 }
 0x1d1   : > { %v1635_v45 = vpop.permute.xlu1 %1634 }
 0x1d2   : > { %v1692_v35 = vmul.f32 %v6251_v53, %v1635_v45 }
 0x1d3   : > { %2202 = vperm.xlu1 %5069, %v6241_v1  }
 0x1d6   : > { %v2259_v9 = vpop.permute.xlu1 %2258 }
 0x1d7   : > { %5070 = vset.pattern.permute.xlu1 %v7415_v29  ;;  %v2325_v44 = vmul.f32 %v6234_v6, %v2259_v9 }
 0x1d8   : > { %1578 = vperm.xlu1 %5070, %v6255_v62  }
 0x1d9   : > { %v2341_v56 = vadd.f32 %v2325_v44, %v2241_v48  ;;  %v1608_v48 = vmul.f32 %v6248_v60, %v6227_v30 }
 0x1da   : > { %v1723_v12 = vpop.permute.xlu1 %1722 }
 0x1db   : > { %v2365_v52 = vadd.f32 %v6260_v16, %v2341_v56  ;;  %v1789_v40 = vmul.f32 %v6270_v7, %v1723_v12  ;;  %v1708_v56 = vadd.f32 %v1692_v35, %v1608_v48  ;;  %v7483_v48 = vld [vmem:[#allocation16_spill] sm:$0xff] }
 0x1dc   : > { %5071 = vset.pattern.permute.xlu1 %v7416_v4 }
 0x1dd   : > { %v2381_v47 = vmax.f32 %v2365_v52, 0.0  ;;  %v1805_v34 = vadd.f32 %v1789_v40, %v1705_v25  ;;  %1666 = vperm.xlu1 %5071, %v6255_v62   ;;  %v1831_v25 = vadd.f32 %v6292_v28, %v1807_v20 }
 0x1de   : > { %v1727_v63 = vpop.permute.xlu1 %1726 }
 0x1df   : > { %v2397_v11 = vpack.c.bf16 %v2382_v31, %v2381_v47  ;;  %v1790_v32 = vmul.f32 %v6270_v7, %v1727_v63  ;;  %v1829_v14 = vadd.f32 %v6292_v28, %v1805_v34  ;;  %v1847_v54 = vmax.f32 %v1831_v25, 0.0  ;;  %v6319_v47 = vld [vmem:[%s5332_s14 + $0x1e8] sm:$0xff]  ;;  %v2179_v63 = vpop.permute.xlu0 %2178 }
 0x1e0   : > { %v2230_v35 = vmul.f32 %v6225_v33, %v2179_v63 }
 0x1e1   : > { %v1806_v19 = vadd.f32 %v1790_v32, %v1706_v55  ;;  %5072 = vset.pattern.permute.xlu1 %v7426_v43  ;;  %4916 = vmatprep.mubr.msk.bf16.mxu1 %vm837_vm0, %v2397_v11  ;;  %v1845_v44 = vmax.f32 %v1829_v14, 0.0  ;;  %v5147_v55 = vld [vmem:[%s5332_s14 + $0x1f8] sm:$0xff]  ;;  %v7481_v32 = vld [vmem:[#allocation40_spill] sm:$0xff] }
 0x1e2   : > { %2290 = vperm.xlu1 %5072, %v6202_v8   ;;  %v2271_v38 = vpop.permute.xlu1 %2270  ;;  %v2145_v13 = vmul.f32 %v6222_v21, %v7481_v32 }
 0x1e3   : > { %v1830_v9 = vadd.f32 %v6292_v28, %v1806_v19  ;;  %v2328_v27 = vmul.f32 %v6234_v6, %v2271_v38  ;;  %v2329_v38 = vmul.f32 %v6234_v6, %v7482_v2 }
 0x1e5   : > { %v1846_v15 = vmax.f32 %v1830_v9, 0.0  ;;  %v2344_v39 = vadd.f32 %v2328_v27, %v2244_v42  ;;  %v6352_v27 = vld [vmem:[%s5332_s14 + $0x170] sm:$0xff]  ;;  %s4374_s14 = scalar_lea.hbm %s7361_s11, %s4647_s13 }
 0x1e6   : > { %1754 = vperm.xlu1 %5072, %v5143_v10   ;;  %v1735_v8 = vpop.permute.xlu1 %1734 }
 0x1e7   : > { %v1861_v51 = vpack.c.bf16 %v1846_v15, %v1845_v44  ;;  %v2368_v45 = vadd.f32 %v6260_v16, %v2344_v39  ;;  %v1792_v12 = vmul.f32 %v6270_v7, %v1735_v8  ;;  %v1794_v44 = vmul.f32 %v6270_v7, %v7483_v48  ;;  %v7486_v48 = vld [vmem:[#allocation41_spill] sm:$0xff] }
 0x1e9   : > { %v2384_v52 = vmax.f32 %v2368_v45, 0.0  ;;  %v1808_v40 = vadd.f32 %v1792_v12, %v1708_v56  ;;  %4892 = vmatprep.mubr.msk.bf16.mxu0 %vm837_vm0, %v1861_v51  ;;  %v6364_v45 = vld [vmem:[%s7354_s4] ss:$0 sm:$0xff] }
 0x1ea   : > { %1758 = vperm.xlu1 %5072, %v6210_v37  }
 0x1eb   : > { %v2398_v30 = vpack.c.bf16 %v2384_v52, %v2383_v49  ;;  %v1832_v26 = vadd.f32 %v6292_v28, %v1808_v40  ;;  %v2085_v41 = vpop.permute.xlu1 %2084 }
 0x1ec   : > { %v2146_v9 = vmul.f32 %v6222_v21, %v2085_v41  ;;  %v5100_v41 = vld [vmem:[%s7355_s5 + $0xf8] sm:$0xff]  }
 0x1ed   : > { %v1848_v50 = vmax.f32 %v1832_v26, 0.0  ;;  %4917 = vmatmul.mubr.msk.bf16.vlgmr.msra.gmra.mxu1 %vm837_vm0, %v2398_v30  ;;  %4760 = vmatprep.subr.bf16.mxu1 %v5100_v41 }
 0x1ee   : > { %2302 = vperm.xlu1 %5072, %v6241_v1   ;;  %v2246_v25 = vadd.f32 %v2230_v35, %v2146_v9 }
 0x1ef   : > { %v1862_v31 = vpack.c.bf16 %v1848_v50, %v1847_v54 }
 0x1f1   : > { %v2175_v22 = vpop.permute.xlu1 %2174  ;;  %4893 = vmatmul.mubr.msk.bf16.vlgmr.msra.gmra.mxu0 %vm837_vm0, %v1862_v31  ;;  %v5101_v31 = vld [vmem:[%s7355_s5 + $0xb8] sm:$0xff]  }
 0x1f2   : > { %1766 = vperm.xlu1 %5072, %v6255_v62   ;;  %v2229_v59 = vmul.f32 %v6225_v33, %v2175_v22  ;;  %v7484_v22 = vld [vmem:[#allocation18_spill] sm:$0xff]  ;;  %4761 = vmatpush3.bf16.msra.mxu1 %v5101_v31 }
 0x1f4   : > { %v2245_v14 = vadd.f32 %v2229_v59, %v2145_v13 }
 0x1f6   : > { %5073 = vset.pattern.permute.xlu1 %v7415_v29  ;;  %v1544_v37 = vpop.permute.xlu1 %1543  ;;  %v2345_v20 = vadd.f32 %v2329_v38, %v2245_v14 }
 0x1f7   : > { %2124 = vperm.xlu1 %5073, %v6319_v47   ;;  %v1609_v8 = vmul.f32 %v6248_v60, %v1544_v37  ;;  %v2332_v37 = vmul.f32 %v6234_v6, %v7484_v22 }
 0x1f8   : > { %v2369_v52 = vadd.f32 %v6260_v16, %v2345_v20 }
 0x1fa   : > { %v1549_v34 = vpop.permute.xlu1 %1548 }
 0x1fb   : > { %5074 = vset.pattern.permute.xlu1 %v7416_v4  ;;  %v1610_v42 = vmul.f32 %v6248_v60, %v1549_v34 }
 0x1fc   : > { %2206 = vperm.xlu1 %5074, %v5145_v0  }
 0x1ff   : > { %v1643_v1 = vpop.permute.xlu1 %1642 }
 0x200   : > { %5075 = vset.pattern.permute.xlu1 %v7415_v29  ;;  %v1694_v19 = vmul.f32 %v6251_v53, %v1643_v1 }
 0x201   : > { %1583 = vperm.xlu1 %5075, %v6326_v17  }
 0x202   : > { %v1710_v58 = vadd.f32 %v1694_v19, %v1610_v42 }
 0x204   : > { %v2095_v62 = vpop.permute.xlu1 %2094  ;;  %v1810_v40 = vadd.f32 %v1794_v44, %v1710_v58  ;;  %v7485_v58 = vld [vmem:[#allocation22_spill] sm:$0xff]  ;;  %v2147_v44 = vmul.f32 %v6222_v21, %v7486_v48 }
 0x205   : > { %1588 = vperm.xlu1 %5075, %v6135_v23   ;;  %v2148_v56 = vmul.f32 %v6222_v21, %v2095_v62 }
 0x206   : > { %v1834_v14 = vadd.f32 %v6292_v28, %v1810_v40 }
 0x209   : > { %5076 = vset.pattern.permute.xlu1 %v7416_v4  ;;  %v2183_v57 = vpop.permute.xlu1 %2182 }
 0x20a   : > { %1674 = vperm.xlu1 %5076, %v6135_v23   ;;  %v1639_v23 = vpop.permute.xlu0 %1638  ;;  %v2231_v19 = vmul.f32 %v6225_v33, %v2183_v57  ;;  %v5105_v57 = vld [vmem:[%s7355_s5 + $0xb0] sm:$0xff]  }
 0x20b   : > { %v1693_v39 = vmul.f32 %v6251_v53, %v1639_v23  ;;  %v2385_v23 = vmax.f32 %v2369_v52, 0.0  ;;  %v5107_v52 = vld [vmem:[%s7355_s5 + $0x30] sm:$0xff]  }
 0x20c   : > { %v2247_v40 = vadd.f32 %v2231_v19, %v2147_v44 }
 0x20d   : > { %v1709_v34 = vadd.f32 %v1693_v39, %v1609_v8 }
 0x20e   : > { %5078 = vset.pattern.permute.xlu1 %v7415_v29  ;;  %v6333_v36 = vpop.permute.xlu1 %1553  ;;  %v2187_v15 = vpop.permute.xlu0 %2186 }
 0x20f   : > { %2134 = vperm.xlu1 %5078, %v5147_v55   ;;  %v2232_v10 = vmul.f32 %v6225_v33, %v2187_v15  ;;  %v5102_v55 = vld [vmem:[%s7355_s5 + $0x78] sm:$0xff]  }
 0x210   : > { %4696 = vmatprep.subr.bf16.mxu0 %v5102_v55 }
 0x211   : > { %v2248_v0 = vadd.f32 %v2232_v10, %v2148_v56  ;;  %v5106_v56 = vld [vmem:[%s7355_s5 + $0x70] sm:$0xff]  }
 0x212   : > { %v1559_v11 = vpop.permute.xlu1 %1558  ;;  %v1647_v38 = vpop.permute.xlu0 %1646 }
 0x213   : > { %5079 = vset.pattern.permute.xlu1 %v7416_v4  ;;  %v1612_v1 = vmul.f32 %v6248_v60, %v1559_v11  ;;  %v5103_v11 = vld [vmem:[%s7355_s5 + $0x38] sm:$0xff]   ;;  %v1695_v15 = vmul.f32 %v6251_v53, %v1647_v38  ;;  %v2348_v39 = vadd.f32 %v2332_v37, %v2248_v0 }
 0x214   : > { %2214 = vperm.xlu1 %5079, %v6341_v3   ;;  %4697 = vmatpush3.bf16.msra.mxu0 %v5103_v11  ;;  %v5112_v11 = vld [vmem:[%s7355_s5 + $0xe0] sm:$0xff]  }
 0x215   : > { %4698 = vmatprep.subr.bf16.mxu0 %v5106_v56  ;;  %v2372_v37 = vadd.f32 %v6260_v16, %v2348_v39  ;;  %v5118_v39 = vld [vmem:[%s7355_s5 + $0x58] sm:$0xff]  }
 0x217   : > { %v1651_v46 = vpop.permute.xlu1 %1650  ;;  %v2388_v38 = vmax.f32 %v2372_v37, 0.0 }
 0x218   : > { %5080 = vset.pattern.permute.xlu1 %v7415_v29  ;;  %v1696_v30 = vmul.f32 %v6251_v53, %v1651_v46  ;;  %4699 = vmatpush3.bf16.msra.mxu0 %v5107_v52  ;;  %v5123_v52 = vld [vmem:[%s7355_s5 + $0x10] sm:$0xff]  }
 0x219   : > { %1593 = vperm.xlu1 %5080, %v6352_v27  }
 0x21a   : > { %v1712_v46 = vadd.f32 %v1696_v30, %v1612_v1 }
 0x21c   : > { %v2279_v51 = vpop.permute.xlu1 %2278  ;;  %v4854_v12 = vpop.f32.mrf.mxu1 }
 0x21d   : > { %v2330_v49 = vmul.f32 %v6234_v6, %v2279_v51  ;;  %1598 = vperm.xlu1 %5080, %v6176_v61   ;;  %v937_v50 = vadd.f32 %v4854_v12, %v6364_v45  ;;  %v1611_v51 = vmul.f32 %v6248_v60, %v6333_v36  ;;  %v5108_v36 = vld [vmem:[%s7355_s5 + $0xe8] sm:$0xff]  }
 0x21e   : > { %v6370_v26 = vpop.f32.mrf.mxu1 }
 0x21f   : > { %v2346_v54 = vadd.f32 %v2330_v49, %v2246_v25  ;;  %v969_v35 = vmax.f32 %v937_v50, 0.0 }
 0x220   : > { %v1739_v62 = vpop.permute.xlu1 %1738  ;;  %v4855_v63 = vpop.f32.mrf.mxu1 }
 0x221   : > { %v2370_v59 = vadd.f32 %v6260_v16, %v2346_v54  ;;  %v1793_v32 = vmul.f32 %v6270_v7, %v1739_v62  ;;  %v940_v13 = vadd.f32 %v4855_v63, %v6364_v45  ;;  %5082 = vset.pattern.permute.xlu1 %v7416_v4  ;;  %v5104_v4 = vld [vmem:[%s7355_s5 + $0xf0] sm:$0xff]   ;;  %v1850_v54 = vmax.f32 %v1834_v14, 0.0  ;;  %v5110_v62 = vld [vmem:[%s7355_s5 + $0x68] sm:$0xff]  }
 0x222   : > { %1682 = vperm.xlu1 %5082, %v6176_v61   ;;  %v6395_v2 = vpop.f32.mrf.mxu1  ;;  %v1796_v61 = vmul.f32 %v6270_v7, %v7485_v58  ;;  %4762 = vmatprep.subr.bf16.mxu1 %v5104_v4  ;;  %v1711_v63 = vadd.f32 %v1695_v15, %v1611_v51  ;;  %v5113_v4 = vld [vmem:[%s7355_s5 + $0xa0] sm:$0xff]   ;;  %v5117_v15 = vld [vmem:[%s7355_s5 + $0x98] sm:$0xff]   ;;  %v1655_v51 = vpop.permute.xlu0 %1654 }
 0x223   : > { %v2386_v42 = vmax.f32 %v2370_v59, 0.0  ;;  %v1809_v9 = vadd.f32 %v1793_v32, %v1709_v34  ;;  %v970_v20 = vmax.f32 %v940_v13, 0.0  ;;  %4763 = vmatpush3.bf16.msra.mxu1 %v5105_v57  ;;  %v5111_v32 = vld [vmem:[%s7355_s5 + $0x28] sm:$0xff]   ;;  %4700 = vmatprep.subr.bf16.mxu0 %v5110_v62 }
 0x224   : > { %v2283_v10 = vpop.permute.xlu1 %2282  ;;  %v4858_v8 = vpop.f32.mrf.mxu1  ;;  %v1812_v50 = vadd.f32 %v1796_v61, %v1712_v46  ;;  %4764 = vmatprep.subr.bf16.mxu1 %v5108_v36  ;;  %4701 = vmatpush3.bf16.msra.mxu0 %v5111_v32  ;;  %v5116_v61 = vld [vmem:[%s7355_s5 + $0xd8] sm:$0xff]   ;;  %v5125_v36 = vld [vmem:[%s7355_s5 + $0x88] sm:$0xff]  }
 0x225   : > { %v2399_v12 = vpack.c.bf16 %v2386_v42, %v2385_v23  ;;  %v1833_v25 = vadd.f32 %v6292_v28, %v1809_v9  ;;  %v6414_v49 = vpack.c.bf16 %v970_v20, %v969_v35  ;;  %v2331_v30 = vmul.f32 %v6234_v6, %v2283_v10  ;;  %v5114_v35 = vld [vmem:[%s7355_s5 + $0x60] sm:$0xff]  }
 0x226   : > { %5083 = vset.pattern.permute.xlu1 %v7426_v43  ;;  %v6421_v41 = vpop.f32.mrf.mxu1  ;;  %v953_v22 = vadd.f32 %v4858_v8, %v6364_v45  ;;  %v5109_v43 = vld [vmem:[%s7355_s5 + $0xa8] sm:$0xff]   ;;  %v1836_v23 = vadd.f32 %v6292_v28, %v1812_v50  ;;  %4702 = vmatprep.subr.bf16.mxu0 %v5114_v35  ;;  %v5119_v8 = vld [vmem:[%s7355_s5 + $0x18] sm:$0xff]   ;;  %v1663_v50 = vpop.permute.xlu0 %1662 }
 0x227   : > { %v1849_v31 = vmax.f32 %v1833_v25, 0.0  ;;  %2310 = vperm.xlu1 %5083, %v6319_v47   ;;  %4920 = vmatprep.mubr.msk.bf16.mxu1 %vm837_vm0, %v2399_v12  ;;  %v2347_v34 = vadd.f32 %v2331_v30, %v2247_v40  ;;  %v5121_v12 = vld [vmem:[%s7355_s5 + $0x90] sm:$0xff]  }
 0x228   : > { %v1747_v0 = vpop.permute.xlu1 %1746  ;;  %v4859_v1 = vpop.f32.mrf.mxu1  ;;  %4765 = vmatpush3.bf16.msra.mxu1 %v5109_v43  ;;  %v973_v14 = vmax.f32 %v953_v22, 0.0  ;;  %v1852_v48 = vmax.f32 %v1836_v23, 0.0  ;;  %v5122_v25 = vld [vmem:[%s7355_s5 + $0x50] sm:$0xff]   ;;  %v5128_v43 = vld [vmem:[%s7355_s5 + $0xc0] sm:$0xff]  }
 0x229   : > { %v1863_v55 = vpack.c.bf16 %v1850_v54, %v1849_v31  ;;  %v1795_v47 = vmul.f32 %v6270_v7, %v1747_v0  ;;  %v956_v59 = vadd.f32 %v4859_v1, %v6364_v45  ;;  %v2371_v13 = vadd.f32 %v6260_v16, %v2347_v34  ;;  %4766 = vmatprep.subr.bf16.mxu1 %v5112_v11  ;;  %v5126_v54 = vld [vmem:[%s7355_s5 + $0x48] sm:$0xff]   ;;  %v5129_v34 = vld [vmem:[%s7355_s5 + $0x80] sm:$0xff]  }
 0x22a   : > { %v6490_v40 = vpop.f32.mrf.mxu1  ;;  %v5127_v31 = vld [vmem:[%s7355_s5 + $0x8] sm:$0xff]   ;;  %v5130_v0 = vld [vmem:[%s7355_s5 + $0x40] sm:$0xff]  }
 0x22b   : > { %v1811_v19 = vadd.f32 %v1795_v47, %v1711_v63  ;;  %v974_v46 = vmax.f32 %v956_v59, 0.0  ;;  %1770 = vperm.xlu1 %5083, %v6326_v17   ;;  %4896 = vmatprep.mubr.msk.bf16.mxu0 %vm837_vm0, %v1863_v55  ;;  %v2387_v42 = vmax.f32 %v2371_v13, 0.0  ;;  %v5115_v17 = vld [vmem:[%s7355_s5 + $0x20] sm:$0xff]   ;;  %v6520_v63 = vpop.permute.xlu0 %2210 }
 0x22c   : > { %4767 = vmatpush3.bf16.msra.mxu1 %v5113_v4  ;;  %4703 = vmatpush3.bf16.msra.mxu0 %v5115_v17  ;;  %v6504_v22 = vpop.f32.mrf.mxu1  ;;  %v5131_v1 = vld [vmem:[%s7355_s5] sm:$0xff]  }
 0x22d   : > { %v1835_v9 = vadd.f32 %v6292_v28, %v1811_v19  ;;  %v6455_v20 = vpack.c.bf16 %v974_v46, %v973_v14  ;;  %v6457_v57 = vpop.permute.xlu1 %2099  ;;  %v2400_v58 = vpack.c.bf16 %v2388_v38, %v2387_v42  ;;  %4768 = vmatprep.subr.bf16.mxu1 %v5116_v61  ;;  %4704 = vmatprep.subr.bf16.mxu0 %v5118_v39 }
 0x22e   : > { %v6518_v62 = vpop.f32.mrf.mxu1 }
 0x22f   : > { %v1851_v44 = vmax.f32 %v1835_v9, 0.0  ;;  %2314 = vperm.xlu1 %5083, %v6341_v3   ;;  %4921 = vmatmul.mubr.msk.bf16.gmra.mxu1 %vm837_vm0, %v2400_v58  ;;  %v5120_v3 = vld [vmem:[%s7355_s5 + $0xd0] sm:$0xff]   ;;  %v6524_v59 = vpop.permute.xlu0 %1670  ;;  %v7487_v9 = vld [vmem:[#allocation42_spill] sm:$0xff] }
 0x230   : > { %4769 = vmatpush3.bf16.msra.mxu1 %v5117_v15  ;;  %4705 = vmatpush3.bf16.msra.mxu0 %v5119_v8  ;;  %v6522_v47 = vpop.f32.mrf.mxu1  ;;  %v2150_v17 = vmul.f32 %v6222_v21, %v7487_v9  ;;  %v2149_v8 = vmul.f32 %v6222_v21, %v6457_v57 }
 0x231   : > { %v1864_v10 = vpack.c.bf16 %v1852_v48, %v1851_v44  ;;  %4770 = vmatprep.subr.bf16.mxu1 %v5120_v3  ;;  %4706 = vmatprep.subr.bf16.mxu0 %v5122_v25  ;;  %v7488_v25 = vld [vmem:[#allocation45_spill] sm:$0xff] }
 0x232   : > { %v2191_v56 = vpop.permute.xlu1 %2190  ;;  %v6526_v13 = vpop.f32.mrf.mxu1 }
 0x233   : > { %1778 = vperm.xlu1 %5083, %v6352_v27   ;;  %4897 = vmatmul.mubr.msk.bf16.gmra.mxu0 %vm837_vm0, %v1864_v10  ;;  %v5124_v27 = vld [vmem:[%s7355_s5 + $0xc8] sm:$0xff]   ;;  %v6530_v14 = vpop.permute.xlu0 %2218  ;;  %v2233_v39 = vmul.f32 %v6225_v33, %v2191_v56 }
 0x234   : > { %4771 = vmatpush3.bf16.msra.mxu1 %v5121_v12  ;;  %4707 = vmatpush3.bf16.msra.mxu0 %v5123_v52  ;;  %v6528_v11 = vpop.f32.mrf.mxu1  ;;  %v1613_v52 = vmul.f32 %v6248_v60, %v7488_v25 }
 0x235   : > { %4772 = vmatprep.subr.bf16.mxu1 %v5124_v27  ;;  %4708 = vmatprep.subr.bf16.mxu0 %v5126_v54 }
 0x236   : > { %v2195_v30 = vpop.permute.xlu1 %2194  ;;  %v6532_v19 = vpop.f32.mrf.mxu1 }
 0x237   : > { %v6534_v4 = vpop.permute.xlu0 %1678  ;;  %v2234_v35 = vmul.f32 %v6225_v33, %v2195_v30  ;;  %v1697_v30 = vmul.f32 %v6251_v53, %v1655_v51 }
 0x238   : > { %4773 = vmatpush3.bf16.msra.mxu1 %v5125_v36  ;;  %4709 = vmatpush3.bf16.msra.mxu0 %v5127_v31  ;;  %v6536_v38 = vpop.f32.mrf.mxu1  ;;  %v2249_v36 = vadd.f32 %v2233_v39, %v2149_v8 }
 0x239   : > { %4774 = vmatprep.subr.bf16.mxu1 %v5128_v43  ;;  %4710 = vmatprep.subr.bf16.mxu0 %v5130_v0  ;;  %v2250_v44 = vadd.f32 %v2234_v35, %v2150_v17 }
 0x23a   : > { %v6541_v58 = vpop.f32.mrf.mxu1 }
 0x23b   : > { %v1569_v37 = vpop.permute.xlu1 %1568  ;;  %v2295_v61 = vpop.permute.xlu0 %2294 }
 0x23c   : > { %4775 = vmatpush3.bf16.msra.mxu1 %v5129_v34  ;;  %4711 = vmatpush3.bf16.msra.mxu0 %v5131_v1  ;;  %v2334_v48 = vmul.f32 %v6234_v6, %v2295_v61  ;;  %v6545_v10 = vpop.f32.mrf.mxu1  ;;  %v1713_v1 = vadd.f32 %v1697_v30, %v1613_v52  ;;  %v7489_v61 = vld [vmem:[#allocation48_spill] sm:$0xff] }
 0x23e   : > { %v2350_v3 = vadd.f32 %v2334_v48, %v2250_v44  ;;  %v6552_v54 = vpop.f32.mrf.mxu1  ;;  %v1615_v48 = vmul.f32 %v6248_v60, %v7489_v61 }
 0x23f   : > { %v2299_v27 = vpop.permute.xlu0 %2298 }
 0x240   : > { %v1659_v55 = vpop.permute.xlu1 %1658  ;;  %v2374_v43 = vadd.f32 %v6260_v16, %v2350_v3  ;;  %v6559_v9 = vpop.f32.mrf.mxu1  ;;  %v2335_v44 = vmul.f32 %v6234_v6, %v2299_v27  ;;  %v1614_v3 = vmul.f32 %v6248_v60, %v1569_v37 }
 0x241   : > { %v1698_v35 = vmul.f32 %v6251_v53, %v1659_v55 }
 0x242   : > { %v6568_v30 = vpop.f32.mrf.mxu1 }
 0x243   : > { %v1763_v8 = vpop.permute.xlu0 %1762  ;;  %v1714_v52 = vadd.f32 %v1698_v35, %v1614_v3 }
 0x245   : > { %v2110_v32 = vpop.permute.xlu1 %2109 }
 0x246   : > { %v2151_v57 = vmul.f32 %v6222_v21, %v2110_v32  ;;  %v2390_v32 = vmax.f32 %v2374_v43, 0.0 }
 0x24a   : > { %v2199_v23 = vpop.permute.xlu1 %2198 }
 0x24b   : > { %v2235_v56 = vmul.f32 %v6225_v33, %v2199_v23  ;;  %v1699_v23 = vmul.f32 %v6251_v53, %v1663_v50  ;;  %v1799_v50 = vmul.f32 %v6270_v7, %v1763_v8 }
 0x24d   : > { %v2251_v39 = vadd.f32 %v2235_v56, %v2151_v57  ;;  %v7490_v56 = vld [vmem:[#allocation46_spill] sm:$0xff] }
 0x24e   : > { %v2203_v46 = vpop.permute.xlu1 %2202  ;;  %v2152_v43 = vmul.f32 %v6222_v21, %v7490_v56 }
 0x24f   : > { %v2351_v27 = vadd.f32 %v2335_v44, %v2251_v39 }
 0x251   : > { %v2375_v39 = vadd.f32 %v6260_v16, %v2351_v27 }
 0x253   : > { %v1579_v42 = vpop.permute.xlu1 %1578 }
 0x258   : > { %v1667_v15 = vpop.permute.xlu1 %1666 }
 0x25d   : > { %v2291_v12 = vpop.permute.xlu1 %2290 }
 0x25e   : > { %v2333_v31 = vmul.f32 %v6234_v6, %v2291_v12 }
 0x260   : > { %v2349_v34 = vadd.f32 %v2333_v31, %v2249_v36  ;;  %v2236_v36 = vmul.f32 %v6225_v33, %v2203_v46  ;;  %v6580_v46 = vld [vmem:[%s7354_s4 + $0x1] ss:$0 sm:$0xff] }
 0x261   : > { %v1755_v0 = vpop.permute.xlu1 %1754 }
 0x262   : > { %v2373_v51 = vadd.f32 %v6260_v16, %v2349_v34  ;;  %v1797_v17 = vmul.f32 %v6270_v7, %v1755_v0  ;;  %v1715_v0 = vadd.f32 %v1699_v23, %v1615_v48 }
 0x264   : > { %v2389_v12 = vmax.f32 %v2373_v51, 0.0  ;;  %v1813_v55 = vadd.f32 %v1797_v17, %v1713_v1  ;;  %v2252_v51 = vadd.f32 %v2236_v36, %v2152_v43  ;;  %v1700_v17 = vmul.f32 %v6251_v53, %v1667_v15 }
 0x265   : > { %v1759_v25 = vpop.permute.xlu1 %1758  ;;  %v1815_v44 = vadd.f32 %v1799_v50, %v1715_v0  ;;  %v2391_v43 = vmax.f32 %v2375_v39, 0.0 }
 0x266   : > { %v2401_v31 = vpack.c.bf16 %v2390_v32, %v2389_v12  ;;  %v1798_v34 = vmul.f32 %v6270_v7, %v1759_v25  ;;  %v1837_v37 = vadd.f32 %v6292_v28, %v1813_v55  ;;  %v1616_v32 = vmul.f32 %v6248_v60, %v1579_v42 }
 0x267   : > { %v1839_v27 = vadd.f32 %v6292_v28, %v1815_v44 }
 0x268   : > { %v1814_v57 = vadd.f32 %v1798_v34, %v1714_v52  ;;  %4924 = vmatprep.mubr.msk.bf16.mxu1 %vm837_vm0, %v2401_v31  ;;  %v4882_v1 = vpop.f32.mrf.mxu1  ;;  %v1853_v3 = vmax.f32 %v1837_v37, 0.0  ;;  %v1716_v36 = vadd.f32 %v1700_v17, %v1616_v32 }
 0x269   : > { %v2303_v35 = vpop.permute.xlu1 %2302  ;;  %v1489_v8 = vadd.f32 %v4882_v1, %v6580_v46  ;;  %v1855_v17 = vmax.f32 %v1839_v27, 0.0 }
 0x26a   : > { %v1838_v61 = vadd.f32 %v6292_v28, %v1814_v57  ;;  %v2336_v48 = vmul.f32 %v6234_v6, %v2303_v35  ;;  %v6585_v23 = vpop.f32.mrf.mxu1 }
 0x26b   : > { %v1509_v0 = vmax.f32 %v1489_v8, 0.0 }
 0x26c   : > { %v1854_v12 = vmax.f32 %v1838_v61, 0.0  ;;  %v2352_v55 = vadd.f32 %v2336_v48, %v2252_v51  ;;  %v4883_v25 = vpop.f32.mrf.mxu1 }
 0x26d   : > { %v1492_v52 = vadd.f32 %v4883_v25, %v6580_v46  ;;  %v1767_v15 = vpop.permute.xlu1 %1766  ;;  %v6600_v25 = vpop.f32.mrf.mxu0 }
 0x26e   : > { %v1865_v31 = vpack.c.bf16 %v1854_v12, %v1853_v3  ;;  %v2376_v34 = vadd.f32 %v6260_v16, %v2352_v55  ;;  %v1800_v56 = vmul.f32 %v6270_v7, %v1767_v15  ;;  %v2307_v15 = vpop.permute.xlu0 %2306 }
 0x26f   : > { %v1510_v50 = vmax.f32 %v1492_v52, 0.0 }
 0x270   : > { %v2392_v57 = vmax.f32 %v2376_v34, 0.0  ;;  %v1816_v42 = vadd.f32 %v1800_v56, %v1716_v36  ;;  %4900 = vmatprep.mubr.msk.bf16.mxu0 %vm837_vm0, %v1865_v31  ;;  %v6603_v31 = vpop.f32.mrf.mxu0  ;;  %v7491_v34 = vld [vmem:[#allocation50_spill] sm:$0xff] }
 0x271   : > { %v6595_v37 = vpack.c.bf16 %v1510_v50, %v1509_v0  ;;  %v2153_v56 = vmul.f32 %v6222_v21, %v7491_v34  ;;  %v2337_v50 = vmul.f32 %v6234_v6, %v2307_v15 }
 0x272   : > { %v2402_v1 = vpack.c.bf16 %v2392_v57, %v2391_v43  ;;  %v1840_v35 = vadd.f32 %v6292_v28, %v1816_v42  ;;  %v2125_v51 = vpop.permute.xlu1 %2124  ;;  %v1775_v43 = vpop.permute.xlu0 %1774 }
 0x273   : > { %v6609_v57 = vpop.f32.mrf.mxu0 }
 0x274   : > { %v1856_v61 = vmax.f32 %v1840_v35, 0.0  ;;  %4925 = vmatmul.mubr.msk.bf16.gmra.mxu1 %vm837_vm0, %v2402_v1  ;;  %v2154_v35 = vmul.f32 %v6222_v21, %v2125_v51 }
 0x276   : > { %v1866_v48 = vpack.c.bf16 %v1856_v61, %v1855_v17 }
 0x277   : > { %v2207_v8 = vpop.permute.xlu1 %2206 }
 0x278   : > { %4901 = vmatmul.mubr.msk.bf16.gmra.mxu0 %vm837_vm0, %v1866_v48  ;;  %v2237_v52 = vmul.f32 %v6225_v33, %v2207_v8  ;;  %v1802_v48 = vmul.f32 %v6270_v7, %v1775_v43  ;;  %v2238_v8 = vmul.f32 %v6225_v33, %v6520_v63 }
 0x27a   : > { %v2253_v0 = vadd.f32 %v2237_v52, %v2153_v56  ;;  %v6616_v52 = vpop.f32.mrf.mxu0  ;;  %v2240_v56 = vmul.f32 %v6225_v33, %v6530_v14 }
 0x27c   : > { %v1584_v44 = vpop.permute.xlu1 %1583  ;;  %v2353_v17 = vadd.f32 %v2337_v50, %v2253_v0  ;;  %v6621_v18 = vpop.f32.mrf.mxu0  ;;  %v1701_v50 = vmul.f32 %v6251_v53, %v6524_v59 }
 0x27d   : > { %v1617_v51 = vmul.f32 %v6248_v60, %v1584_v44 }
 0x27e   : > { %v2377_v63 = vadd.f32 %v6260_v16, %v2353_v17 }
 0x27f   : > { %v1717_v44 = vadd.f32 %v1701_v50, %v1617_v51  ;;  %v6640_v50 = vpop.f32.mrf.mxu1 }
 0x280   : > { %v1589_v39 = vpop.permute.xlu1 %1588 }
 0x281   : > { %v1618_v1 = vmul.f32 %v6248_v60, %v1589_v39  ;;  %v2254_v39 = vadd.f32 %v2238_v8, %v2154_v35  ;;  %v6631_v35 = vpop.f32.mrf.mxu0 }
 0x285   : > { %v1675_v32 = vpop.permute.xlu1 %1674 }
 0x286   : > { %v1702_v27 = vmul.f32 %v6251_v53, %v1675_v32  ;;  %v2319_v32 = vpop.permute.xlu0 %2318 }
 0x288   : > { %v1718_v61 = vadd.f32 %v1702_v27, %v1618_v1 }
 0x28a   : > { %v2135_v3 = vpop.permute.xlu1 %2134  ;;  %v1818_v27 = vadd.f32 %v1802_v48, %v1718_v61  ;;  %v1783_v8 = vpop.permute.xlu0 %1782  ;;  %v7492_v61 = vld [vmem:[#allocation51_spill] sm:$0xff] }
 0x28b   : > { %v2156_v15 = vmul.f32 %v6222_v21, %v2135_v3  ;;  %v2340_v3 = vmul.f32 %v6234_v6, %v2319_v32  ;;  %v2155_v48 = vmul.f32 %v6222_v21, %v7492_v61  ;;  %v1804_v51 = vmul.f32 %v6270_v7, %v1783_v8 }
 0x28d   : > { %v2256_v43 = vadd.f32 %v2240_v56, %v2156_v15  ;;  %v2393_v15 = vmax.f32 %v2377_v63, 0.0 }
 0x28f   : > { %v2215_v12 = vpop.permute.xlu1 %2214  ;;  %v2356_v32 = vadd.f32 %v2340_v3, %v2256_v43 }
 0x290   : > { %v2239_v14 = vmul.f32 %v6225_v33, %v2215_v12 }
 0x291   : > { %v2380_v3 = vadd.f32 %v6260_v16, %v2356_v32 }
 0x294   : > { %v1594_v55 = vpop.permute.xlu1 %1593 }
 0x298   : > { %v1599_v36 = vpop.permute.xlu1 %1598 }
 0x29d   : > { %v1683_v42 = vpop.permute.xlu1 %1682 }
 0x29e   : > { %v1704_v1 = vmul.f32 %v6251_v53, %v1683_v42  ;;  %v1842_v42 = vadd.f32 %v6292_v28, %v1818_v27  ;;  %v1703_v27 = vmul.f32 %v6251_v53, %v6534_v4  ;;  %v1436_v53 = vadd.f32 %v6580_v46, %v6526_v13 }
 0x29f   : > { %v2396_v4 = vmax.f32 %v2380_v3, 0.0 }
 0x2a0   : > { %v1858_v43 = vmax.f32 %v1842_v42, 0.0  ;;  %v6661_v42 = vld [vmem:[%s7354_s4 + $0x3] ss:$0 sm:$0xff] }
 0x2a2   : > { %v2311_v34 = vpop.permute.xlu1 %2310 }
 0x2a3   : > { %v2338_v0 = vmul.f32 %v6234_v6, %v2311_v34  ;;  %v1620_v34 = vmul.f32 %v6248_v60, %v1599_v36  ;;  %v6642_v36 = vpop.f32.mrf.mxu0 }
 0x2a5   : > { %v2354_v24 = vadd.f32 %v2338_v0, %v2254_v39  ;;  %v1720_v56 = vadd.f32 %v1704_v1, %v1620_v34  ;;  %v2255_v39 = vadd.f32 %v2239_v14, %v2155_v48 }
 0x2a6   : > { %v1771_v5 = vpop.permute.xlu1 %1770 }
 0x2a7   : > { %v2378_v59 = vadd.f32 %v6260_v16, %v2354_v24  ;;  %v1801_v17 = vmul.f32 %v6270_v7, %v1771_v5  ;;  %v1619_v5 = vmul.f32 %v6248_v60, %v1594_v55  ;;  %v1820_v1 = vadd.f32 %v1804_v51, %v1720_v56 }
 0x2a9   : > { %v2394_v33 = vmax.f32 %v2378_v59, 0.0  ;;  %v1817_v12 = vadd.f32 %v1801_v17, %v1717_v44  ;;  %v6651_v59 = vpop.f32.mrf.mxu0  ;;  %v1719_v60 = vadd.f32 %v1703_v27, %v1619_v5  ;;  %v1844_v48 = vadd.f32 %v6292_v28, %v1820_v1 }
 0x2aa   : > { %v2315_v0 = vpop.permute.xlu1 %2314 }
 0x2ab   : > { %v2403_v24 = vpack.c.bf16 %v2394_v33, %v2393_v15  ;;  %v1841_v21 = vadd.f32 %v6292_v28, %v1817_v12  ;;  %v2339_v63 = vmul.f32 %v6234_v6, %v2315_v0  ;;  %v1496_v0 = vmax.f32 %v1436_v53, 0.0 }
 0x2ac   : > { %v897_v53 = vadd.f32 %v6364_v45, %v6603_v31 }
 0x2ad   : > { %v1857_v14 = vmax.f32 %v1841_v21, 0.0  ;;  %v2355_v44 = vadd.f32 %v2339_v63, %v2255_v39  ;;  %4928 = vmatprep.mubr.msk.bf16.mxu1 %vm837_vm0, %v2403_v24  ;;  %v4918_v8 = vpop.f32.mrf.mxu1  ;;  %v1860_v24 = vmax.f32 %v1844_v48, 0.0  ;;  %v6672_v63 = vld [vmem:[%s7354_s4 + $0x2] ss:$0 sm:$0xff] }
 0x2ae   : > { %v1779_v34 = vpop.permute.xlu1 %1778 }
 0x2af   : > { %v1867_v55 = vpack.c.bf16 %v1858_v43, %v1857_v14  ;;  %v2379_v17 = vadd.f32 %v6260_v16, %v2355_v44  ;;  %v1803_v6 = vmul.f32 %v6270_v7, %v1779_v34  ;;  %v2504_v61 = vpop.f32.mrf.mxu1  ;;  %v1433_v7 = vadd.f32 %v6580_v46, %v6518_v62 }
 0x2b0   : > { %v2505_v33 = vadd.f32 %v6661_v42, %v2504_v61  ;;  %v900_v14 = vadd.f32 %v6364_v45, %v6616_v52  ;;  %v2513_v44 = vadd.f32 %v4918_v8, %v6661_v42  ;;  %v1441_v52 = vadd.f32 %v6504_v22, %v6580_v46 }
 0x2b1   : > { %v2395_v15 = vmax.f32 %v2379_v17, 0.0  ;;  %v1819_v32 = vadd.f32 %v1803_v6, %v1719_v60  ;;  %4904 = vmatprep.mubr.msk.bf16.mxu0 %vm837_vm0, %v1867_v55  ;;  %v4894_v56 = vpop.f32.mrf.mxu0  ;;  %v4919_v16 = vpop.f32.mrf.mxu1  ;;  %v1495_v43 = vmax.f32 %v1433_v7, 0.0  ;;  %v1444_v55 = vadd.f32 %v6522_v47, %v6580_v46 }
 0x2b2   : > { %v2516_v27 = vadd.f32 %v4919_v16, %v6661_v42  ;;  %v2567_v3 = vmax.f32 %v2505_v33, 0.0  ;;  %v959_v33 = vmax.f32 %v897_v53, 0.0  ;;  %v1977_v31 = vadd.f32 %v4894_v56, %v6672_v63 }
 0x2b3   : > { %v2404_v13 = vpack.c.bf16 %v2396_v4, %v2395_v15  ;;  %v1843_v12 = vadd.f32 %v6292_v28, %v1819_v32  ;;  %v1968_v39 = vpop.f32.mrf.mxu0  ;;  %v2507_v51 = vpop.f32.mrf.mxu1  ;;  %v1511_v61 = vpack.c.bf16 %v1496_v0, %v1495_v43  ;;  %v960_v15 = vmax.f32 %v900_v14, 0.0 }
 0x2b4   : > { %v2508_v5 = vadd.f32 %v6661_v42, %v2507_v51  ;;  %v1969_v28 = vadd.f32 %v6672_v63, %v1968_v39  ;;  %v2570_v4 = vmax.f32 %v2516_v27, 0.0  ;;  %v2569_v32 = vmax.f32 %v2513_v44, 0.0 }
 0x2b5   : > { %v1859_v21 = vmax.f32 %v1843_v12, 0.0  ;;  %4929 = vmatmul.mubr.msk.bf16.gmra.mxu1 %vm837_vm0, %v2404_v13  ;;  %v4895_v62 = vpop.f32.mrf.mxu0  ;;  %v1498_v47 = vmax.f32 %v1444_v55, 0.0  ;;  %v1497_v12 = vmax.f32 %v1441_v52, 0.0  ;;  %v908_v39 = vadd.f32 %v6609_v57, %v6364_v45 }
 0x2b6   : > { %v2568_v1 = vmax.f32 %v2508_v5, 0.0  ;;  %v2031_v48 = vmax.f32 %v1969_v28, 0.0  ;;  %v1980_v16 = vadd.f32 %v4895_v62, %v6672_v63  ;;  %v2584_v13 = vpack.c.bf16 %v2570_v4, %v2569_v32 }
 0x2b7   : > { %v1868_v34 = vpack.c.bf16 %v1860_v24, %v1859_v21  ;;  %v1971_v60 = vpop.f32.mrf.mxu0  ;;  %v975_v22 = vpack.c.bf16 %v960_v15, %v959_v33  ;;  %v1512_v51 = vpack.c.bf16 %v1498_v47, %v1497_v12  ;;  %v1452_v0 = vadd.f32 %v6580_v46, %v6541_v58 }
 0x2b8   : > { %v2583_v17 = vpack.c.bf16 %v2568_v1, %v2567_v3  ;;  %v1972_v6 = vadd.f32 %v6672_v63, %v1971_v60  ;;  %v2034_v5 = vmax.f32 %v1980_v16, 0.0  ;;  %v905_v24 = vadd.f32 %v6600_v25, %v6364_v45 }
 0x2b9   : > { %4905 = vmatmul.mubr.msk.bf16.gmra.mxu0 %vm837_vm0, %v1868_v34  ;;  %v1449_v21 = vadd.f32 %v6580_v46, %v6532_v19  ;;  %v2033_v27 = vmax.f32 %v1977_v31, 0.0  ;;  %v962_v56 = vmax.f32 %v908_v39, 0.0  ;;  %v1500_v62 = vmax.f32 %v1452_v0, 0.0 }
 0x2ba   : > { %v2032_v8 = vmax.f32 %v1972_v6, 0.0  ;;  %2886 = vmatprep.mubr.bf16.mxu0 %v1511_v61  ;;  %2983 = vmatprep.mubr.bf16.mxu1 %v2583_v17  ;;  %v961_v57 = vmax.f32 %v905_v24, 0.0  ;;  %v916_v58 = vadd.f32 %v6364_v45, %v6651_v59  ;;  %v1460_v1 = vadd.f32 %v6536_v38, %v6580_v46 }
 0x2bb   : > { %v2048_v43 = vpack.c.bf16 %v2034_v5, %v2033_v27  ;;  %v1499_v3 = vmax.f32 %v1449_v21, 0.0  ;;  %v913_v14 = vadd.f32 %v6364_v45, %v6631_v35  ;;  %v1457_v19 = vadd.f32 %v6528_v11, %v6580_v46 }
 0x2bc   : > { %v2047_v7 = vpack.c.bf16 %v2032_v8, %v2031_v48  ;;  %v976_v28 = vpack.c.bf16 %v962_v56, %v961_v57  ;;  %v964_v44 = vmax.f32 %v916_v58, 0.0  ;;  %v1502_v34 = vmax.f32 %v1460_v1, 0.0 }
 0x2bd   : > { %v1513_v25 = vpack.c.bf16 %v1500_v62, %v1499_v3  ;;  %v963_v60 = vmax.f32 %v913_v14, 0.0  ;;  %v1501_v55 = vmax.f32 %v1457_v19, 0.0  ;;  %v924_v17 = vadd.f32 %v6642_v36, %v6364_v45 }
 0x2be   : > { %2984 = vmatmul.mubr.bf16.vlgmr.msra.gmra.mxu1 %v2047_v7  ;;  %v1468_v38 = vadd.f32 %v6580_v46, %v6568_v30  ;;  %v921_v35 = vadd.f32 %v6621_v18, %v6364_v45  ;;  %v1465_v11 = vadd.f32 %v6580_v46, %v6552_v54  ;;  %v932_v36 = vadd.f32 %v6364_v45, %v6395_v2 }
 0x2bf   : > { %2991 = vmatprep.mubr.bf16.mxu1 %v2584_v13  ;;  %v977_v59 = vpack.c.bf16 %v964_v44, %v963_v60  ;;  %v1514_v6 = vpack.c.bf16 %v1502_v34, %v1501_v55  ;;  %v966_v61 = vmax.f32 %v924_v17, 0.0  ;;  %v1476_v8 = vadd.f32 %v6559_v9, %v6580_v46  ;;  %v5133_v17 = vld [vmem:[%s7357_s7 + $0x10] sm:$0xff]  }
 0x2c0   : > { %v1504_v53 = vmax.f32 %v1468_v38, 0.0  ;;  %v965_v4 = vmax.f32 %v921_v35, 0.0  ;;  %v1503_v52 = vmax.f32 %v1465_v11, 0.0  ;;  %v929_v18 = vadd.f32 %v6364_v45, %v6370_v26 }
 0x2c1   : > { %2887 = vmatmul.mubr.bf16.vlgmr.msra.gmra.mxu0 %v975_v22  ;;  %v1473_v54 = vadd.f32 %v6545_v10, %v6580_v46  ;;  %v968_v15 = vmax.f32 %v932_v36, 0.0  ;;  %v1506_v32 = vmax.f32 %v1476_v8, 0.0  ;;  %v1484_v2 = vadd.f32 %v6580_v46, %v6640_v50 }
 0x2c2   : > { %2894 = vmatprep.mubr.bf16.mxu0 %v1512_v51  ;;  %v978_v48 = vpack.c.bf16 %v966_v61, %v965_v4  ;;  %v1515_v30 = vpack.c.bf16 %v1504_v53, %v1503_v52  ;;  %v967_v47 = vmax.f32 %v929_v18, 0.0  ;;  %v1481_v9 = vadd.f32 %v6580_v46, %v6585_v23 }
 0x2c3   : > { %v1505_v16 = vmax.f32 %v1473_v54, 0.0  ;;  %v1508_v26 = vmax.f32 %v1484_v2, 0.0  ;;  %v948_v10 = vadd.f32 %v6364_v45, %v6490_v40  ;;  %v945_v31 = vadd.f32 %v6364_v45, %v6421_v41 }
 0x2c4   : > { %v979_v7 = vpack.c.bf16 %v968_v15, %v967_v47  ;;  %v1507_v13 = vmax.f32 %v1481_v9, 0.0 }
 0x2c5   : > { %v1516_v33 = vpack.c.bf16 %v1506_v32, %v1505_v16  ;;  %v972_v39 = vmax.f32 %v948_v10, 0.0  ;;  %v971_v22 = vmax.f32 %v945_v31, 0.0 }
 0x2c6   : > { %2992 = vmatmul.mubr.bf16.gmra.mxu1 %v2048_v43  ;;  %v1517_v12 = vpack.c.bf16 %v1508_v26, %v1507_v13 }
 0x2c7   : > { %v981_v50 = vpack.c.bf16 %v972_v39, %v971_v22 }
 0x2c9   : > { %2895 = vmatmul.mubr.bf16.gmra.mxu0 %v976_v28 }
 0x2ca   : > { %2902 = vmatprep.mubr.bf16.mxu0 %v1513_v25 }
 0x2d1   : > { %2903 = vmatmul.mubr.bf16.gmra.mxu0 %v977_v59  ;;  %v5134_v59 = vld [vmem:[%s7357_s7 + $0x8] sm:$0xff]  }
 0x2d2   : > { %2910 = vmatprep.mubr.bf16.mxu0 %v1514_v6  ;;  %v5135_v6 = vld [vmem:[%s7357_s7] sm:$0xff]  }
 0x2d9   : > { %2911 = vmatmul.mubr.bf16.gmra.mxu0 %v978_v48 }
 0x2da   : > { %2918 = vmatprep.mubr.bf16.mxu0 %v1515_v30 }
 0x2e1   : > { %2919 = vmatmul.mubr.bf16.gmra.mxu0 %v979_v7 }
 0x2e2   : > { %2926 = vmatprep.mubr.bf16.mxu0 %v1516_v33 }
 0x2e9   : > { %2927 = vmatmul.mubr.bf16.gmra.mxu0 %v6414_v49 }
 0x2ea   : > { %2934 = vmatprep.mubr.bf16.mxu0 %v1517_v12 }
 0x2ef   : > { %v4922_v51 = vpop.f32.mrf.mxu1 }
 0x2f0   : > { %v2529_v27 = vadd.f32 %v4922_v51, %v6661_v42 }
 0x2f1   : > { %2935 = vmatmul.mubr.bf16.gmra.mxu0 %v981_v50  ;;  %v2520_v0 = vpop.f32.mrf.mxu1 }
 0x2f2   : > { %2942 = vmatprep.mubr.bf16.mxu0 %v6595_v37  ;;  %v2521_v5 = vadd.f32 %v6661_v42, %v2520_v0  ;;  %v2573_v1 = vmax.f32 %v2529_v27, 0.0 }
 0x2f3   : > { %v4898_v46 = vpop.f32.mrf.mxu0  ;;  %v4923_v23 = vpop.f32.mrf.mxu1 }
 0x2f4   : > { %v2532_v21 = vadd.f32 %v4923_v23, %v6661_v42  ;;  %v2571_v56 = vmax.f32 %v2521_v5, 0.0  ;;  %v1993_v44 = vadd.f32 %v4898_v46, %v6672_v63 }
 0x2f5   : > { %v1984_v40 = vpop.f32.mrf.mxu0  ;;  %v2523_v24 = vpop.f32.mrf.mxu1 }
 0x2f6   : > { %v2524_v45 = vadd.f32 %v6661_v42, %v2523_v24  ;;  %v1985_v41 = vadd.f32 %v6672_v63, %v1984_v40  ;;  %v2574_v57 = vmax.f32 %v2532_v21, 0.0  ;;  %v2037_v60 = vmax.f32 %v1993_v44, 0.0  ;;  %v6770_v44 = vld [vmem:[%s7356_s6] ss:$0 sm:$0xff] }
 0x2f7   : > { %v4899_v49 = vpop.f32.mrf.mxu0 }
 0x2f8   : > { %v2572_v62 = vmax.f32 %v2524_v45, 0.0  ;;  %v2035_v28 = vmax.f32 %v1985_v41, 0.0  ;;  %v1996_v25 = vadd.f32 %v4899_v49, %v6672_v63  ;;  %v2586_v19 = vpack.c.bf16 %v2574_v57, %v2573_v1 }
 0x2f9   : > { %v1987_v43 = vpop.f32.mrf.mxu0  ;;  %2943 = vmatmul.mubr.bf16.gmra.mxu0 %v6455_v20  ;;  %v5132_v20 = vld [vmem:[%s7357_s7 + $0x18] sm:$0xff]  }
 0x2fa   : > { %v1988_v37 = vadd.f32 %v6672_v63, %v1987_v43  ;;  %v2585_v3 = vpack.c.bf16 %v2572_v62, %v2571_v56  ;;  %v2038_v34 = vmax.f32 %v1996_v25, 0.0  ;;  %4932 = vmatprep.subr.bf16.mxu0 %v5132_v20 }
 0x2fb   : > { %4933 = vmatpush3.bf16.msra.mxu0 %v5132_v20 }
 0x2fc   : > { %v2036_v58 = vmax.f32 %v1988_v37, 0.0  ;;  %2999 = vmatprep.mubr.bf16.mxu1 %v2585_v3  ;;  %v2050_v55 = vpack.c.bf16 %v2038_v34, %v2037_v60  ;;  %4934 = vmatprep.subr.bf16.mxu0 %v5133_v17 }
 0x2fe   : > { %v2049_v14 = vpack.c.bf16 %v2036_v58, %v2035_v28 }
 0x2ff   : > { %4935 = vmatpush3.bf16.msra.mxu0 %v5133_v17 }
 0x300   : > { %3000 = vmatmul.mubr.bf16.gmra.mxu1 %v2049_v14  ;;  %4936 = vmatprep.subr.bf16.mxu0 %v5134_v59 }
 0x301   : > { %3007 = vmatprep.mubr.bf16.mxu1 %v2586_v19 }
 0x303   : > { %4937 = vmatpush3.bf16.msra.mxu0 %v5134_v59 }
 0x304   : > { %4938 = vmatprep.subr.bf16.mxu0 %v5135_v6 }
 0x307   : > { %4939 = vmatpush3.bf16.msra.mxu0 %v5135_v6 }
 0x308   : > { %3008 = vmatmul.mubr.bf16.gmra.mxu1 %v2050_v55 }
 0x334   : > { %v4926_v38 = vpop.f32.mrf.mxu1 }
 0x335   : > { %v2545_v15 = vadd.f32 %v4926_v38, %v6661_v42 }
 0x336   : > { %v2536_v35 = vpop.f32.mrf.mxu1 }
 0x337   : > { %v2537_v53 = vadd.f32 %v6661_v42, %v2536_v35  ;;  %v2577_v9 = vmax.f32 %v2545_v15, 0.0 }
 0x338   : > { %v4902_v11 = vpop.f32.mrf.mxu0  ;;  %v4927_v61 = vpop.f32.mrf.mxu1 }
 0x339   : > { %v2548_v48 = vadd.f32 %v4927_v61, %v6661_v42  ;;  %v2575_v30 = vmax.f32 %v2537_v53, 0.0  ;;  %v2009_v12 = vadd.f32 %v4902_v11, %v6672_v63 }
 0x33a   : > { %v2000_v4 = vpop.f32.mrf.mxu0  ;;  %v2539_v52 = vpop.f32.mrf.mxu1 }
 0x33b   : > { %v2540_v36 = vadd.f32 %v6661_v42, %v2539_v52  ;;  %v2001_v18 = vadd.f32 %v6672_v63, %v2000_v4  ;;  %v2578_v7 = vmax.f32 %v2548_v48, 0.0  ;;  %v2041_v39 = vmax.f32 %v2009_v12, 0.0 }
 0x33c   : > { %v4903_v8 = vpop.f32.mrf.mxu0 }
 0x33d   : > { %v2576_v54 = vmax.f32 %v2540_v36, 0.0  ;;  %v2039_v33 = vmax.f32 %v2001_v18, 0.0  ;;  %v2012_v26 = vadd.f32 %v4903_v8, %v6672_v63  ;;  %v2588_v10 = vpack.c.bf16 %v2578_v7, %v2577_v9 }
 0x33e   : > { %v2003_v32 = vpop.f32.mrf.mxu0 }
 0x33f   : > { %v2587_v47 = vpack.c.bf16 %v2576_v54, %v2575_v30  ;;  %v2004_v16 = vadd.f32 %v6672_v63, %v2003_v32  ;;  %v2042_v31 = vmax.f32 %v2012_v26, 0.0 }
 0x341   : > { %v2040_v2 = vmax.f32 %v2004_v16, 0.0  ;;  %3015 = vmatprep.mubr.bf16.mxu1 %v2587_v47  ;;  %v2052_v22 = vpack.c.bf16 %v2042_v31, %v2041_v39 }
 0x343   : > { %v2051_v13 = vpack.c.bf16 %v2040_v2, %v2039_v33 }
 0x345   : > { %3016 = vmatmul.mubr.bf16.gmra.mxu1 %v2051_v13 }
 0x346   : > { %3023 = vmatprep.mubr.bf16.mxu1 %v2588_v10 }
 0x34d   : > { %3024 = vmatmul.mubr.bf16.gmra.mxu1 %v2052_v22 }
 0x375   : > { %v4930_v50 = vpop.f32.mrf.mxu1 }
 0x376   : > { %v2561_v62 = vadd.f32 %v4930_v50, %v6661_v42 }
 0x377   : > { %v2552_v51 = vpop.f32.mrf.mxu1 }
 0x378   : > { %v2553_v23 = vadd.f32 %v6661_v42, %v2552_v51  ;;  %v2581_v19 = vmax.f32 %v2561_v62, 0.0 }
 0x379   : > { %v4906_v0 = vpop.f32.mrf.mxu0  ;;  %v4931_v46 = vpop.f32.mrf.mxu1 }
 0x37a   : > { %v2564_v21 = vadd.f32 %v4931_v46, %v6661_v42  ;;  %v2579_v49 = vmax.f32 %v2553_v23, 0.0  ;;  %v2025_v6 = vadd.f32 %v4906_v0, %v6672_v63 }
 0x37b   : > { %v2016_v5 = vpop.f32.mrf.mxu0  ;;  %v2555_v40 = vpop.f32.mrf.mxu1 }
 0x37c   : > { %v2556_v24 = vadd.f32 %v6661_v42, %v2555_v40  ;;  %v2017_v41 = vadd.f32 %v6672_v63, %v2016_v5  ;;  %v2582_v28 = vmax.f32 %v2564_v21, 0.0  ;;  %v2045_v48 = vmax.f32 %v2025_v6, 0.0 }
 0x37d   : > { %v4907_v45 = vpop.f32.mrf.mxu0 }
 0x37e   : > { %v2580_v27 = vmax.f32 %v2556_v24, 0.0  ;;  %v4776_v56 = vpop.f32.mrf.mxu1  ;;  %v2043_v1 = vmax.f32 %v2017_v41, 0.0  ;;  %v2028_v42 = vadd.f32 %v4907_v45, %v6672_v63  ;;  %v2590_v17 = vpack.c.bf16 %v2582_v28, %v2581_v19  ;;  %v3133_v28 = vld [vmem:[%s7359_s9 + $0x1e0] sm:$0xff] }
 0x37f   : > { %v2019_v43 = vpop.f32.mrf.mxu0 }
 0x380   : > { %v2589_v37 = vpack.c.bf16 %v2580_v27, %v2579_v49  ;;  %v2020_v57 = vadd.f32 %v6672_v63, %v2019_v43  ;;  %v4777_v3 = vpop.f32.mrf.mxu1  ;;  %v2046_v61 = vmax.f32 %v2028_v42, 0.0 }
 0x381   : > { %v4712_v58 = vpop.f32.mrf.mxu0  ;;  %v4778_v53 = vadd.f32 %v4777_v3, %v4776_v56  ;;  %v3129_v3 = vld [vmem:[%s7359_s9 + $0x1c0] sm:$0xff] }
 0x382   : > { %v2044_v25 = vmax.f32 %v2020_v57, 0.0  ;;  %3031 = vmatprep.mubr.bf16.mxu1 %v2589_v37  ;;  %v4779_v14 = vpop.f32.mrf.mxu1  ;;  %v2054_v32 = vpack.c.bf16 %v2046_v61, %v2045_v48  ;;  %v4634_v19 = vcombine.high %v3129_v3, %v3133_v28  ;;  %v3122_v61 = vld [vmem:[%s7359_s9 + $0x188] sm:$0xff] }
 0x383   : > { %v4713_v34 = vpop.f32.mrf.mxu0  ;;  %v3126_v48 = vld [vmem:[%s7359_s9 + $0x1a8] sm:$0xff] }
 0x384   : > { %v4714_v60 = vadd.f32 %v4713_v34, %v4712_v58  ;;  %v4780_v55 = vpop.f32.mrf.mxu1  ;;  %v2053_v20 = vpack.c.bf16 %v2044_v25, %v2043_v1  ;;  %v3130_v58 = vld [vmem:[%s7359_s9 + $0x1c8] sm:$0xff]  ;;  %3682 = vmatprep.subr.bf16.mxu1 %v4634_v19 }
 0x385   : > { %v4715_v59 = vpop.f32.mrf.mxu0  ;;  %v4781_v30 = vadd.f32 %v4780_v55, %v4779_v14  ;;  %v4633_v14 = vcombine.low %v3129_v3, %v3133_v28  ;;  %v3134_v34 = vld [vmem:[%s7359_s9 + $0x1e8] sm:$0xff] }
 0x386   : > { %v2889_v38 = vadd.f32 %v4714_v60, %v6770_v44  ;;  %3032 = vmatmul.mubr.bf16.gmra.mxu1 %v2053_v20  ;;  %v4782_v35 = vpop.f32.mrf.mxu1  ;;  %v4635_v20 = vcombine.low %v3130_v58, %v3134_v34  ;;  %v3094_v19 = vld [vmem:[%s7359_s9 + $0xa8] sm:$0xff] }
 0x387   : > { %v4716_v11 = vpop.f32.mrf.mxu0  ;;  %3039 = vmatprep.mubr.bf16.mxu1 %v2590_v17  ;;  %v4636_v17 = vcombine.high %v3130_v58, %v3134_v34  ;;  %3683 = vmatpush1.bf16.msra.mxu1 %v4633_v14  ;;  %v3089_v58 = vld [vmem:[%s7359_s9 + $0x80] sm:$0xff] }
 0x388   : > { %v4717_v4 = vadd.f32 %v4716_v11, %v4715_v59  ;;  %v4783_v52 = vpop.f32.mrf.mxu1  ;;  %v2986_v8 = vadd.f32 %v4778_v53, %v2889_v38  ;;  %v3125_v11 = vld [vmem:[%s7359_s9 + $0x1a0] sm:$0xff] }
 0x389   : > { %v4718_v36 = vpop.f32.mrf.mxu0  ;;  %v4784_v10 = vadd.f32 %v4783_v52, %v4782_v35  ;;  %3795 = vmatprep.subr.bf16.mxu0 %v4636_v17  ;;  %v3121_v35 = vld [vmem:[%s7359_s9 + $0x180] sm:$0xff]  ;;  %v3082_v17 = vld [vmem:[%s7359_s9 + $0x48] sm:$0xff] }
 0x38a   : > { %v2892_v18 = vadd.f32 %v4717_v4, %v6770_v44  ;;  %v4785_v15 = vpop.f32.mrf.mxu1  ;;  %v3048_v7 = vmax.f32 %v2986_v8, 0.0 }
 0x38b   : > { %v4719_v54 = vpop.f32.mrf.mxu0 }
 0x38c   : > { %v2989_v63 = vadd.f32 %v4781_v30, %v2892_v18  ;;  %v4720_v47 = vadd.f32 %v4719_v54, %v4718_v36  ;;  %v4786_v9 = vpop.f32.mrf.mxu1  ;;  %v4626_v36 = vcombine.high %v3121_v35, %v3125_v11  ;;  %v4625_v18 = vcombine.low %v3121_v35, %v3125_v11 }
 0x38d   : > { %v4721_v16 = vpop.f32.mrf.mxu0  ;;  %v4787_v39 = vadd.f32 %v4786_v9, %v4785_v15  ;;  %v4627_v54 = vcombine.low %v3122_v61, %v3126_v48 }
 0x38e   : > { %v3049_v33 = vmax.f32 %v2989_v63, 0.0  ;;  %v2897_v2 = vadd.f32 %v4720_v47, %v6770_v44  ;;  %3040 = vmatmul.mubr.bf16.gmra.mxu1 %v2054_v32  ;;  %3684 = vmatprep.subr.bf16.mxu1 %v4626_v36  ;;  %v4628_v63 = vcombine.high %v3122_v61, %v3126_v48  ;;  %v3073_v61 = vld [vmem:[%s7359_s9] sm:$0xff]  ;;  %v3078_v36 = vld [vmem:[%s7359_s9 + $0x28] sm:$0xff] }
 0x38f   : > { %v4722_v26 = vpop.f32.mrf.mxu0  ;;  %3714 = vmatprep.mubr.bf16.mxu1 %v7415_v29  ;;  %3685 = vmatpush1.bf16.msra.mxu1 %v4625_v18 }
 0x390   : > { %v3138_v13 = vpack.c.bf16 %v3049_v33, %v3048_v7  ;;  %v4723_v12 = vadd.f32 %v4722_v26, %v4721_v16  ;;  %v2994_v31 = vadd.f32 %v4784_v10, %v2897_v2  ;;  %v3113_v16 = vld [vmem:[%s7359_s9 + $0x140] sm:$0xff]  ;;  %v3114_v33 = vld [vmem:[%s7359_s9 + $0x148] sm:$0xff] }
 0x391   : > { %v4724_v23 = vpop.f32.mrf.mxu0  ;;  %v3117_v7 = vld [vmem:[%s7359_s9 + $0x160] sm:$0xff]  ;;  %v3118_v10 = vld [vmem:[%s7359_s9 + $0x168] sm:$0xff] }
 0x392   : > { %v2900_v22 = vadd.f32 %v4723_v12, %v6770_v44  ;;  %4940 = vmatprep.mubr.msk.bf16.mxu0 %vm837_vm0, %v3138_v13  ;;  %v3050_v51 = vmax.f32 %v2994_v31, 0.0  ;;  %v4618_v13 = vcombine.high %v3113_v16, %v3117_v7  ;;  %v4617_v31 = vcombine.low %v3113_v16, %v3117_v7 }
 0x393   : > { %v4725_v5 = vpop.f32.mrf.mxu0 }
 0x394   : > { %v2997_v50 = vadd.f32 %v4787_v39, %v2900_v22  ;;  %v4726_v49 = vadd.f32 %v4725_v5, %v4724_v23  ;;  %v4619_v39 = vcombine.low %v3114_v33, %v3118_v10  ;;  %3686 = vmatprep.subr.bf16.mxu1 %v4618_v13  ;;  %v4620_v22 = vcombine.high %v3114_v33, %v3118_v10  ;;  %v3110_v5 = vld [vmem:[%s7359_s9 + $0x128] sm:$0xff] }
 0x395   : > { %v4727_v40 = vpop.f32.mrf.mxu0  ;;  %3687 = vmatpush1.bf16.msra.mxu1 %v4617_v31 }
 0x396   : > { %v3051_v0 = vmax.f32 %v2997_v50, 0.0  ;;  %v2905_v37 = vadd.f32 %v4726_v49, %v6770_v44 }
 0x397   : > { %v4728_v24 = vpop.f32.mrf.mxu0 }
 0x398   : > { %v3139_v46 = vpack.c.bf16 %v3051_v0, %v3050_v51  ;;  %v4729_v56 = vadd.f32 %v4728_v24, %v4727_v40  ;;  %v3105_v51 = vld [vmem:[%s7359_s9 + $0x100] sm:$0xff] }
 0x399   : > { %v4730_v21 = vpop.f32.mrf.mxu0  ;;  %v3109_v0 = vld [vmem:[%s7359_s9 + $0x120] sm:$0xff] }
 0x39a   : > { %4941 = vmatmul.mubr.msk.bf16.vlgmr.msra.gmra.mxu0 %vm837_vm0, %v3139_v46  ;;  %v2908_v42 = vadd.f32 %v4729_v56, %v6770_v44  ;;  %v3106_v46 = vld [vmem:[%s7359_s9 + $0x108] sm:$0xff]  ;;  %v4610_v23 = vcombine.high %v3105_v51, %v3109_v0  ;;  %v3101_v56 = vld [vmem:[%s7359_s9 + $0xe0] sm:$0xff] }
 0x39b   : > { %v4731_v45 = vpop.f32.mrf.mxu0  ;;  %3796 = vmatpush1.bf16.msra.mxu0 %v4635_v20  ;;  %v4611_v49 = vcombine.low %v3106_v46, %v3110_v5  ;;  %v3085_v20 = vld [vmem:[%s7359_s9 + $0x60] sm:$0xff] }
 0x39c   : > { %v4732_v59 = vadd.f32 %v4731_v45, %v4730_v21  ;;  %3797 = vmatprep.subr.bf16.mxu0 %v4628_v63  ;;  %v4609_v21 = vcombine.low %v3105_v51, %v3109_v0  ;;  %v4612_v45 = vcombine.high %v3106_v46, %v3110_v5  ;;  %3688 = vmatprep.subr.bf16.mxu1 %v4610_v23 }
 0x39d   : > { %v4733_v62 = vpop.f32.mrf.mxu0 }
 0x39e   : > { %v2913_v15 = vadd.f32 %v4732_v59, %v6770_v44  ;;  %3689 = vmatpush1.bf16.msra.mxu1 %v4609_v21 }
 0x39f   : > { %v4734_v60 = vpop.f32.mrf.mxu0  ;;  %3798 = vmatpush1.bf16.msra.mxu0 %v4627_v54 }
 0x3a0   : > { %v4735_v53 = vadd.f32 %v4734_v60, %v4733_v62  ;;  %3799 = vmatprep.subr.bf16.mxu0 %v4620_v22  ;;  %v3098_v62 = vld [vmem:[%s7359_s9 + $0xc8] sm:$0xff] }
 0x3a1   : > { %v4736_v18 = vpop.f32.mrf.mxu0 }
 0x3a2   : > { %v2916_v2 = vadd.f32 %v4735_v53, %v6770_v44  ;;  %v3077_v53 = vld [vmem:[%s7359_s9 + $0x20] sm:$0xff] }
 0x3a3   : > { %3800 = vmatpush1.bf16.msra.mxu0 %v4619_v39  ;;  %v4577_v48 = vcombine.low %v3073_v61, %v3077_v53  ;;  %v4737_v54 = vpop.f32.mrf.mxu0 }
 0x3a4   : > { %3801 = vmatprep.subr.bf16.mxu0 %v4612_v45  ;;  %v4738_v7 = vadd.f32 %v4737_v54, %v4736_v18 }
 0x3a6   : > { %v2921_v10 = vadd.f32 %v4738_v7, %v6770_v44 }
 0x3a7   : > { %3802 = vmatpush1.bf16.msra.mxu0 %v4611_v49 }
 0x3c0   : > { %v4788_v41 = vpop.f32.mrf.mxu1 }
 0x3c2   : > { %v4789_v27 = vpop.f32.mrf.mxu1 }
 0x3c3   : > { %v4790_v43 = vadd.f32 %v4789_v27, %v4788_v41  ;;  %v3097_v27 = vld [vmem:[%s7359_s9 + $0xc0] sm:$0xff] }
 0x3c4   : > { %v4791_v57 = vpop.f32.mrf.mxu1 }
 0x3c5   : > { %v3002_v1 = vadd.f32 %v4790_v43, %v2905_v37  ;;  %v4602_v43 = vcombine.high %v3097_v27, %v3101_v56  ;;  %v3102_v37 = vld [vmem:[%s7359_s9 + $0xe8] sm:$0xff] }
 0x3c6   : > { %v4792_v25 = vpop.f32.mrf.mxu1  ;;  %v4604_v3 = vcombine.high %v3098_v62, %v3102_v37  ;;  %v4603_v28 = vcombine.low %v3098_v62, %v3102_v37 }
 0x3c7   : > { %v4793_v55 = vadd.f32 %v4792_v25, %v4791_v57  ;;  %v3052_v4 = vmax.f32 %v3002_v1, 0.0  ;;  %v4601_v57 = vcombine.low %v3097_v27, %v3101_v56  ;;  %3690 = vmatprep.subr.bf16.mxu1 %v4602_v43  ;;  %v3093_v1 = vld [vmem:[%s7359_s9 + $0xa0] sm:$0xff]  ;;  %v3090_v25 = vld [vmem:[%s7359_s9 + $0x88] sm:$0xff] }
 0x3c8   : > { %v4794_v6 = vpop.f32.mrf.mxu1  ;;  %3803 = vmatprep.subr.bf16.mxu0 %v4604_v3  ;;  %v4594_v14 = vcombine.high %v3089_v58, %v3093_v1  ;;  %v4593_v34 = vcombine.low %v3089_v58, %v3093_v1  ;;  %v4595_v60 = vcombine.low %v3090_v25, %v3094_v19 }
 0x3c9   : > { %v3005_v38 = vadd.f32 %v4793_v55, %v2908_v42  ;;  %3691 = vmatpush1.bf16.msra.mxu1 %v4601_v57  ;;  %v4596_v42 = vcombine.high %v3090_v25, %v3094_v19  ;;  %3804 = vmatpush1.bf16.msra.mxu0 %v4603_v28  ;;  %v3081_v55 = vld [vmem:[%s7359_s9 + $0x40] sm:$0xff] }
 0x3ca   : > { %v4795_v52 = vpop.f32.mrf.mxu1  ;;  %3692 = vmatprep.subr.bf16.mxu1 %v4594_v14  ;;  %v4586_v59 = vcombine.high %v3081_v55, %v3085_v20 }
 0x3cb   : > { %v3053_v8 = vmax.f32 %v3005_v38, 0.0  ;;  %v4796_v30 = vadd.f32 %v4795_v52, %v4794_v6  ;;  %3805 = vmatprep.subr.bf16.mxu0 %v4596_v42  ;;  %v3086_v6 = vld [vmem:[%s7359_s9 + $0x68] sm:$0xff]  ;;  %v4585_v38 = vcombine.low %v3081_v55, %v3085_v20  ;;  %v4578_v52 = vcombine.high %v3073_v61, %v3077_v53 }
 0x3cc   : > { %v4797_v32 = vpop.f32.mrf.mxu1  ;;  %v4588_v35 = vcombine.high %v3082_v17, %v3086_v6  ;;  %v4587_v11 = vcombine.low %v3082_v17, %v3086_v6 }
 0x3cd   : > { %v3140_v47 = vpack.c.bf16 %v3053_v8, %v3052_v4  ;;  %v3010_v9 = vadd.f32 %v4796_v30, %v2913_v15  ;;  %3693 = vmatpush1.bf16.msra.mxu1 %v4593_v34  ;;  %3806 = vmatpush1.bf16.msra.mxu0 %v4595_v60  ;;  %v3074_v4 = vld [vmem:[%s7359_s9 + $0x8] sm:$0xff]  ;;  %v4739_v15 = vpop.f32.mrf.mxu0 }
 0x3ce   : > { %v4798_v26 = vpop.f32.mrf.mxu1  ;;  %3694 = vmatprep.subr.bf16.mxu1 %v4586_v59  ;;  %3807 = vmatprep.subr.bf16.mxu0 %v4588_v35  ;;  %v4580_v8 = vcombine.high %v3074_v4, %v3078_v36  ;;  %v4579_v30 = vcombine.low %v3074_v4, %v3078_v36 }
 0x3cf   : > { %v4799_v12 = vadd.f32 %v4798_v26, %v4797_v32  ;;  %4944 = vmatprep.mubr.msk.bf16.mxu0 %vm837_vm0, %v3140_v47  ;;  %v3054_v40 = vmax.f32 %v3010_v9, 0.0  ;;  %v4740_v32 = vpop.f32.mrf.mxu0 }
 0x3d1   : > { %v3013_v50 = vadd.f32 %v4799_v12, %v2916_v2  ;;  %3695 = vmatpush1.bf16.msra.mxu1 %v4585_v38  ;;  %3808 = vmatpush1.bf16.msra.mxu0 %v4587_v11  ;;  %v4742_v63 = vpop.f32.mrf.mxu0  ;;  %v4741_v2 = vadd.f32 %v4740_v32, %v4739_v15 }
 0x3d2   : > { %3696 = vmatprep.subr.bf16.mxu1 %v4578_v52  ;;  %3809 = vmatprep.subr.bf16.mxu0 %v4580_v8 }
 0x3d3   : > { %v3055_v24 = vmax.f32 %v3013_v50, 0.0  ;;  %v4743_v47 = vpop.f32.mrf.mxu0  ;;  %v2924_v31 = vadd.f32 %v4741_v2, %v6770_v44 }
 0x3d4   : > { %v4744_v0 = vadd.f32 %v4743_v47, %v4742_v63 }
 0x3d5   : > { %v3141_v41 = vpack.c.bf16 %v3055_v24, %v3054_v40  ;;  %3697 = vmatpush1.bf16.msra.mxu1 %v4577_v48  ;;  %3810 = vmatpush1.bf16.msra.mxu0 %v4579_v30  ;;  %v4745_v26 = vpop.f32.mrf.mxu0 }
 0x3d6   : > { %v2929_v49 = vadd.f32 %v4744_v0, %v6770_v44 }
 0x3d7   : > { %4945 = vmatmul.mubr.msk.bf16.gmra.mxu0 %vm837_vm0, %v3141_v41  ;;  %v4746_v50 = vpop.f32.mrf.mxu0 }
 0x3d8   : > { %v4747_v5 = vadd.f32 %v4746_v50, %v4745_v26 }
 0x3d9   : > { %v4748_v58 = vpop.f32.mrf.mxu0 }
 0x3da   : > { %v2932_v56 = vadd.f32 %v4747_v5, %v6770_v44 }
 0x3db   : > { %v4749_v1 = vpop.f32.mrf.mxu0 }
 0x3dc   : > { %v4750_v60 = vadd.f32 %v4749_v1, %v4748_v58  ;;  %v3124_v1 = vld [vmem:[%s7359_s9 + $0x198] sm:$0xff] }
 0x3dd   : > { %v4751_v25 = vpop.f32.mrf.mxu0 }
 0x3de   : > { %v2937_v38 = vadd.f32 %v4750_v60, %v6770_v44  ;;  %v3120_v60 = vld [vmem:[%s7359_s9 + $0x178] sm:$0xff] }
 0x3df   : > { %v4752_v14 = vpop.f32.mrf.mxu0 }
 0x3e0   : > { %v4753_v20 = vadd.f32 %v4752_v14, %v4751_v25  ;;  %v3128_v25 = vld [vmem:[%s7359_s9 + $0x1b8] sm:$0xff]  ;;  %v3115_v14 = vld [vmem:[%s7359_s9 + $0x150] sm:$0xff] }
 0x3e1   : > { %v4754_v19 = vpop.f32.mrf.mxu0 }
 0x3e2   : > { %v2940_v11 = vadd.f32 %v4753_v20, %v6770_v44  ;;  %v4631_v20 = vcombine.low %v3124_v1, %v3128_v25 }
 0x3e3   : > { %v4755_v34 = vpop.f32.mrf.mxu0 }
 0x3e4   : > { %v4756_v36 = vadd.f32 %v4755_v34, %v4754_v19  ;;  %v4632_v19 = vcombine.high %v3124_v1, %v3128_v25  ;;  %v3119_v34 = vld [vmem:[%s7359_s9 + $0x170] sm:$0xff]  ;;  %v3076_v25 = vld [vmem:[%s7359_s9 + $0x18] sm:$0xff] }
 0x3e5   : > { %v4757_v59 = vpop.f32.mrf.mxu0  ;;  %v3079_v1 = vld [vmem:[%s7359_s9 + $0x30] sm:$0xff] }
 0x3e6   : > { %v2945_v63 = vadd.f32 %v4756_v36, %v6770_v44  ;;  %v3099_v36 = vld [vmem:[%s7359_s9 + $0xd0] sm:$0xff] }
 0x3e7   : > { %v4758_v4 = vpop.f32.mrf.mxu0 }
 0x3e8   : > { %v4759_v30 = vadd.f32 %v4758_v4, %v4757_v59 }
 0x3ea   : > { %v2948_v7 = vadd.f32 %v4759_v30, %v6770_v44  ;;  %v3104_v30 = vld [vmem:[%s7359_s9 + $0xf8] sm:$0xff] }
 0x405   : > { %v4800_v16 = vpop.f32.mrf.mxu1 }
 0x407   : > { %v4801_v33 = vpop.f32.mrf.mxu1 }
 0x408   : > { %v4802_v9 = vadd.f32 %v4801_v33, %v4800_v16 }
 0x409   : > { %v4803_v13 = vpop.f32.mrf.mxu1 }
 0x40a   : > { %v3018_v39 = vadd.f32 %v4802_v9, %v2921_v10 }
 0x40b   : > { %v4804_v12 = vpop.f32.mrf.mxu1 }
 0x40c   : > { %v4805_v22 = vadd.f32 %v4804_v12, %v4803_v13  ;;  %v3056_v40 = vmax.f32 %v3018_v39, 0.0  ;;  %v6898_v39 = vld [vmem:[%s7358_s8] ss:$0 sm:$0xff] }
 0x40d   : > { %v4806_v51 = vpop.f32.mrf.mxu1 }
 0x40e   : > { %v3021_v46 = vadd.f32 %v4805_v22, %v2924_v31 }
 0x40f   : > { %v4807_v23 = vpop.f32.mrf.mxu1 }
 0x410   : > { %v3057_v24 = vmax.f32 %v3021_v46, 0.0  ;;  %v4808_v21 = vadd.f32 %v4807_v23, %v4806_v51 }
 0x411   : > { %v4809_v45 = vpop.f32.mrf.mxu1 }
 0x412   : > { %v3142_v41 = vpack.c.bf16 %v3057_v24, %v3056_v40  ;;  %v3026_v62 = vadd.f32 %v4808_v21, %v2929_v49  ;;  %v3131_v49 = vld [vmem:[%s7359_s9 + $0x1d0] sm:$0xff] }
 0x413   : > { %v4810_v27 = vpop.f32.mrf.mxu1 }
 0x414   : > { %v4811_v43 = vadd.f32 %v4810_v27, %v4809_v45  ;;  %4948 = vmatprep.mubr.msk.bf16.mxu0 %vm837_vm0, %v3142_v41  ;;  %v3058_v57 = vmax.f32 %v3026_v62, 0.0  ;;  %v3135_v41 = vld [vmem:[%s7359_s9 + $0x1f0] sm:$0xff]  ;;  %v3132_v27 = vld [vmem:[%s7359_s9 + $0x1d8] sm:$0xff] }
 0x415   : > { %v4638_v62 = vcombine.high %v3131_v49, %v3135_v41 }
 0x416   : > { %v3029_v37 = vadd.f32 %v4811_v43, %v2932_v56  ;;  %v4637_v56 = vcombine.low %v3131_v49, %v3135_v41  ;;  %v3136_v43 = vld [vmem:[%s7359_s9 + $0x1f8] sm:$0xff] }
 0x417   : > { %3908 = vmatprep.subr.bf16.mxu1 %v4638_v62  ;;  %v3084_v62 = vld [vmem:[%s7359_s9 + $0x58] sm:$0xff] }
 0x418   : > { %v3059_v3 = vmax.f32 %v3029_v37, 0.0  ;;  %v3123_v37 = vld [vmem:[%s7359_s9 + $0x190] sm:$0xff] }
 0x41a   : > { %v3143_v28 = vpack.c.bf16 %v3059_v3, %v3058_v57  ;;  %v3127_v57 = vld [vmem:[%s7359_s9 + $0x1b0] sm:$0xff]  ;;  %v4639_v3 = vcombine.low %v3132_v27, %v3136_v43 }
 0x41b   : > { %v4630_v58 = vcombine.high %v3123_v37, %v3127_v57 }
 0x41c   : > { %4949 = vmatmul.mubr.msk.bf16.gmra.mxu0 %vm837_vm0, %v3143_v28  ;;  %v4640_v28 = vcombine.high %v3132_v27, %v3136_v43  ;;  %v3083_v27 = vld [vmem:[%s7359_s9 + $0x50] sm:$0xff] }
 0x41e   : > { %4021 = vmatprep.subr.bf16.mxu0 %v4640_v28 }
 0x446   : > { %v4812_v42 = vpop.f32.mrf.mxu1 }
 0x448   : > { %v4813_v55 = vpop.f32.mrf.mxu1 }
 0x449   : > { %v4814_v17 = vadd.f32 %v4813_v55, %v4812_v42  ;;  %v3116_v42 = vld [vmem:[%s7359_s9 + $0x158] sm:$0xff]  ;;  %v4629_v55 = vcombine.low %v3123_v37, %v3127_v57 }
 0x44a   : > { %v4815_v6 = vpop.f32.mrf.mxu1  ;;  %v4624_v59 = vcombine.high %v3116_v42, %v3120_v60  ;;  %v3088_v57 = vld [vmem:[%s7359_s9 + $0x78] sm:$0xff] }
 0x44b   : > { %v3034_v61 = vadd.f32 %v4814_v17, %v2937_v38  ;;  %v4622_v17 = vcombine.high %v3115_v14, %v3119_v34  ;;  %v3111_v38 = vld [vmem:[%s7359_s9 + $0x130] sm:$0xff]  ;;  %v4592_v28 = vcombine.high %v3084_v62, %v3088_v57 }
 0x44c   : > { %v4816_v35 = vpop.f32.mrf.mxu1 }
 0x44d   : > { %v4817_v53 = vadd.f32 %v4816_v35, %v4815_v6  ;;  %v3060_v18 = vmax.f32 %v3034_v61, 0.0  ;;  %v3107_v6 = vld [vmem:[%s7359_s9 + $0x110] sm:$0xff]  ;;  %v3108_v35 = vld [vmem:[%s7359_s9 + $0x118] sm:$0xff]  ;;  %v4621_v61 = vcombine.low %v3115_v14, %v3119_v34 }
 0x44e   : > { %v4818_v52 = vpop.f32.mrf.mxu1  ;;  %v4614_v4 = vcombine.high %v3107_v6, %v3111_v38  ;;  %v3080_v34 = vld [vmem:[%s7359_s9 + $0x38] sm:$0xff] }
 0x44f   : > { %v3037_v48 = vadd.f32 %v4817_v53, %v2940_v11  ;;  %v3112_v11 = vld [vmem:[%s7359_s9 + $0x138] sm:$0xff]  ;;  %v4623_v53 = vcombine.low %v3116_v42, %v3120_v60  ;;  %v4583_v42 = vcombine.low %v3076_v25, %v3080_v34  ;;  %v4584_v60 = vcombine.high %v3076_v25, %v3080_v34 }
 0x450   : > { %v4819_v8 = vpop.f32.mrf.mxu1 }
 0x451   : > { %v3061_v54 = vmax.f32 %v3037_v48, 0.0  ;;  %v4820_v15 = vadd.f32 %v4819_v8, %v4818_v52  ;;  %v4616_v52 = vcombine.high %v3108_v35, %v3112_v11  ;;  %v3103_v48 = vld [vmem:[%s7359_s9 + $0xf0] sm:$0xff]  ;;  %v3100_v8 = vld [vmem:[%s7359_s9 + $0xd8] sm:$0xff] }
 0x452   : > { %v4821_v32 = vpop.f32.mrf.mxu1 }
 0x453   : > { %v3144_v47 = vpack.c.bf16 %v3061_v54, %v3060_v18  ;;  %v3042_v33 = vadd.f32 %v4820_v15, %v2945_v63  ;;  %v4613_v18 = vcombine.low %v3107_v6, %v3111_v38  ;;  %v4615_v54 = vcombine.low %v3108_v35, %v3112_v11 }
 0x454   : > { %v4822_v16 = vpop.f32.mrf.mxu1  ;;  %v4606_v15 = vcombine.high %v3099_v36, %v3103_v48  ;;  %v4605_v63 = vcombine.low %v3099_v36, %v3103_v48 }
 0x455   : > { %v4823_v2 = vadd.f32 %v4822_v16, %v4821_v32  ;;  %4952 = vmatprep.mubr.msk.bf16.mxu0 %vm837_vm0, %v3144_v47  ;;  %v3062_v26 = vmax.f32 %v3042_v33, 0.0  ;;  %v4608_v32 = vcombine.high %v3100_v8, %v3104_v30  ;;  %v4607_v47 = vcombine.low %v3100_v8, %v3104_v30 }
 0x457   : > { %v3045_v9 = vadd.f32 %v4823_v2, %v2948_v7 }
 0x459   : > { %v3063_v13 = vmax.f32 %v3045_v9, 0.0 }
 0x45a   : > { %v4942_v10 = vpop.f32.mrf.mxu0 }
 0x45b   : > { %v3145_v12 = vpack.c.bf16 %v3063_v13, %v3062_v26  ;;  %v3243_v40 = vadd.f32 %v4942_v10, %v6898_v39 }
 0x45c   : > { %v3234_v31 = vpop.f32.mrf.mxu0 }
 0x45d   : > { %4953 = vmatmul.mubr.msk.bf16.gmra.mxu0 %vm837_vm0, %v3145_v12  ;;  %v3235_v44 = vadd.f32 %v6898_v39, %v3234_v31  ;;  %v3299_v21 = vmax.f32 %v3243_v40, 0.0  ;;  %v3096_v40 = vld [vmem:[%s7359_s9 + $0xb8] sm:$0xff] }
 0x45e   : > { %v4943_v22 = vpop.f32.mrf.mxu0  ;;  %3827 = vmatprep.mubr.bf16.mxu0 %v7415_v29 }
 0x45f   : > { %v3297_v0 = vmax.f32 %v3235_v44, 0.0  ;;  %v3246_v23 = vadd.f32 %v4943_v22, %v6898_v39 }
 0x460   : > { %v3237_v50 = vpop.f32.mrf.mxu0 }
 0x461   : > { %v3238_v51 = vadd.f32 %v6898_v39, %v3237_v50  ;;  %v3300_v24 = vmax.f32 %v3246_v23, 0.0  ;;  %v3091_v50 = vld [vmem:[%s7359_s9 + $0x90] sm:$0xff] }
 0x463   : > { %v3298_v46 = vmax.f32 %v3238_v51, 0.0  ;;  %v6911_v45 = vpack.c.bf16 %v3300_v24, %v3299_v21  ;;  %v3095_v51 = vld [vmem:[%s7359_s9 + $0xb0] sm:$0xff] }
 0x464   : > { %v4598_v23 = vcombine.high %v3091_v50, %v3095_v51 }
 0x465   : > { %v6904_v5 = vpack.c.bf16 %v3298_v46, %v3297_v0  ;;  %v3092_v0 = vld [vmem:[%s7359_s9 + $0x98] sm:$0xff]  ;;  %v4597_v46 = vcombine.low %v3091_v50, %v3095_v51  ;;  %v7496_v51 = vld [vmem:[#allocation19_spill] sm:$0xff] }
 0x466   : > { %v4599_v21 = vcombine.low %v3092_v0, %v3096_v40  ;;  %v4600_v49 = vcombine.high %v3092_v0, %v3096_v40 }
 0x467   : > { %3715 = vmatmul.mubr.bf16.vlgmr.msra.gmra.mxu1 %v6904_v5  ;;  %3828 = vmatmul.mubr.bf16.vlgmr.msra.gmra.mxu0 %v6904_v5 }
 0x468   : > { %3724 = vmatprep.mubr.bf16.mxu1 %v7415_v29  ;;  %3837 = vmatprep.mubr.bf16.mxu0 %v7415_v29 }
 0x469   : > { %3909 = vmatpush1.bf16.msra.mxu1 %v4637_v56  ;;  %4022 = vmatpush1.bf16.msra.mxu0 %v4639_v3  ;;  %v3087_v56 = vld [vmem:[%s7359_s9 + $0x70] sm:$0xff]  ;;  %v4591_v3 = vcombine.low %v3084_v62, %v3088_v57 }
 0x46a   : > { %3910 = vmatprep.subr.bf16.mxu1 %v4630_v58  ;;  %4023 = vmatprep.subr.bf16.mxu0 %v4632_v19  ;;  %v4589_v43 = vcombine.low %v3083_v27, %v3087_v56  ;;  %v4590_v37 = vcombine.high %v3083_v27, %v3087_v56  ;;  %v3075_v58 = vld [vmem:[%s7359_s9 + $0x10] sm:$0xff] }
 0x46b   : > { %v4581_v14 = vcombine.low %v3075_v58, %v3079_v1  ;;  %v4582_v19 = vcombine.high %v3075_v58, %v3079_v1 }
 0x46d   : > { %3911 = vmatpush1.bf16.msra.mxu1 %v4629_v55  ;;  %4024 = vmatpush1.bf16.msra.mxu0 %v4631_v20 }
 0x46e   : > { %3912 = vmatprep.subr.bf16.mxu1 %v4622_v17  ;;  %4025 = vmatprep.subr.bf16.mxu0 %v4624_v59 }
 0x46f   : > { %3725 = vmatmul.mubr.bf16.gmra.mxu1 %v6911_v45  ;;  %3838 = vmatmul.mubr.bf16.gmra.mxu0 %v6911_v45 }
 0x470   : > { %3734 = vmatprep.mubr.bf16.mxu1 %v7415_v29  ;;  %3847 = vmatprep.mubr.bf16.mxu0 %v7415_v29 }
 0x471   : > { %3913 = vmatpush1.bf16.msra.mxu1 %v4621_v61  ;;  %4026 = vmatpush1.bf16.msra.mxu0 %v4623_v53 }
 0x472   : > { %3914 = vmatprep.subr.bf16.mxu1 %v4614_v4  ;;  %4027 = vmatprep.subr.bf16.mxu0 %v4616_v52 }
 0x475   : > { %3915 = vmatpush1.bf16.msra.mxu1 %v4613_v18  ;;  %4028 = vmatpush1.bf16.msra.mxu0 %v4615_v54 }
 0x476   : > { %3916 = vmatprep.subr.bf16.mxu1 %v4606_v15  ;;  %4029 = vmatprep.subr.bf16.mxu0 %v4608_v32 }
 0x479   : > { %3917 = vmatpush1.bf16.msra.mxu1 %v4605_v63  ;;  %4030 = vmatpush1.bf16.msra.mxu0 %v4607_v47  ;;  %v7050_v63 = vld [vmem:[%s7360_s10] sm:$0xff]  ;;  %v7493_v47 = vld [vmem:[#allocation17_spill] sm:$0xff] }
 0x47a   : > { %3918 = vmatprep.subr.bf16.mxu1 %v4598_v23  ;;  %4031 = vmatprep.subr.bf16.mxu0 %v4600_v49  ;;  %v7067_v0 = vrot.slane %v7050_v63, %v7496_v51 }
 0x47d   : > { %3919 = vmatpush1.bf16.msra.mxu1 %v4597_v46  ;;  %4032 = vmatpush1.bf16.msra.mxu0 %v4599_v21 }
 0x47e   : > { %3920 = vmatprep.subr.bf16.mxu1 %v4590_v37  ;;  %4033 = vmatprep.subr.bf16.mxu0 %v4592_v28 }
 0x481   : > { %3921 = vmatpush1.bf16.msra.mxu1 %v4589_v43  ;;  %4034 = vmatpush1.bf16.msra.mxu0 %v4591_v3 }
 0x482   : > { %3922 = vmatprep.subr.bf16.mxu1 %v4582_v19  ;;  %4035 = vmatprep.subr.bf16.mxu0 %v4584_v60 }
 0x485   : > { %3923 = vmatpush1.bf16.msra.mxu1 %v4581_v14  ;;  %4036 = vmatpush1.bf16.msra.mxu0 %v4583_v42 }
 0x497   : > { %v4946_v16 = vpop.f32.mrf.mxu0 }
 0x498   : > { %v3259_v22 = vadd.f32 %v4946_v16, %v6898_v39  ;;  %v3336_v16 = vsub.s32 3, %v7493_v47 }
 0x499   : > { %v3250_v7 = vpop.f32.mrf.mxu0 }
 0x49a   : > { %v3251_v2 = vadd.f32 %v6898_v39, %v3250_v7  ;;  %v3303_v24 = vmax.f32 %v3259_v22, 0.0  ;;  %v7495_v22 = vld [vmem:[#allocation20_spill] sm:$0xff]  ;;  %v7070_v23 = vrot.slane %v7050_v63, %v3336_v16 }
 0x49b   : > { %v4947_v33 = vpop.f32.mrf.mxu0 }
 0x49c   : > { %v3301_v13 = vmax.f32 %v3251_v2, 0.0  ;;  %v3262_v12 = vadd.f32 %v4947_v33, %v6898_v39 }
 0x49d   : > { %v3253_v9 = vpop.f32.mrf.mxu0 }
 0x49e   : > { %v3254_v26 = vadd.f32 %v6898_v39, %v3253_v9  ;;  %v3304_v44 = vmax.f32 %v3262_v12, 0.0 }
 0x4a0   : > { %v3302_v10 = vmax.f32 %v3254_v26, 0.0  ;;  %v6999_v41 = vpack.c.bf16 %v3304_v44, %v3303_v24  ;;  %v7062_v44 = vrot.slane %v7050_v63, %v7495_v22 }
 0x4a2   : > { %v6980_v31 = vpack.c.bf16 %v3302_v10, %v3301_v13  ;;  %v7494_v10 = vld [vmem:[#allocation21_spill] sm:$0xff] }
 0x4a3   : > { %v7058_v12 = vrot.slane %v7050_v63, %v7494_v10 }
 0x4a4   : > { %3735 = vmatmul.mubr.bf16.gmra.mxu1 %v6980_v31  ;;  %3848 = vmatmul.mubr.bf16.gmra.mxu0 %v6980_v31 }
 0x4a5   : > { %3744 = vmatprep.mubr.bf16.mxu1 %v7415_v29  ;;  %3857 = vmatprep.mubr.bf16.mxu0 %v7415_v29 }
 0x4ac   : > { %3745 = vmatmul.mubr.bf16.gmra.mxu1 %v6999_v41  ;;  %3858 = vmatmul.mubr.bf16.gmra.mxu0 %v6999_v41 }
 0x4ad   : > { %3754 = vmatprep.mubr.bf16.mxu1 %v7415_v29  ;;  %3867 = vmatprep.mubr.bf16.mxu0 %v7415_v29 }
 0x4dc   : > { %v4950_v55 = vpop.f32.mrf.mxu0 }
 0x4dd   : > { %v3275_v4 = vadd.f32 %v4950_v55, %v6898_v39 }
 0x4de   : > { %v3266_v20 = vpop.f32.mrf.mxu0 }
 0x4df   : > { %v3267_v59 = vadd.f32 %v6898_v39, %v3266_v20  ;;  %v3307_v36 = vmax.f32 %v3275_v4, 0.0 }
 0x4e0   : > { %v4951_v17 = vpop.f32.mrf.mxu0 }
 0x4e1   : > { %v3305_v35 = vmax.f32 %v3267_v59, 0.0  ;;  %v3278_v61 = vadd.f32 %v4951_v17, %v6898_v39 }
 0x4e2   : > { %v3269_v6 = vpop.f32.mrf.mxu0 }
 0x4e3   : > { %v3270_v38 = vadd.f32 %v6898_v39, %v3269_v6  ;;  %v3308_v52 = vmax.f32 %v3278_v61, 0.0 }
 0x4e5   : > { %v3306_v11 = vmax.f32 %v3270_v38, 0.0  ;;  %v7039_v48 = vpack.c.bf16 %v3308_v52, %v3307_v36 }
 0x4e7   : > { %v7032_v53 = vpack.c.bf16 %v3306_v11, %v3305_v35 }
 0x4e9   : > { %3755 = vmatmul.mubr.bf16.gmra.mxu1 %v7032_v53  ;;  %3868 = vmatmul.mubr.bf16.gmra.mxu0 %v7032_v53 }
 0x4ea   : > { %3764 = vmatprep.mubr.bf16.mxu1 %v7415_v29  ;;  %3877 = vmatprep.mubr.bf16.mxu0 %v7415_v29 }
 0x4f1   : > { %3765 = vmatmul.mubr.bf16.gmra.mxu1 %v7039_v48  ;;  %3878 = vmatmul.mubr.bf16.gmra.mxu0 %v7039_v48 }
 0x4f2   : > { %3774 = vmatprep.mubr.bf16.mxu1 %v7415_v29  ;;  %3887 = vmatprep.mubr.bf16.mxu0 %v7415_v29 }
 0x51d   : > { %v4954_v8 = vpop.f32.mrf.mxu0 }
 0x51e   : > { %v3291_v50 = vadd.f32 %v4954_v8, %v6898_v39 }
 0x51f   : > { %v3282_v30 = vpop.f32.mrf.mxu0 }
 0x520   : > { %v3283_v54 = vadd.f32 %v6898_v39, %v3282_v30  ;;  %v3311_v43 = vmax.f32 %v3291_v50, 0.0 }
 0x521   : > { %v4955_v18 = vpop.f32.mrf.mxu0 }
 0x522   : > { %v3309_v7 = vmax.f32 %v3283_v54, 0.0  ;;  %v3294_v2 = vadd.f32 %v4955_v18, %v6898_v39 }
 0x523   : > { %v3285_v15 = vpop.f32.mrf.mxu0 }
 0x524   : > { %v3286_v32 = vadd.f32 %v6898_v39, %v3285_v15  ;;  %v3312_v24 = vmax.f32 %v3294_v2, 0.0 }
 0x526   : > { %v3310_v33 = vmax.f32 %v3286_v32, 0.0  ;;  %v7084_v19 = vpack.c.bf16 %v3312_v24, %v3311_v43 }
 0x527   : > { %v3716_v9 = vpop.f32.mrf.mxu1  ;;  %v3829_v26 = vpop.f32.mrf.mxu0 }
 0x528   : > { %v7054_v13 = vpack.c.bf16 %v3310_v33, %v3309_v7  ;;  %v3717_v39 = vadd.f32 %v3716_v9, %v7058_v12  ;;  %v3830_v27 = vadd.f32 %v3829_v26, %v7062_v44 }
 0x529   : > { %v3718_v46 = vpop.f32.mrf.mxu1  ;;  %v3831_v40 = vpop.f32.mrf.mxu0 }
 0x52a   : > { %3775 = vmatmul.mubr.bf16.gmra.mxu1 %v7054_v13  ;;  %3888 = vmatmul.mubr.bf16.gmra.mxu0 %v7054_v13  ;;  %v3719_v37 = vadd.f32 %v3718_v46, %v7067_v0  ;;  %v3832_v57 = vadd.f32 %v3831_v40, %v7070_v23 }
 0x52b   : > { %v3720_v21 = vpop.f32.mrf.mxu1  ;;  %v3833_v49 = vpop.f32.mrf.mxu0  ;;  %3784 = vmatprep.mubr.bf16.mxu1 %v7415_v29  ;;  %3897 = vmatprep.mubr.bf16.mxu0 %v7415_v29 }
 0x52c   : > { %v3721_v56 = vadd.f32 %v3720_v21, %v7058_v12  ;;  %v3834_v62 = vadd.f32 %v3833_v49, %v7062_v44 }
 0x52d   : > { %v3722_v3 = vpop.f32.mrf.mxu1  ;;  %v3835_v28 = vpop.f32.mrf.mxu0 }
 0x52e   : > { %v4134_v58 = vmax.f32 %v3717_v39, %v3721_v56  ;;  %v4176_v1 = vmax.f32 %v3830_v27, %v3834_v62  ;;  %v3723_v25 = vadd.f32 %v3722_v3, %v7067_v0  ;;  %v3836_v14 = vadd.f32 %v3835_v28, %v7070_v23 }
 0x52f   : > { %v3726_v34 = vpop.f32.mrf.mxu1  ;;  %v3839_v42 = vpop.f32.mrf.mxu0 }
 0x530   : > { %v4155_v60 = vmax.f32 %v3719_v37, %v3723_v25  ;;  %v4197_v55 = vmax.f32 %v3832_v57, %v3836_v14  ;;  %v3727_v20 = vadd.f32 %v3726_v34, %v7058_v12  ;;  %v3840_v17 = vadd.f32 %v3839_v42, %v7062_v44 }
 0x531   : > { %v3728_v59 = vpop.f32.mrf.mxu1  ;;  %v3841_v6 = vpop.f32.mrf.mxu0 }
 0x532   : > { %v4135_v38 = vmax.f32 %v4134_v58, %v3727_v20  ;;  %v4177_v35 = vmax.f32 %v4176_v1, %v3840_v17  ;;  %v3729_v11 = vadd.f32 %v3728_v59, %v7067_v0  ;;  %v3842_v61 = vadd.f32 %v3841_v6, %v7070_v23  ;;  %3785 = vmatmul.mubr.bf16.gmra.mxu1 %v7084_v19 }
 0x533   : > { %3898 = vmatmul.mubr.bf16.gmra.mxu0 %v7084_v19  ;;  %v3730_v4 = vpop.f32.mrf.mxu1  ;;  %v3843_v52 = vpop.f32.mrf.mxu0  ;;  %3940 = vmatprep.mubr.bf16.mxu1 %v7415_v29 }
 0x534   : > { %v4156_v36 = vmax.f32 %v4155_v60, %v3729_v11  ;;  %v4198_v8 = vmax.f32 %v4197_v55, %v3842_v61  ;;  %v3731_v30 = vadd.f32 %v3730_v4, %v7058_v12  ;;  %v3844_v18 = vadd.f32 %v3843_v52, %v7062_v44  ;;  %4053 = vmatprep.mubr.bf16.mxu0 %v7415_v29 }
 0x535   : > { %v3732_v54 = vpop.f32.mrf.mxu1  ;;  %v3845_v15 = vpop.f32.mrf.mxu0 }
 0x536   : > { %v4136_v32 = vmax.f32 %v4135_v38, %v3731_v30  ;;  %v4178_v16 = vmax.f32 %v4177_v35, %v3844_v18  ;;  %v3733_v7 = vadd.f32 %v3732_v54, %v7067_v0  ;;  %v3846_v33 = vadd.f32 %v3845_v15, %v7070_v23 }
 0x538   : > { %v4157_v2 = vmax.f32 %v4156_v36, %v3733_v7  ;;  %v4199_v9 = vmax.f32 %v4198_v8, %v3846_v33 }
 0x53a   : > { %3941 = vmatmul.mubr.bf16.vlgmr.msra.gmra.mxu1 %v6904_v5 }
 0x53b   : > { %4054 = vmatmul.mubr.bf16.vlgmr.msra.gmra.mxu0 %v6904_v5  ;;  %3950 = vmatprep.mubr.bf16.mxu1 %v7415_v29 }
 0x53c   : > { %4063 = vmatprep.mubr.bf16.mxu0 %v7415_v29 }
 0x542   : > { %3951 = vmatmul.mubr.bf16.gmra.mxu1 %v6911_v45 }
 0x543   : > { %4064 = vmatmul.mubr.bf16.gmra.mxu0 %v6911_v45  ;;  %3960 = vmatprep.mubr.bf16.mxu1 %v7415_v29 }
 0x544   : > { %4073 = vmatprep.mubr.bf16.mxu0 %v7415_v29 }
 0x54a   : > { %3961 = vmatmul.mubr.bf16.gmra.mxu1 %v6980_v31 }
 0x54b   : > { %4074 = vmatmul.mubr.bf16.gmra.mxu0 %v6980_v31  ;;  %3970 = vmatprep.mubr.bf16.mxu1 %v7415_v29 }
 0x54c   : > { %4083 = vmatprep.mubr.bf16.mxu0 %v7415_v29 }
 0x552   : > { %3971 = vmatmul.mubr.bf16.gmra.mxu1 %v6999_v41 }
 0x553   : > { %4084 = vmatmul.mubr.bf16.gmra.mxu0 %v6999_v41  ;;  %3980 = vmatprep.mubr.bf16.mxu1 %v7415_v29 }
 0x554   : > { %4093 = vmatprep.mubr.bf16.mxu0 %v7415_v29 }
 0x55a   : > { %3981 = vmatmul.mubr.bf16.gmra.mxu1 %v7032_v53 }
 0x55b   : > { %4094 = vmatmul.mubr.bf16.gmra.mxu0 %v7032_v53  ;;  %3990 = vmatprep.mubr.bf16.mxu1 %v7415_v29 }
 0x55c   : > { %4103 = vmatprep.mubr.bf16.mxu0 %v7415_v29 }
 0x562   : > { %3991 = vmatmul.mubr.bf16.gmra.mxu1 %v7039_v48 }
 0x563   : > { %4104 = vmatmul.mubr.bf16.gmra.mxu0 %v7039_v48  ;;  %4000 = vmatprep.mubr.bf16.mxu1 %v7415_v29 }
 0x564   : > { %v3736_v5 = vpop.f32.mrf.mxu1  ;;  %v3849_v45 = vpop.f32.mrf.mxu0  ;;  %4113 = vmatprep.mubr.bf16.mxu0 %v7415_v29 }
 0x565   : > { %v3737_v31 = vadd.f32 %v3736_v5, %v7058_v12  ;;  %v3850_v41 = vadd.f32 %v3849_v45, %v7062_v44 }
 0x566   : > { %v3738_v26 = vpop.f32.mrf.mxu1  ;;  %v3851_v53 = vpop.f32.mrf.mxu0 }
 0x567   : > { %v4137_v10 = vmax.f32 %v4136_v32, %v3737_v31  ;;  %v4179_v22 = vmax.f32 %v4178_v16, %v3850_v41  ;;  %v3739_v50 = vadd.f32 %v3738_v26, %v7067_v0  ;;  %v3852_v51 = vadd.f32 %v3851_v53, %v7070_v23 }
 0x568   : > { %v3740_v46 = vpop.f32.mrf.mxu1  ;;  %v3853_v48 = vpop.f32.mrf.mxu0 }
 0x569   : > { %v4158_v40 = vmax.f32 %v4157_v2, %v3739_v50  ;;  %v4200_v24 = vmax.f32 %v4199_v9, %v3852_v51  ;;  %v3741_v21 = vadd.f32 %v3740_v46, %v7058_v12  ;;  %v3854_v49 = vadd.f32 %v3853_v48, %v7062_v44 }
 0x56a   : > { %v3742_v39 = vpop.f32.mrf.mxu1  ;;  %v3855_v27 = vpop.f32.mrf.mxu0  ;;  %4001 = vmatmul.mubr.bf16.gmra.mxu1 %v7054_v13 }
 0x56b   : > { %v4138_v56 = vmax.f32 %v4137_v10, %v3741_v21  ;;  %v4180_v62 = vmax.f32 %v4179_v22, %v3854_v49  ;;  %v3743_v43 = vadd.f32 %v3742_v39, %v7067_v0  ;;  %v3856_v37 = vadd.f32 %v3855_v27, %v7070_v23  ;;  %4114 = vmatmul.mubr.bf16.gmra.mxu0 %v7054_v13 }
 0x56c   : > { %v3746_v57 = vpop.f32.mrf.mxu1  ;;  %v3859_v3 = vpop.f32.mrf.mxu0  ;;  %4010 = vmatprep.mubr.bf16.mxu1 %v7415_v29  ;;  %4123 = vmatprep.mubr.bf16.mxu0 %v7415_v29 }
 0x56d   : > { %v4159_v28 = vmax.f32 %v4158_v40, %v3743_v43  ;;  %v4201_v58 = vmax.f32 %v4200_v24, %v3856_v37  ;;  %v3747_v1 = vadd.f32 %v3746_v57, %v7058_v12  ;;  %v3860_v25 = vadd.f32 %v3859_v3, %v7062_v44 }
 0x56e   : > { %v3748_v14 = vpop.f32.mrf.mxu1  ;;  %v3861_v34 = vpop.f32.mrf.mxu0 }
 0x56f   : > { %v4139_v42 = vmax.f32 %v4138_v56, %v3747_v1  ;;  %v4181_v60 = vmax.f32 %v4180_v62, %v3860_v25  ;;  %v3749_v55 = vadd.f32 %v3748_v14, %v7067_v0  ;;  %v3862_v13 = vadd.f32 %v3861_v34, %v7070_v23 }
 0x570   : > { %v3750_v20 = vpop.f32.mrf.mxu1  ;;  %v3863_v17 = vpop.f32.mrf.mxu0 }
 0x571   : > { %v4160_v59 = vmax.f32 %v4159_v28, %v3749_v55  ;;  %v4202_v6 = vmax.f32 %v4201_v58, %v3862_v13  ;;  %v3751_v29 = vadd.f32 %v3750_v20, %v7058_v12  ;;  %v3864_v38 = vadd.f32 %v3863_v17, %v7062_v44 }
 0x572   : > { %v3752_v35 = vpop.f32.mrf.mxu1  ;;  %v3865_v11 = vpop.f32.mrf.mxu0  ;;  %4011 = vmatmul.mubr.bf16.gmra.mxu1 %v7084_v19 }
 0x573   : > { %v4140_v61 = vmax.f32 %v4139_v42, %v3751_v29  ;;  %v4182_v4 = vmax.f32 %v4181_v60, %v3864_v38  ;;  %v3753_v52 = vadd.f32 %v3752_v35, %v7067_v0  ;;  %v3866_v36 = vadd.f32 %v3865_v11, %v7070_v23  ;;  %4124 = vmatmul.mubr.bf16.gmra.mxu0 %v7084_v19 }
 0x575   : > { %v4161_v8 = vmax.f32 %v4160_v59, %v3753_v52  ;;  %v4203_v30 = vmax.f32 %v4202_v6, %v3866_v36 }
 0x5a9   : > { %v3756_v18 = vpop.f32.mrf.mxu1  ;;  %v3869_v54 = vpop.f32.mrf.mxu0 }
 0x5aa   : > { %v3757_v15 = vadd.f32 %v3756_v18, %v7058_v12  ;;  %v3870_v32 = vadd.f32 %v3869_v54, %v7062_v44 }
 0x5ab   : > { %v3758_v16 = vpop.f32.mrf.mxu1  ;;  %v3871_v7 = vpop.f32.mrf.mxu0 }
 0x5ac   : > { %v4141_v33 = vmax.f32 %v4140_v61, %v3757_v15  ;;  %v4183_v2 = vmax.f32 %v4182_v4, %v3870_v32  ;;  %v3759_v9 = vadd.f32 %v3758_v16, %v7067_v0  ;;  %v3872_v5 = vadd.f32 %v3871_v7, %v7070_v23 }
 0x5ad   : > { %v3760_v45 = vpop.f32.mrf.mxu1  ;;  %v3873_v31 = vpop.f32.mrf.mxu0 }
 0x5ae   : > { %v4162_v41 = vmax.f32 %v4161_v8, %v3759_v9  ;;  %v4204_v19 = vmax.f32 %v4203_v30, %v3872_v5  ;;  %v3761_v26 = vadd.f32 %v3760_v45, %v7058_v12  ;;  %v3874_v53 = vadd.f32 %v3873_v31, %v7062_v44 }
 0x5af   : > { %v3762_v10 = vpop.f32.mrf.mxu1  ;;  %v3875_v22 = vpop.f32.mrf.mxu0 }
 0x5b0   : > { %v4142_v50 = vmax.f32 %v4141_v33, %v3761_v26  ;;  %v4184_v51 = vmax.f32 %v4183_v2, %v3874_v53  ;;  %v3763_v46 = vadd.f32 %v3762_v10, %v7067_v0  ;;  %v3876_v48 = vadd.f32 %v3875_v22, %v7070_v23 }
 0x5b1   : > { %v3766_v40 = vpop.f32.mrf.mxu1  ;;  %v3879_v24 = vpop.f32.mrf.mxu0 }
 0x5b2   : > { %v4163_v21 = vmax.f32 %v4162_v41, %v3763_v46  ;;  %v4205_v49 = vmax.f32 %v4204_v19, %v3876_v48  ;;  %v3767_v39 = vadd.f32 %v3766_v40, %v7058_v12  ;;  %v3880_v27 = vadd.f32 %v3879_v24, %v7062_v44 }
 0x5b3   : > { %v3768_v56 = vpop.f32.mrf.mxu1  ;;  %v3881_v62 = vpop.f32.mrf.mxu0 }
 0x5b4   : > { %v4143_v43 = vmax.f32 %v4142_v50, %v3767_v39  ;;  %v4185_v37 = vmax.f32 %v4184_v51, %v3880_v27  ;;  %v3769_v57 = vadd.f32 %v3768_v56, %v7067_v0  ;;  %v3882_v3 = vadd.f32 %v3881_v62, %v7070_v23 }
 0x5b5   : > { %v3770_v28 = vpop.f32.mrf.mxu1  ;;  %v3883_v58 = vpop.f32.mrf.mxu0 }
 0x5b6   : > { %v4164_v1 = vmax.f32 %v4163_v21, %v3769_v57  ;;  %v4206_v25 = vmax.f32 %v4205_v49, %v3882_v3  ;;  %v3771_v14 = vadd.f32 %v3770_v28, %v7058_v12  ;;  %v3884_v34 = vadd.f32 %v3883_v58, %v7062_v44 }
 0x5b7   : > { %v3772_v42 = vpop.f32.mrf.mxu1  ;;  %v3885_v60 = vpop.f32.mrf.mxu0 }
 0x5b8   : > { %v4144_v55 = vmax.f32 %v4143_v43, %v3771_v14  ;;  %v4186_v13 = vmax.f32 %v4185_v37, %v3884_v34  ;;  %v3773_v20 = vadd.f32 %v3772_v42, %v7067_v0  ;;  %v3886_v17 = vadd.f32 %v3885_v60, %v7070_v23 }
 0x5ba   : > { %v4165_v59 = vmax.f32 %v4164_v1, %v3773_v20  ;;  %v4207_v6 = vmax.f32 %v4206_v25, %v3886_v17 }
 0x5ea   : > { %v3776_v29 = vpop.f32.mrf.mxu1  ;;  %v3889_v38 = vpop.f32.mrf.mxu0 }
 0x5eb   : > { %v3777_v35 = vadd.f32 %v3776_v29, %v7058_v12  ;;  %v3890_v11 = vadd.f32 %v3889_v38, %v7062_v44  ;;  %v5215_v29 = vmov 1966171168  }
 0x5ec   : > { %v3778_v61 = vpop.f32.mrf.mxu1  ;;  %v3891_v4 = vpop.f32.mrf.mxu0  ;;  %v4315_v38 = vunpack.c.l.s4 %v5215_v29 }
 0x5ed   : > { %v4145_v52 = vmax.f32 %v4144_v55, %v3777_v35  ;;  %v4187_v36 = vmax.f32 %v4186_v13, %v3890_v11  ;;  %v3779_v8 = vadd.f32 %v3778_v61, %v7067_v0  ;;  %v3892_v30 = vadd.f32 %v3891_v4, %v7070_v23 }
 0x5ee   : > { %v3780_v18 = vpop.f32.mrf.mxu1  ;;  %v3893_v54 = vpop.f32.mrf.mxu0 }
 0x5ef   : > { %v4166_v15 = vmax.f32 %v4165_v59, %v3779_v8  ;;  %v4208_v32 = vmax.f32 %v4207_v6, %v3892_v30  ;;  %v3781_v16 = vadd.f32 %v3780_v18, %v7058_v12  ;;  %v3894_v7 = vadd.f32 %v3893_v54, %v7062_v44 }
 0x5f0   : > { %v3782_v33 = vpop.f32.mrf.mxu1  ;;  %v3895_v2 = vpop.f32.mrf.mxu0 }
 0x5f1   : > { %v4146_v9 = vmax.f32 %v4145_v52, %v3781_v16  ;;  %v4188_v5 = vmax.f32 %v4187_v36, %v3894_v7  ;;  %v3783_v45 = vadd.f32 %v3782_v33, %v7067_v0  ;;  %v3896_v31 = vadd.f32 %v3895_v2, %v7070_v23 }
 0x5f2   : > { %v3786_v41 = vpop.f32.mrf.mxu1  ;;  %v4316_v16 = vunpack.c.0.s8 %v4315_v38 }
 0x5f3   : > { %v4167_v19 = vmax.f32 %v4166_v15, %v3783_v45  ;;  %v4209_v26 = vmax.f32 %v4208_v32, %v3896_v31  ;;  %v3787_v53 = vadd.f32 %v3786_v41, %v7058_v12  ;;  %v3899_v10 = vpop.f32.mrf.mxu0 }
 0x5f4   : > { %v3900_v22 = vadd.f32 %v3899_v10, %v7062_v44  ;;  %v3788_v50 = vpop.f32.mrf.mxu1 }
 0x5f5   : > { %v4147_v51 = vmax.f32 %v4146_v9, %v3787_v53  ;;  %v3789_v46 = vadd.f32 %v3788_v50, %v7067_v0  ;;  %v3901_v48 = vpop.f32.mrf.mxu0  ;;  %v7185_v53 = vsub.s32 %v4316_v16, %v7493_v47 }
 0x5f6   : > { %v4189_v40 = vmax.f32 %v4188_v5, %v3900_v22  ;;  %v3902_v24 = vadd.f32 %v3901_v48, %v7070_v23  ;;  %v3790_v21 = vpop.f32.mrf.mxu1 }
 0x5f7   : > { %v4168_v49 = vmax.f32 %v4167_v19, %v3789_v46  ;;  %v3791_v39 = vadd.f32 %v3790_v21, %v7058_v12  ;;  %v3903_v27 = vpop.f32.mrf.mxu0 }
 0x5f8   : > { %v4210_v56 = vmax.f32 %v4209_v26, %v3902_v24  ;;  %v3904_v62 = vadd.f32 %v3903_v27, %v7062_v44  ;;  %v3792_v43 = vpop.f32.mrf.mxu1 }
 0x5f9   : > { %v4148_v37 = vmax.f32 %v4147_v51, %v3791_v39  ;;  %v3793_v57 = vadd.f32 %v3792_v43, %v7067_v0  ;;  %v3905_v3 = vpop.f32.mrf.mxu0 }
 0x5fa   : > { %v4190_v28 = vmax.f32 %v4189_v40, %v3904_v62  ;;  %v3906_v58 = vadd.f32 %v3905_v3, %v7070_v23  ;;  %v7176_v1 = vpop.f32.mrf.mxu1 }
 0x5fb   : > { %v4149_v25 = vrot.slane %v4148_v37, 4  ;;  %v4169_v14 = vmax.f32 %v4168_v49, %v3793_v57  ;;  %v7178_v34 = vpop.f32.mrf.mxu0 }
 0x5fc   : > { %v4191_v42 = vrot.slane %v4190_v28, 4  ;;  %v4211_v12 = vmax.f32 %v4210_v56, %v3906_v58  ;;  %v7180_v60 = vpop.f32.mrf.mxu1 }
 0x5fd   : > { %v4150_v55 = vmax.f32 %v4148_v37, %v4149_v25  ;;  %v4170_v44 = vrot.slane %v4169_v14, 4  ;;  %v7182_v13 = vpop.f32.mrf.mxu0  ;;  %v3348_v25 = vsub.s32 6, %v7493_v47 }
 0x5fe   : > { %v4192_v20 = vmax.f32 %v4190_v28, %v4191_v42  ;;  %v4212_v0 = vrot.slane %v4211_v12, 4  ;;  %v3946_v17 = vpop.f32.mrf.mxu1  ;;  %v3340_v28 = vsub.s32 4, %v7493_v47  ;;  %v3344_v42 = vsub.s32 5, %v7493_v47 }
 0x5ff   : > { %v4151_v59 = vrot.slane %v4150_v55, 2  ;;  %v4171_v6 = vmax.f32 %v4169_v14, %v4170_v44  ;;  %v4059_v23 = vpop.f32.mrf.mxu0 }
 0x600   : > { %v4193_v35 = vrot.slane %v4192_v20, 2  ;;  %v4213_v11 = vmax.f32 %v4211_v12, %v4212_v0  ;;  %v3948_v61 = vpop.f32.mrf.mxu1  ;;  %v7218_v29 = vrot.slane %v7050_v63, %v3344_v42 }
 0x601   : > { %v4152_v4 = vmax.f32 %v4150_v55, %v4151_v59  ;;  %v4172_v52 = vrot.slane %v4171_v6, 2  ;;  %v4061_v36 = vpop.f32.mrf.mxu0  ;;  %v3352_v55 = vsub.s32 7, %v7493_v47  ;;  %v7213_v59 = vrot.slane %v7050_v63, %v3348_v25 }
 0x602   : > { %v4194_v8 = vmax.f32 %v4192_v20, %v4193_v35  ;;  %v4214_v30 = vrot.slane %v4213_v11, 2  ;;  %v3952_v18 = vpop.f32.mrf.mxu1  ;;  %v7208_v20 = vrot.slane %v7050_v63, %v3340_v28 }
 0x603   : > { %v4153_v54 = vrot.slane %v4152_v4, 1  ;;  %v4173_v15 = vmax.f32 %v4171_v6, %v4172_v52  ;;  %v4065_v32 = vpop.f32.mrf.mxu0  ;;  %v7224_v47 = vrot.slane %v7050_v63, %v3352_v55 }
 0x604   : > { %v4195_v7 = vrot.slane %v4194_v8, 1  ;;  %v4215_v33 = vmax.f32 %v4213_v11, %v4214_v30  ;;  %v3954_v2 = vpop.f32.mrf.mxu1  ;;  %v3947_v38 = vadd.f32 %v3946_v17, %v7208_v20  ;;  %v4060_v11 = vadd.f32 %v4059_v23, %v7213_v59 }
 0x605   : > { %v4174_v9 = vrot.slane %v4173_v15, 1  ;;  %v4067_v5 = vpop.f32.mrf.mxu0  ;;  %v4154_v41 = vmax.f32 %v4152_v4, %v4153_v54  ;;  %v3943_v52 = vadd.f32 %v7176_v1, %v7208_v20  ;;  %v3953_v30 = vadd.f32 %v3952_v18, %v7208_v20 }
 0x606   : > { %v4216_v45 = vrot.slane %v4215_v33, 1  ;;  %v3956_v31 = vpop.f32.mrf.mxu1  ;;  %v4196_v10 = vmax.f32 %v4194_v8, %v4195_v7  ;;  %v3949_v8 = vadd.f32 %v3948_v61, %v7218_v29  ;;  %v4056_v17 = vadd.f32 %v7178_v34, %v7213_v59 }
 0x607   : > { %v4175_v19 = vmax.f32 %v4173_v15, %v4174_v9  ;;  %v4069_v26 = vpop.f32.mrf.mxu0  ;;  %v4062_v15 = vadd.f32 %v4061_v36, %v7224_v47  ;;  %v4066_v63 = vadd.f32 %v4065_v32, %v7213_v59  ;;  %v3945_v23 = vadd.f32 %v7180_v60, %v7218_v29 }
 0x608   : > { %v4217_v22 = vmax.f32 %v4215_v33, %v4216_v45  ;;  %v3958_v50 = vpop.f32.mrf.mxu1  ;;  %v4218_v7 = vmax.f32 %v3943_v52, %v3947_v38  ;;  %v3955_v1 = vadd.f32 %v3954_v2, %v7218_v29  ;;  %v3957_v61 = vadd.f32 %v3956_v31, %v7208_v20 }
 0x609   : > { %v4310_v51 = vcombine.low %v4154_v41, %v4175_v19  ;;  %v4071_v46 = vpop.f32.mrf.mxu0  ;;  %v4058_v33 = vadd.f32 %v7182_v13, %v7224_v47  ;;  %v4260_v34 = vmax.f32 %v4056_v17, %v4060_v11  ;;  %v4068_v36 = vadd.f32 %v4067_v5, %v7224_v47 }
 0x60a   : > { %v4311_v48 = vcombine.low %v4196_v10, %v4217_v22  ;;  %v3962_v40 = vpop.f32.mrf.mxu1  ;;  %v4070_v32 = vadd.f32 %v4069_v26, %v7213_v59  ;;  %v4239_v45 = vmax.f32 %v3945_v23, %v3949_v8  ;;  %v4219_v41 = vmax.f32 %v4218_v7, %v3953_v30 }
 0x60b   : > { %v4075_v24 = vpop.f32.mrf.mxu0  ;;  %v7188_v21 = vrot.slane %v4310_v51, %v7185_v53  ;;  %v3959_v60 = vadd.f32 %v3958_v50, %v7218_v29  ;;  %v3963_v19 = vadd.f32 %v3962_v40, %v7208_v20  ;;  %v4281_v10 = vmax.f32 %v4058_v33, %v4062_v15 }
 0x60c   : > { %v3964_v49 = vpop.f32.mrf.mxu1  ;;  %v7191_v39 = vrot.slane %v4311_v48, %v7185_v53  ;;  %v4261_v31 = vmax.f32 %v4260_v34, %v4066_v63  ;;  %v4072_v22 = vadd.f32 %v4071_v46, %v7224_v47  ;;  %v4076_v51 = vadd.f32 %v4075_v24, %v7213_v59 }
 0x60d   : > { %v4077_v27 = vpop.f32.mrf.mxu0  ;;  %v4240_v48 = vmax.f32 %v4239_v45, %v3955_v1  ;;  %v4220_v28 = vmax.f32 %v4219_v41, %v3957_v61  ;;  %v3965_v5 = vadd.f32 %v3964_v49, %v7218_v29  ;;  %v4282_v42 = vmax.f32 %v4281_v10, %v4068_v36 }
 0x60e   : > { %v3966_v56 = vpop.f32.mrf.mxu1  ;;  %v4342_v62 = vcombine.low %v7188_v21, %v7191_v39  ;;  %v4262_v55 = vmax.f32 %v4261_v31, %v4070_v32  ;;  %v4078_v50 = vadd.f32 %v4077_v27, %v7224_v47 }
 0x60f   : > { %v4079_v43 = vpop.f32.mrf.mxu0  ;;  %v3967_v26 = vadd.f32 %v3966_v56, %v7208_v20  ;;  %v4241_v11 = vmax.f32 %v4240_v48, %v3959_v60  ;;  %v4221_v52 = vmax.f32 %v4220_v28, %v3963_v19  ;;  %v4283_v30 = vmax.f32 %v4282_v42, %v4072_v22 }
 0x610   : > { %v3968_v37 = vpop.f32.mrf.mxu1  ;;  %v4080_v40 = vadd.f32 %v4079_v43, %v7213_v59  ;;  %v4263_v17 = vmax.f32 %v4262_v55, %v4076_v51 }
 0x611   : > { %v7195_v57 = vpop.f32.mrf.mxu0  ;;  %v3969_v46 = vadd.f32 %v3968_v37, %v7218_v29  ;;  %v4242_v27 = vmax.f32 %v4241_v11, %v3965_v5  ;;  %v4222_v63 = vmax.f32 %v4221_v52, %v3967_v26  ;;  %v4284_v7 = vmax.f32 %v4283_v30, %v4078_v50 }
 0x612   : > { %v3972_v3 = vpop.f32.mrf.mxu1  ;;  %v4082_v49 = vadd.f32 %v7195_v57, %v7224_v47 }
 0x613   : > { %v7198_v58 = vpop.f32.mrf.mxu0  ;;  %v3973_v24 = vadd.f32 %v3972_v3, %v7208_v20  ;;  %v4264_v3 = vmax.f32 %v4263_v17, %v4080_v40  ;;  %v4243_v33 = vmax.f32 %v4242_v27, %v3969_v46 }
 0x614   : > { %v7201_v14 = vpop.f32.mrf.mxu1  ;;  %v4086_v56 = vadd.f32 %v7198_v58, %v7213_v59  ;;  %v4285_v32 = vmax.f32 %v4284_v7, %v4082_v49 }
 0x615   : > { %v7204_v12 = vpop.f32.mrf.mxu0  ;;  %v3975_v43 = vadd.f32 %v7201_v14, %v7218_v29  ;;  %v4223_v58 = vmax.f32 %v4222_v63, %v3973_v24 }
 0x616   : > { %v3976_v44 = vpop.f32.mrf.mxu1  ;;  %v4088_v1 = vadd.f32 %v7204_v12, %v7224_v47 }
 0x617   : > { %v7210_v0 = vpop.f32.mrf.mxu0  ;;  %v3977_v23 = vadd.f32 %v3976_v44, %v7208_v20  ;;  %v4265_v44 = vmax.f32 %v4264_v3, %v4086_v56  ;;  %v4244_v60 = vmax.f32 %v4243_v33, %v3975_v43 }
 0x618   : > { %v7215_v6 = vpop.f32.mrf.mxu1  ;;  %v4090_v57 = vadd.f32 %v7210_v0, %v7213_v59  ;;  %v4286_v31 = vmax.f32 %v4285_v32, %v4088_v1 }
 0x619   : > { %v7221_v35 = vpop.f32.mrf.mxu0  ;;  %v3979_v34 = vadd.f32 %v7215_v6, %v7218_v29  ;;  %v4224_v0 = vmax.f32 %v4223_v58, %v3977_v23 }
 0x61a   : > { %v3982_v4 = vpop.f32.mrf.mxu1  ;;  %v4092_v45 = vadd.f32 %v7221_v35, %v7224_v47 }
 0x61b   : > { %v7231_v54 = vpop.f32.mrf.mxu0  ;;  %v3983_v36 = vadd.f32 %v3982_v4, %v7208_v20  ;;  %v4266_v4 = vmax.f32 %v4265_v44, %v4090_v57  ;;  %v4245_v48 = vmax.f32 %v4244_v60, %v3979_v34 }
 0x61c   : > { %v7237_v16 = vpop.f32.mrf.mxu1  ;;  %v4096_v12 = vadd.f32 %v7231_v54, %v7213_v59  ;;  %v4287_v42 = vmax.f32 %v4286_v31, %v4092_v45 }
 0x61d   : > { %v7243_v18 = vpop.f32.mrf.mxu0  ;;  %v3985_v19 = vadd.f32 %v7237_v16, %v7218_v29  ;;  %v4225_v28 = vmax.f32 %v4224_v0, %v3983_v36 }
 0x61e   : > { %v3986_v9 = vpop.f32.mrf.mxu1  ;;  %v4098_v22 = vadd.f32 %v7243_v18, %v7224_v47  ;;  %v4267_v16 = vmax.f32 %v4266_v4, %v4096_v12 }
 0x61f   : > { %v4099_v2 = vpop.f32.mrf.mxu0  ;;  %v3987_v10 = vadd.f32 %v3986_v9, %v7208_v20  ;;  %v4246_v40 = vmax.f32 %v4245_v48, %v3985_v19 }
 0x620   : > { %v3988_v13 = vpop.f32.mrf.mxu1  ;;  %v4100_v51 = vadd.f32 %v4099_v2, %v7213_v59  ;;  %v4288_v46 = vmax.f32 %v4287_v42, %v4098_v22 }
 0x621   : > { %v4101_v25 = vpop.f32.mrf.mxu0  ;;  %v3989_v54 = vadd.f32 %v3988_v13, %v7218_v29  ;;  %v4226_v11 = vmax.f32 %v4225_v28, %v3987_v10 }
 0x622   : > { %v3992_v38 = vpop.f32.mrf.mxu1  ;;  %v4102_v9 = vadd.f32 %v4101_v25, %v7224_v47  ;;  %v4268_v24 = vmax.f32 %v4267_v16, %v4100_v51 }
 0x623   : > { %v4105_v8 = vpop.f32.mrf.mxu0  ;;  %v3993_v5 = vadd.f32 %v3992_v38, %v7208_v20  ;;  %v4247_v17 = vmax.f32 %v4246_v40, %v3989_v54 }
 0x624   : > { %v3994_v15 = vpop.f32.mrf.mxu1  ;;  %v4106_v55 = vadd.f32 %v4105_v8, %v7213_v59  ;;  %v4289_v27 = vmax.f32 %v4288_v46, %v4102_v9 }
 0x625   : > { %v4107_v37 = vpop.f32.mrf.mxu0  ;;  %v3995_v18 = vadd.f32 %v3994_v15, %v7218_v29  ;;  %v4227_v49 = vmax.f32 %v4226_v11, %v3993_v5 }
 0x626   : > { %v3996_v61 = vpop.f32.mrf.mxu1  ;;  %v4108_v13 = vadd.f32 %v4107_v37, %v7224_v47  ;;  %v4269_v63 = vmax.f32 %v4268_v24, %v4106_v55 }
 0x627   : > { %v4109_v14 = vpop.f32.mrf.mxu0  ;;  %v3997_v2 = vadd.f32 %v3996_v61, %v7208_v20  ;;  %v4248_v7 = vmax.f32 %v4247_v17, %v3995_v18 }
 0x628   : > { %v3998_v41 = vpop.f32.mrf.mxu1  ;;  %v4110_v38 = vadd.f32 %v4109_v14, %v7213_v59  ;;  %v4290_v61 = vmax.f32 %v4289_v27, %v4108_v13 }
 0x629   : > { %v4111_v6 = vpop.f32.mrf.mxu0  ;;  %v3999_v25 = vadd.f32 %v3998_v41, %v7218_v29  ;;  %v4228_v3 = vmax.f32 %v4227_v49, %v3997_v2 }
 0x62a   : > { %v4002_v35 = vpop.f32.mrf.mxu1  ;;  %v4112_v15 = vadd.f32 %v4111_v6, %v7224_v47  ;;  %v4270_v33 = vmax.f32 %v4269_v63, %v4110_v38 }
 0x62b   : > { %v4115_v26 = vpop.f32.mrf.mxu0  ;;  %v4003_v8 = vadd.f32 %v4002_v35, %v7208_v20  ;;  %v4249_v14 = vmax.f32 %v4248_v7, %v3999_v25 }
 0x62c   : > { %v4004_v50 = vpop.f32.mrf.mxu1  ;;  %v4116_v43 = vadd.f32 %v4115_v26, %v7213_v59  ;;  %v4291_v41 = vmax.f32 %v4290_v61, %v4112_v15 }
 0x62d   : > { %v4117_v52 = vpop.f32.mrf.mxu0  ;;  %v4005_v37 = vadd.f32 %v4004_v50, %v7218_v29  ;;  %v4229_v32 = vmax.f32 %v4228_v3, %v4003_v8 }
 0x62e   : > { %v4006_v30 = vpop.f32.mrf.mxu1  ;;  %v4118_v58 = vadd.f32 %v4117_v52, %v7224_v47  ;;  %v4271_v60 = vmax.f32 %v4270_v33, %v4116_v43 }
 0x62f   : > { %v4119_v56 = vpop.f32.mrf.mxu0  ;;  %v4007_v1 = vadd.f32 %v4006_v30, %v7208_v20  ;;  %v4250_v6 = vmax.f32 %v4249_v14, %v4005_v37 }
 0x630   : > { %v4008_v23 = vpop.f32.mrf.mxu1  ;;  %v4120_v34 = vadd.f32 %v4119_v56, %v7213_v59  ;;  %v4292_v51 = vmax.f32 %v4291_v41, %v4118_v58 }
 0x631   : > { %v4121_v57 = vpop.f32.mrf.mxu0  ;;  %v4009_v44 = vadd.f32 %v4008_v23, %v7218_v29  ;;  %v4230_v31 = vmax.f32 %v4229_v32, %v4007_v1 }
 0x632   : > { %v4012_v36 = vpop.f32.mrf.mxu1  ;;  %v4122_v0 = vadd.f32 %v4121_v57, %v7224_v47  ;;  %v4272_v35 = vmax.f32 %v4271_v60, %v4120_v34 }
 0x633   : > { %v4013_v45 = vadd.f32 %v4012_v36, %v7208_v20  ;;  %v4125_v12 = vpop.f32.mrf.mxu0  ;;  %v4251_v54 = vmax.f32 %v4250_v6, %v4009_v44 }
 0x634   : > { %v4126_v19 = vadd.f32 %v4125_v12, %v7213_v59  ;;  %v4014_v10 = vpop.f32.mrf.mxu1  ;;  %v4293_v16 = vmax.f32 %v4292_v51, %v4122_v0  ;;  %v4350_v12 = vrot.slane %v4342_v62, %v7185_v53 }
 0x635   : > { %v4015_v4 = vadd.f32 %v4014_v10, %v7218_v29  ;;  %v4127_v22 = vpop.f32.mrf.mxu0  ;;  %v4231_v5 = vmax.f32 %v4230_v31, %v4013_v45 }
 0x636   : > { %v4128_v48 = vadd.f32 %v4127_v22, %v7224_v47  ;;  %v4016_v28 = vpop.f32.mrf.mxu1  ;;  %v4273_v9 = vmax.f32 %v4272_v35, %v4126_v19 }
 0x637   : > { %v4017_v26 = vadd.f32 %v4016_v28, %v7208_v20  ;;  %v4129_v42 = vpop.f32.mrf.mxu0  ;;  %v4252_v40 = vmax.f32 %v4251_v54, %v4015_v4 }
 0x638   : > { %v4130_v55 = vadd.f32 %v4129_v42, %v7213_v59  ;;  %v4018_v50 = vpop.f32.mrf.mxu1  ;;  %v4294_v52 = vmax.f32 %v4293_v16, %v4128_v48 }
 0x639   : > { %v4232_v11 = vmax.f32 %v4231_v5, %v4017_v26  ;;  %v4019_v18 = vadd.f32 %v4018_v50, %v7218_v29  ;;  %v4131_v2 = vpop.f32.mrf.mxu0 }
 0x63a   : > { %v4274_v46 = vmax.f32 %v4273_v9, %v4130_v55  ;;  %v4132_v24 = vadd.f32 %v4131_v2, %v7224_v47 }
 0x63b   : > { %v4233_v13 = vrot.slane %v4232_v11, 4  ;;  %v4253_v38 = vmax.f32 %v4252_v40, %v4019_v18 }
 0x63c   : > { %v4275_v30 = vrot.slane %v4274_v46, 4  ;;  %v4295_v17 = vmax.f32 %v4294_v52, %v4132_v24 }
 0x63d   : > { %v4234_v20 = vmax.f32 %v4232_v11, %v4233_v13  ;;  %v4254_v49 = vrot.slane %v4253_v38, 4 }
 0x63e   : > { %v4276_v25 = vmax.f32 %v4274_v46, %v4275_v30  ;;  %v4296_v8 = vrot.slane %v4295_v17, 4 }
 0x63f   : > { %v4235_v59 = vrot.slane %v4234_v20, 2  ;;  %v4255_v56 = vmax.f32 %v4253_v38, %v4254_v49 }
 0x640   : > { %v4277_v27 = vrot.slane %v4276_v25, 2  ;;  %v4297_v63 = vmax.f32 %v4295_v17, %v4296_v8 }
 0x641   : > { %v4236_v15 = vmax.f32 %v4234_v20, %v4235_v59  ;;  %v4256_v29 = vrot.slane %v4255_v56, 2 }
 0x642   : > { %v4278_v43 = vmax.f32 %v4276_v25, %v4277_v27  ;;  %v4298_v23 = vrot.slane %v4297_v63, 2 }
 0x643   : > { %v4237_v7 = vrot.slane %v4236_v15, 1  ;;  %v4257_v3 = vmax.f32 %v4255_v56, %v4256_v29 }
 0x644   : > { %v4279_v47 = vrot.slane %v4278_v43, 1  ;;  %v4299_v37 = vmax.f32 %v4297_v63, %v4298_v23 }
 0x645   : > { %v4258_v1 = vrot.slane %v4257_v3, 1  ;;  %v4238_v61 = vmax.f32 %v4236_v15, %v4237_v7 }
 0x646   : > { %v4300_v57 = vrot.slane %v4299_v37, 1  ;;  %v4280_v58 = vmax.f32 %v4278_v43, %v4279_v47 }
 0x647   : > { %v4259_v33 = vmax.f32 %v4257_v3, %v4258_v1 }
 0x648   : > { %v4301_v34 = vmax.f32 %v4299_v37, %v4300_v57 }
 0x649   : > { %v4312_v36 = vcombine.low %v4238_v61, %v4259_v33 }
 0x64a   : > { %v4313_v14 = vcombine.low %v4280_v58, %v4301_v34 }
 0x64b   : > { %v4334_v32 = vrot.slane %v4312_v36, %v7185_v53 }
 0x64c   : > { %v4341_v44 = vrot.slane %v4313_v14, %v7185_v53 }
 0x64e   : > { %v4343_v45 = vcombine.low %v4334_v32, %v4341_v44 }
 0x650   : > { %v4357_v41 = vrot.slane %v4343_v45, %v7185_v53 }
 0x652   : > { %v4358_v60 = vcombine.low %v4350_v12, %v4357_v41 }
 0x654   : > { %4360 = vst [vmem:[%s379_s15] sm:$0xff] %v4358_v60 }
 0x655   : > { %5163 = shalt.err (!%p5160_p3)
}
 0x656   : > { %s5164_s1 = scalar_lea.hbm %s4374_s14, 128  ;;  %s5168_s15 = scalar_lea.hbm %s7361_s11, 256 }
 0x657   : > { %p5165_p4 = scmp.ne.s32.totalorder %s4374_s14, %s5164_s1  ;;  %p5169_p9 = scmp.lt.s32.totalorder %s4374_s14, %s7361_s11 }
 0x658   : > { %p5170_p10 = scmp.lt.s32.totalorder %s5168_s15, %s5164_s1 }
 0x659   : > { %p5166_p7 = pnand %p5165_p4, %p5315_p5 }
 0x65a   : > { %p5171_p11 = por %p5170_p10, %p5169_p9 }
 0x65b   : > { %p5167_p8 = pneg %p5166_p7 }
 0x65d   : > { %p5172_p12 = pnand %p5171_p11, %p5167_p8 }
 0x65f   : > { %5175 = shalt.err (!%p5172_p12)
}
 0x660   : > { %4964 = dma.vmem_to_hbm [thread:$0]  (%p5315_p5), %s4377_s16, 128, %s4374_s14, %s4362_s25  }
 0x661 PF: > { %p4970_p13 = scmp.ge.s32.totalorder %s5210_s20, 2  ;;  %s4388_s0 = sand.u32 1, %s5198_s17  }
 0x662   : > { %s4389_s29 = scalar_lea.sflag [#allocation3], %s4388_s0 }
 0x663   : > { %p4967_p0 = pnand %p4970_p13, %p5319_p6 }
 0x665   : > { %p4968_p1 = pneg %p4967_p0 }
 0x667   : > { %5193 = dma.done.wait (%p4968_p1), %s4389_s29, 128  }
 0x668   : > { %5195 = vsyncadd (%p4968_p1), %s4389_s29, 4294967168  ;;  %p21_p2 = scmp.ge.s32.totalorder %s5302_s23, 4   ;;  %s7497_s17 = smov %s5202_s18 }
 0x669   : > { %s7498_s18 = smov %s5206_s19  ;;  %s7499_s19 = smov %s5313_s26 }
 0x66a   : > { %s7500_s20 = smov %s5302_s23  ;;  %23 = sbr.rel (!%p21_p2) target bundleno = 6 (0x6), region = 111 }
 0x66f   :  { %4394 = vsyncpa [#allocation3], 1 }
 0x670   :  { %4396 = vsyncpa [#allocation3 + $0x1], 1 }

</bundles_post_ra>
